<compile_context>
chip_gen: v7x
topology: tpu7x:2x2x1
jax: 0.10.0
libtpu: 0.0.40
codegen_flags: <defaults>
</compile_context>

<pallas_src>
import functools

import numpy as np
import jax
import jax.numpy as jnp
from jax import lax
from jax.experimental import pallas as pl
from jax.experimental.pallas import tpu as pltpu

LANE = 128
SUBLANE = 8
MAX_CHILDREN = 8          # fixed, sublane-aligned child padding


def _round_up(x, m):
    return ((x + m - 1) // m) * m


# ----------------------------------------------------------------------------
# Fused tree kernel: single grid step, in-kernel loop over nodes (root last)
# ----------------------------------------------------------------------------
def tree_lstm_kernel(pslot_ref,                                   # SMEM: (num_nodes,) int32
                     x_ref, wstack_ref, bgate_ref, bfh_ref,       # VMEM whole arrays
                     wcls_ref, bcls_ref,
                     out_ref,                                     # (1, cls_pad)
                     c_slab, h_slab, lhs_buf,                     # VMEM scratch
                     *, num_nodes, max_children, in_pad, mem_pad, num_classes):
    # zero the parent-indexed state slabs + LHS staging buffer once
    c_slab[...] = jnp.zeros_like(c_slab)
    h_slab[...] = jnp.zeros_like(h_slab)
    lhs_buf[...] = jnp.zeros_like(lhs_buf)

    ch0 = max_children                       # first child row inside lhs_buf / g

    def node_step(t, carry):
        # node t's input row (inputs are host-permuted into topological order)
        x = x_ref[pl.ds(t, 1), :]                                   # (1, in_pad)

        # all (padded) child states: one aligned (8,128) load per buffer;
        # unused slots are never written, so they stay exactly zero.
        base = pl.multiple_of(t * max_children, max_children)
        child_h = h_slab[pl.ds(base, max_children), :]              # (MAXC, mem_pad)
        child_c = c_slab[pl.ds(base, max_children), :]              # (MAXC, mem_pad)

        h_sum = jnp.sum(child_h, axis=0, keepdims=True)             # (1, mem_pad)

        # single fused MXU push:
        #   row 0            = [x | h_sum]      -> blocks [i|o|u|fx]
        #   rows MAXC..2MAXC = [0 | child_h_j]  -> block  [fh]
        lhs_buf[0:1, :in_pad] = x
        lhs_buf[0:1, in_pad:] = h_sum
        lhs_buf[ch0:2 * max_children, in_pad:] = child_h
        g = jnp.dot(lhs_buf[...], wstack_ref[...],
                    preferred_element_type=jnp.float32)             # (2*MAXC, 5*mem_pad)

        g0 = g[0:1, :4 * mem_pad] + bgate_ref[...]
        i_g = jax.nn.sigmoid(g0[:, 0 * mem_pad:1 * mem_pad])
        o_g = jax.nn.sigmoid(g0[:, 1 * mem_pad:2 * mem_pad])
        u_g = jnp.tanh(g0[:, 2 * mem_pad:3 * mem_pad])
        fxv = g0[:, 3 * mem_pad:4 * mem_pad]                        # fx (bias included)

        # per-child forget gates; zero child_c rows kill invalid slots
        fh_pre = g[ch0:2 * max_children, 4 * mem_pad:5 * mem_pad] + bfh_ref[...] + fxv
        f = jax.nn.sigmoid(fh_pre)
        fc = f * child_c

        c = i_g * u_g + jnp.sum(fc, axis=0, keepdims=True)
        h = o_g * jnp.tanh(c)

        # scatter this node's state into its parent's child slot (root -> dummy row)
        slot = pslot_ref[t]
        c_slab[pl.ds(slot, 1), :] = c
        h_slab[pl.ds(slot, 1), :] = h
        return carry

    lax.fori_loop(0, num_nodes, node_step, 0, unroll=(num_nodes <= 32))

    # classifier (Linear + LogSoftmax), only on the root hidden state
    root_row = num_nodes * max_children
    h_root = h_slab[pl.ds(root_row, 1), :]                          # (1, mem_pad)
    logits = jnp.dot(h_root, wcls_ref[...],
                     preferred_element_type=jnp.float32) + bcls_ref[...]
    lane = lax.broadcasted_iota(jnp.int32, logits.shape, 1)
    logits = jnp.where(lane < num_classes, logits, -1e30)           # mask padded classes
    m = jnp.max(logits, axis=1, keepdims=True)
    z = logits - m
    out_ref[...] = z - jnp.log(jnp.sum(jnp.exp(z), axis=1, keepdims=True))


# ----------------------------------------------------------------------------
# pallas_call builder
# ----------------------------------------------------------------------------
def make_tree_lstm_fn(*, num_nodes, max_children, in_pad, mem_pad, cls_pad,
                      num_classes):
    kernel = functools.partial(tree_lstm_kernel,
                               num_nodes=num_nodes,
                               max_children=max_children,
                               in_pad=in_pad, mem_pad=mem_pad,
                               num_classes=num_classes)

    slab_rows = num_nodes * max_children + max_children   # + dummy block for the root
    vmem = lambda: pl.BlockSpec(memory_space=pltpu.MemorySpace.VMEM)

    grid_spec = pltpu.PrefetchScalarGridSpec(
        num_scalar_prefetch=1,                 # pslot -> SMEM
        grid=(1,),                             # single step; nodes loop inside the kernel
        in_specs=[vmem(),                      # topologically-ordered padded inputs
                  vmem(),                      # stacked gate+fh weight (in_pad+mem_pad, 5*mem_pad)
                  vmem(),                      # stacked gate bias (1, 4*mem_pad)
                  vmem(),                      # b_fh (1, mem_pad)
                  vmem(),                      # classifier W (mem_pad, cls_pad)
                  vmem()],                     # classifier b (1, cls_pad)
        out_specs=vmem(),
        scratch_shapes=[pltpu.VMEM((slab_rows, mem_pad), jnp.float32),   # c slab
                        pltpu.VMEM((slab_rows, mem_pad), jnp.float32),   # h slab
                        pltpu.VMEM((2 * max_children, in_pad + mem_pad),
                                   jnp.float32)],                        # LHS staging
    )

    call = pl.pallas_call(
        kernel,
        out_shape=jax.ShapeDtypeStruct((1, cls_pad), jnp.float32),
        grid_spec=grid_spec,
        compiler_params=pltpu.CompilerParams(
            dimension_semantics=("arbitrary",)),
    )

    @jax.jit
    def run(pslot, x_topo, wstack, bgate, bfh, wcls, bcls):
        out = call(pslot, x_topo, wstack, bgate, bfh, wcls, bcls)
        return out[:, :num_classes]

    return run


# ----------------------------------------------------------------------------
# Tree structure + topology tables (host side, cheap int bookkeeping only)
# ----------------------------------------------------------------------------
class Tree:
    def __init__(self, idx, children=None):
        self.idx = idx
        self.children = children or []
        self.num_children = len(self.children)
        self.state = None


def build_topology(root, max_children):
    """Post-order (children before parents); root is last.

    Returns pslot[t] = parent_topo*max_children + child_slot for node t
    (the slab row its state is scattered to); the root gets a dummy row.
    """
    order = []

    def visit(node):
        for ch in node.children:
            visit(ch)
        node.topo = len(order)
        order.append(node)

    visit(root)
    n = len(order)
    pslot = np.zeros((n,), np.int32)
    pslot[root.topo] = n * max_children            # dummy row for the root
    for node in order:
        assert len(node.children) <= max_children
        for j, ch in enumerate(node.children):
            pslot[ch.topo] = node.topo * max_children + j
    return pslot, order, n


# ----------------------------------------------------------------------------
# Parameters (PyTorch-Linear-like uniform init) + lane-dense packing
# ----------------------------------------------------------------------------
def init_raw_params(key, in_dim, mem_dim, num_classes):
    def linear(k, fi, fo):
        bound = 1.0 / np.sqrt(fi)
        kw, kb = jax.random.split(k)
        w = jax.random.uniform(kw, (fi, fo), jnp.float32, -bound, bound)
        b = jax.random.uniform(kb, (fo,), jnp.float32, -bound, bound)
        return np.asarray(w), np.asarray(b)

    keys = jax.random.split(key, 9)
    p = {}
    p["wix"], p["bix"] = linear(keys[0], in_dim, mem_dim)
    p["wox"], p["box"] = linear(keys[1], in_dim, mem_dim)
    p["wux"], p["bux"] = linear(keys[2], in_dim, mem_dim)
    p["wfx"], p["bfx"] = linear(keys[3], in_dim, mem_dim)
    p["wih"], p["bih"] = linear(keys[4], mem_dim, mem_dim)
    p["woh"], p["boh"] = linear(keys[5], mem_dim, mem_dim)
    p["wuh"], p["buh"] = linear(keys[6], mem_dim, mem_dim)
    p["wfh"], p["bfh"] = linear(keys[7], mem_dim, mem_dim)
    p["wl1"], p["bl1"] = linear(keys[8], mem_dim, num_classes)
    return p


def pack_params(p, in_dim, mem_dim, num_classes, in_pad, mem_pad, cls_pad):
    """Fuse the 9 Linears into lane-dense stacked weights.

    wstack columns: [i | o | u | fx | fh], each mem_pad wide.
      blocks 0-2: x rows + h rows;  block 3 (fx): x rows only;
      block 4 (fh): h rows only.
    All padded rows/columns are zero, so padded lanes of c/h stay exactly zero.
    Gate biases (row-0 path) are pre-summed; b_fh stays separate (per-child rows).
    """
    wstack = np.zeros((in_pad + mem_pad, 5 * mem_pad), np.float32)
    bgate = np.zeros((1, 4 * mem_pad), np.float32)
    gates_x = [p["wix"], p["wox"], p["wux"], p["wfx"]]
    gates_h = [p["wih"], p["woh"], p["wuh"], None]
    bias_x = [p["bix"], p["box"], p["bux"], p["bfx"]]
    bias_h = [p["bih"], p["boh"], p["buh"], None]
    for g in range(4):
        c0 = g * mem_pad
        wstack[:in_dim, c0:c0 + mem_dim] = gates_x[g]
        bgate[0, c0:c0 + mem_dim] = bias_x[g]
        if gates_h[g] is not None:
            wstack[in_pad:in_pad + mem_dim, c0:c0 + mem_dim] = gates_h[g]
            bgate[0, c0:c0 + mem_dim] += bias_h[g]
    # block 4: per-child forget-gate weight (x rows stay zero)
    wstack[in_pad:in_pad + mem_dim, 4 * mem_pad:4 * mem_pad + mem_dim] = p["wfh"]

    bfh = np.zeros((1, mem_pad), np.float32)
    bfh[0, :mem_dim] = p["bfh"]

    wcls = np.zeros((mem_pad, cls_pad), np.float32)
    wcls[:mem_dim, :num_classes] = p["wl1"]
    bcls = np.zeros((1, cls_pad), np.float32)
    bcls[0, :num_classes] = p["bl1"]

    return tuple(jnp.asarray(a) for a in (wstack, bgate, bfh, wcls, bcls))


# ----------------------------------------------------------------------------
# Pure numpy (float64) reference mirroring the PyTorch module
# ----------------------------------------------------------------------------
def _np_sigmoid(x):
    return 1.0 / (1.0 + np.exp(-x))


def ref_tree_forward(tree, inputs_np, p):
    for ch in tree.children:
        ref_tree_forward(ch, inputs_np, p)
    mem_dim = p["wih"].shape[0]
    if tree.num_children == 0:
        child_c = np.zeros((1, mem_dim))
        child_h = np.zeros((1, mem_dim))
    else:
        child_c = np.concatenate([ch.ref_state[0] for ch in tree.children], axis=0)
        child_h = np.concatenate([ch.ref_state[1] for ch in tree.children], axis=0)
    x = inputs_np[tree.idx:tree.idx + 1].astype(np.float64)
    h_sum = child_h.sum(axis=0, keepdims=True)
    i = _np_sigmoid(x @ p["wix"] + p["bix"] + h_sum @ p["wih"] + p["bih"])
    o = _np_sigmoid(x @ p["wox"] + p["box"] + h_sum @ p["woh"] + p["boh"])
    u = np.tanh(x @ p["wux"] + p["bux"] + h_sum @ p["wuh"] + p["buh"])
    fx = x @ p["wfx"] + p["bfx"]
    f = _np_sigmoid(child_h @ p["wfh"] + p["bfh"] + fx)
    fc = f * child_c
    c = i * u + fc.sum(axis=0, keepdims=True)
    h = o * np.tanh(c)
    tree.ref_state = (c, h)
    logits = h @ p["wl1"] + p["bl1"]
    m = logits.max()
    return logits - m - np.log(np.exp(logits - m).sum())


# ----------------------------------------------------------------------------
if __name__ == "__main__":
    in_dim, mem_dim, num_classes, seq_len = 32, 32, 4, 8

    key = jax.random.PRNGKey(0)
    k_params, k_inputs = jax.random.split(key)
    raw = init_raw_params(k_params, in_dim, mem_dim, num_classes)
    inputs = np.asarray(jax.random.normal(k_inputs, (seq_len, in_dim), jnp.float32))

    # small dependency tree over 6 of the 8 tokens
    #        0
    #      /   \
    #     1     2
    #    / \     \
    #   3   4     5
    leaf3, leaf4, leaf5 = Tree(3), Tree(4), Tree(5)
    node1 = Tree(1, [leaf3, leaf4])
    node2 = Tree(2, [leaf5])
    root = Tree(0, [node1, node2])

    # padded (lane-dense) sizes
    in_pad = _round_up(in_dim, LANE)
    mem_pad = _round_up(mem_dim, LANE)
    cls_pad = _round_up(num_classes, LANE)

    pslot, order, num_nodes = build_topology(root, MAX_CHILDREN)

    # permute inputs into topological order on the host (row t == node t's input)
    n_rows = max(_round_up(num_nodes, SUBLANE), SUBLANE)
    x_topo = np.zeros((n_rows, in_pad), np.float32)
    for t, node in enumerate(order):
        x_topo[t, :in_dim] = inputs[node.idx]

    wstack, bgate, bfh, wcls, bcls = pack_params(
        raw, in_dim, mem_dim, num_classes, in_pad, mem_pad, cls_pad)

    fwd = make_tree_lstm_fn(num_nodes=num_nodes, max_children=MAX_CHILDREN,
                            in_pad=in_pad, mem_pad=mem_pad, cls_pad=cls_pad,
                            num_classes=num_classes)

    out = fwd(jnp.asarray(pslot), jnp.asarray(x_topo),
              wstack, bgate, bfh, wcls, bcls)
    out = jax.block_until_ready(out)
    assert out.shape == (1, num_classes)

    ref = ref_tree_forward(root, inputs, raw)
    np.testing.assert_allclose(np.asarray(out, np.float64), ref, rtol=2e-3, atol=2e-3)

    print("KERNEL_OK")
</pallas_src>

<mosaic_0001>
module attributes {stable_mosaic.version = 11 : i64} {
  func.func @tree_lstm_kernel(%arg0: i32, %arg1: memref<6xi32, #tpu.memory_space<smem>>, %arg2: memref<8x128xf32, #tpu.memory_space<vmem>>, %arg3: memref<256x640xf32, #tpu.memory_space<vmem>>, %arg4: memref<1x512xf32, #tpu.memory_space<vmem>>, %arg5: memref<1x128xf32, #tpu.memory_space<vmem>>, %arg6: memref<128x128xf32, #tpu.memory_space<vmem>>, %arg7: memref<1x128xf32, #tpu.memory_space<vmem>>, %arg8: memref<1x128xf32, #tpu.memory_space<vmem>>, %arg9: memref<56x128xf32, #tpu.memory_space<vmem>>, %arg10: memref<56x128xf32, #tpu.memory_space<vmem>>, %arg11: memref<16x256xf32, #tpu.memory_space<vmem>>) attributes {dimension_semantics = [#tpu.dimension_semantics<arbitrary>], iteration_bounds = array<i64: 1>, scalar_prefetch = 1 : i64, scratch_operands = 3 : i64, tpu.core_type = #tpu.core_type<tc>, window_params = [{pipeline_mode = #tpu.pipeline_mode<synchronous>, transform_indices = @transform_0, window_bounds = array<i64: 8, 128>}, {pipeline_mode = #tpu.pipeline_mode<synchronous>, transform_indices = @transform_1, window_bounds = array<i64: 256, 640>}, {pipeline_mode = #tpu.pipeline_mode<synchronous>, transform_indices = @transform_2, window_bounds = array<i64: 1, 512>}, {pipeline_mode = #tpu.pipeline_mode<synchronous>, transform_indices = @transform_3, window_bounds = array<i64: 1, 128>}, {pipeline_mode = #tpu.pipeline_mode<synchronous>, transform_indices = @transform_4, window_bounds = array<i64: 128, 128>}, {pipeline_mode = #tpu.pipeline_mode<synchronous>, transform_indices = @transform_5, window_bounds = array<i64: 1, 128>}, {pipeline_mode = #tpu.pipeline_mode<synchronous>, transform_indices = @transform_6, window_bounds = array<i64: 1, 128>}]} {
    %cst = arith.constant 0.000000e+00 : f32
    %0 = vector.broadcast %cst : f32 to vector<56x128xf32>
    %c0 = arith.constant 0 : index
    %c0_0 = arith.constant 0 : index
    %1 = vector.load %arg9[%c0, %c0_0] : memref<56x128xf32, #tpu.memory_space<vmem>>, vector<56x128xf32>
    tpu.vector_store %arg9[%c0, %c0_0], %0 {strides = array<i32>} : memref<56x128xf32, #tpu.memory_space<vmem>>, vector<56x128xf32>,
    %cst_1 = arith.constant 0.000000e+00 : f32
    %2 = vector.broadcast %cst_1 : f32 to vector<56x128xf32>
    %c0_2 = arith.constant 0 : index
    %c0_3 = arith.constant 0 : index
    %3 = vector.load %arg10[%c0_2, %c0_3] : memref<56x128xf32, #tpu.memory_space<vmem>>, vector<56x128xf32>
    tpu.vector_store %arg10[%c0_2, %c0_3], %2 {strides = array<i32>} : memref<56x128xf32, #tpu.memory_space<vmem>>, vector<56x128xf32>,
    %cst_4 = arith.constant 0.000000e+00 : f32
    %4 = vector.broadcast %cst_4 : f32 to vector<16x256xf32>
    %c0_5 = arith.constant 0 : index
    %c0_6 = arith.constant 0 : index
    %5 = vector.load %arg11[%c0_5, %c0_6] : memref<16x256xf32, #tpu.memory_space<vmem>>, vector<16x256xf32>
    tpu.vector_store %arg11[%c0_5, %c0_6], %4 {strides = array<i32>} : memref<16x256xf32, #tpu.memory_space<vmem>>, vector<16x256xf32>,
    %c0_i32 = arith.constant 0 : i32
    %6 = arith.index_cast %c0_i32 : i32 to index
    %c0_7 = arith.constant 0 : index
    %7 = vector.load %arg2[%6, %c0_7] : memref<8x128xf32, #tpu.memory_space<vmem>>, vector<1x128xf32>
    %c8_i32 = arith.constant 8 : i32
    %8 = arith.muli %c0_i32, %c8_i32 : i32
    %9 = tpu.assume_multiple %8, 8 : i32
    %10 = arith.index_cast %9 : i32 to index
    %c0_8 = arith.constant 0 : index
    %11 = vector.load %arg10[%10, %c0_8] : memref<56x128xf32, #tpu.memory_space<vmem>>, vector<8x128xf32>
    %12 = arith.index_cast %9 : i32 to index
    %c0_9 = arith.constant 0 : index
    %13 = vector.load %arg9[%12, %c0_9] : memref<56x128xf32, #tpu.memory_space<vmem>>, vector<8x128xf32>
    %cst_10 = arith.constant dense<0.000000e+00> : vector<128xf32>
    %14 = vector.multi_reduction <add>, %11, %cst_10 [0] : vector<8x128xf32> to vector<128xf32>
    %15 = vector.shape_cast %14 : vector<128xf32> to vector<1x128xf32>
    %c0_11 = arith.constant 0 : index
    %c0_12 = arith.constant 0 : index
    %16 = vector.load %arg11[%c0_11, %c0_12] : memref<16x256xf32, #tpu.memory_space<vmem>>, vector<1x128xf32>
    tpu.vector_store %arg11[%c0_11, %c0_12], %7 {strides = array<i32>} : memref<16x256xf32, #tpu.memory_space<vmem>>, vector<1x128xf32>,
    %c0_13 = arith.constant 0 : index
    %c128 = arith.constant 128 : index
    %17 = vector.load %arg11[%c0_13, %c128] : memref<16x256xf32, #tpu.memory_space<vmem>>, vector<1x128xf32>
    tpu.vector_store %arg11[%c0_13, %c128], %15 {strides = array<i32>} : memref<16x256xf32, #tpu.memory_space<vmem>>, vector<1x128xf32>,
    %c8 = arith.constant 8 : index
    %c128_14 = arith.constant 128 : index
    %18 = vector.load %arg11[%c8, %c128_14] : memref<16x256xf32, #tpu.memory_space<vmem>>, vector<8x128xf32>
    tpu.vector_store %arg11[%c8, %c128_14], %11 {strides = array<i32>} : memref<16x256xf32, #tpu.memory_space<vmem>>, vector<8x128xf32>,
    %c0_15 = arith.constant 0 : index
    %c0_16 = arith.constant 0 : index
    %19 = vector.load %arg11[%c0_15, %c0_16] : memref<16x256xf32, #tpu.memory_space<vmem>>, vector<16x256xf32>
    %c0_17 = arith.constant 0 : index
    %c0_18 = arith.constant 0 : index
    %20 = vector.load %arg3[%c0_17, %c0_18] : memref<256x640xf32, #tpu.memory_space<vmem>>, vector<256x640xf32>
    %cst_19 = arith.constant dense<0.000000e+00> : vector<16x640xf32>
    %21 = tpu.matmul %19, %20, %cst_19 {dimension_numbers = #tpu.dot_dimension_numbers<[1], [0], [0], [1], [0, 0, 1, 1], [], []>} : vector<16x256xf32>, vector<256x640xf32>, vector<16x640xf32> -> vector<16x640xf32>
    %22 = vector.extract_strided_slice %21 {offsets = [0, 0], sizes = [1, 512], strides = [1, 1]} : vector<16x640xf32> to vector<1x512xf32>
    %c0_20 = arith.constant 0 : index
    %c0_21 = arith.constant 0 : index
    %23 = vector.load %arg4[%c0_20, %c0_21] : memref<1x512xf32, #tpu.memory_space<vmem>>, vector<1x512xf32>
    %24 = arith.addf %22, %23 : vector<1x512xf32>
    %25 = vector.extract_strided_slice %24 {offsets = [0, 0], sizes = [1, 128], strides = [1, 1]} : vector<1x512xf32> to vector<1x128xf32>
    %26 = arith.negf %25 : vector<1x128xf32>
    %27 = math.exp %26 : vector<1x128xf32>
    %cst_22 = arith.constant 1.000000e+00 : f32
    %28 = vector.broadcast %cst_22 : f32 to vector<1x128xf32>
    %29 = arith.addf %28, %27 : vector<1x128xf32>
    %30 = arith.divf %28, %29 : vector<1x128xf32>
    %31 = vector.extract_strided_slice %24 {offsets = [0, 128], sizes = [1, 128], strides = [1, 1]} : vector<1x512xf32> to vector<1x128xf32>
    %32 = arith.negf %31 : vector<1x128xf32>
    %33 = math.exp %32 : vector<1x128xf32>
    %cst_23 = arith.constant 1.000000e+00 : f32
    %34 = vector.broadcast %cst_23 : f32 to vector<1x128xf32>
    %35 = arith.addf %34, %33 : vector<1x128xf32>
    %36 = arith.divf %34, %35 : vector<1x128xf32>
    %37 = vector.extract_strided_slice %24 {offsets = [0, 256], sizes = [1, 128], strides = [1, 1]} : vector<1x512xf32> to vector<1x128xf32>
    %38 = math.tanh %37 : vector<1x128xf32>
    %39 = vector.extract_strided_slice %24 {offsets = [0, 384], sizes = [1, 128], strides = [1, 1]} : vector<1x512xf32> to vector<1x128xf32>
    %40 = vector.extract_strided_slice %21 {offsets = [8, 512], sizes = [8, 128], strides = [1, 1]} : vector<16x640xf32> to vector<8x128xf32>
    %c0_24 = arith.constant 0 : index
    %c0_25 = arith.constant 0 : index
    %41 = vector.load %arg5[%c0_24, %c0_25] : memref<1x128xf32, #tpu.memory_space<vmem>>, vector<1x128xf32>
    %42 = vector.broadcast %41 : vector<1x128xf32> to vector<8x128xf32>
    %43 = arith.addf %40, %42 : vector<8x128xf32>
    %44 = vector.broadcast %39 : vector<1x128xf32> to vector<8x128xf32>
    %45 = arith.addf %43, %44 : vector<8x128xf32>
    %46 = arith.negf %45 : vector<8x128xf32>
    %47 = math.exp %46 : vector<8x128xf32>
    %cst_26 = arith.constant 1.000000e+00 : f32
    %48 = vector.broadcast %cst_26 : f32 to vector<8x128xf32>
    %49 = arith.addf %48, %47 : vector<8x128xf32>
    %50 = arith.divf %48, %49 : vector<8x128xf32>
    %51 = arith.mulf %50, %13 : vector<8x128xf32>
    %52 = arith.mulf %30, %38 : vector<1x128xf32>
    %cst_27 = arith.constant dense<0.000000e+00> : vector<128xf32>
    %53 = vector.multi_reduction <add>, %51, %cst_27 [0] : vector<8x128xf32> to vector<128xf32>
    %54 = vector.shape_cast %53 : vector<128xf32> to vector<1x128xf32>
    %55 = arith.addf %52, %54 : vector<1x128xf32>
    %56 = math.tanh %55 : vector<1x128xf32>
    %57 = arith.mulf %36, %56 : vector<1x128xf32>
    %58 = arith.index_cast %c0_i32 : i32 to index
    %59 = memref.load %arg1[%58] : memref<6xi32, #tpu.memory_space<smem>>
    %60 = arith.index_cast %59 : i32 to index
    %c0_28 = arith.constant 0 : index
    %61 = vector.load %arg9[%60, %c0_28] : memref<56x128xf32, #tpu.memory_space<vmem>>, vector<1x128xf32>
    tpu.vector_store %arg9[%60, %c0_28], %55 {strides = array<i32>} : memref<56x128xf32, #tpu.memory_space<vmem>>, vector<1x128xf32>,
    %62 = arith.index_cast %59 : i32 to index
    %c0_29 = arith.constant 0 : index
    %63 = vector.load %arg10[%62, %c0_29] : memref<56x128xf32, #tpu.memory_space<vmem>>, vector<1x128xf32>
    tpu.vector_store %arg10[%62, %c0_29], %57 {strides = array<i32>} : memref<56x128xf32, #tpu.memory_space<vmem>>, vector<1x128xf32>,
    %c1_i32 = arith.constant 1 : i32
    %64 = arith.index_cast %c1_i32 : i32 to index
    %c0_30 = arith.constant 0 : index
    %65 = vector.load %arg2[%64, %c0_30] : memref<8x128xf32, #tpu.memory_space<vmem>>, vector<1x128xf32>
    %c8_i32_31 = arith.constant 8 : i32
    %66 = arith.muli %c1_i32, %c8_i32_31 : i32
    %67 = tpu.assume_multiple %66, 8 : i32
    %68 = arith.index_cast %67 : i32 to index
    %c0_32 = arith.constant 0 : index
    %69 = vector.load %arg10[%68, %c0_32] : memref<56x128xf32, #tpu.memory_space<vmem>>, vector<8x128xf32>
    %70 = arith.index_cast %67 : i32 to index
    %c0_33 = arith.constant 0 : index
    %71 = vector.load %arg9[%70, %c0_33] : memref<56x128xf32, #tpu.memory_space<vmem>>, vector<8x128xf32>
    %cst_34 = arith.constant dense<0.000000e+00> : vector<128xf32>
    %72 = vector.multi_reduction <add>, %69, %cst_34 [0] : vector<8x128xf32> to vector<128xf32>
    %73 = vector.shape_cast %72 : vector<128xf32> to vector<1x128xf32>
    %c0_35 = arith.constant 0 : index
    %c0_36 = arith.constant 0 : index
    %74 = vector.load %arg11[%c0_35, %c0_36] : memref<16x256xf32, #tpu.memory_space<vmem>>, vector<1x128xf32>
    tpu.vector_store %arg11[%c0_35, %c0_36], %65 {strides = array<i32>} : memref<16x256xf32, #tpu.memory_space<vmem>>, vector<1x128xf32>,
    %c0_37 = arith.constant 0 : index
    %c128_38 = arith.constant 128 : index
    %75 = vector.load %arg11[%c0_37, %c128_38] : memref<16x256xf32, #tpu.memory_space<vmem>>, vector<1x128xf32>
    tpu.vector_store %arg11[%c0_37, %c128_38], %73 {strides = array<i32>} : memref<16x256xf32, #tpu.memory_space<vmem>>, vector<1x128xf32>,
    %c8_39 = arith.constant 8 : index
    %c128_40 = arith.constant 128 : index
    %76 = vector.load %arg11[%c8_39, %c128_40] : memref<16x256xf32, #tpu.memory_space<vmem>>, vector<8x128xf32>
    tpu.vector_store %arg11[%c8_39, %c128_40], %69 {strides = array<i32>} : memref<16x256xf32, #tpu.memory_space<vmem>>, vector<8x128xf32>,
    %c0_41 = arith.constant 0 : index
    %c0_42 = arith.constant 0 : index
    %77 = vector.load %arg11[%c0_41, %c0_42] : memref<16x256xf32, #tpu.memory_space<vmem>>, vector<16x256xf32>
    %c0_43 = arith.constant 0 : index
    %c0_44 = arith.constant 0 : index
    %78 = vector.load %arg3[%c0_43, %c0_44] : memref<256x640xf32, #tpu.memory_space<vmem>>, vector<256x640xf32>
    %cst_45 = arith.constant dense<0.000000e+00> : vector<16x640xf32>
    %79 = tpu.matmul %77, %78, %cst_45 {dimension_numbers = #tpu.dot_dimension_numbers<[1], [0], [0], [1], [0, 0, 1, 1], [], []>} : vector<16x256xf32>, vector<256x640xf32>, vector<16x640xf32> -> vector<16x640xf32>
    %80 = vector.extract_strided_slice %79 {offsets = [0, 0], sizes = [1, 512], strides = [1, 1]} : vector<16x640xf32> to vector<1x512xf32>
    %c0_46 = arith.constant 0 : index
    %c0_47 = arith.constant 0 : index
    %81 = vector.load %arg4[%c0_46, %c0_47] : memref<1x512xf32, #tpu.memory_space<vmem>>, vector<1x512xf32>
    %82 = arith.addf %80, %81 : vector<1x512xf32>
    %83 = vector.extract_strided_slice %82 {offsets = [0, 0], sizes = [1, 128], strides = [1, 1]} : vector<1x512xf32> to vector<1x128xf32>
    %84 = arith.negf %83 : vector<1x128xf32>
    %85 = math.exp %84 : vector<1x128xf32>
    %cst_48 = arith.constant 1.000000e+00 : f32
    %86 = vector.broadcast %cst_48 : f32 to vector<1x128xf32>
    %87 = arith.addf %86, %85 : vector<1x128xf32>
    %88 = arith.divf %86, %87 : vector<1x128xf32>
    %89 = vector.extract_strided_slice %82 {offsets = [0, 128], sizes = [1, 128], strides = [1, 1]} : vector<1x512xf32> to vector<1x128xf32>
    %90 = arith.negf %89 : vector<1x128xf32>
    %91 = math.exp %90 : vector<1x128xf32>
    %cst_49 = arith.constant 1.000000e+00 : f32
    %92 = vector.broadcast %cst_49 : f32 to vector<1x128xf32>
    %93 = arith.addf %92, %91 : vector<1x128xf32>
    %94 = arith.divf %92, %93 : vector<1x128xf32>
    %95 = vector.extract_strided_slice %82 {offsets = [0, 256], sizes = [1, 128], strides = [1, 1]} : vector<1x512xf32> to vector<1x128xf32>
    %96 = math.tanh %95 : vector<1x128xf32>
    %97 = vector.extract_strided_slice %82 {offsets = [0, 384], sizes = [1, 128], strides = [1, 1]} : vector<1x512xf32> to vector<1x128xf32>
    %98 = vector.extract_strided_slice %79 {offsets = [8, 512], sizes = [8, 128], strides = [1, 1]} : vector<16x640xf32> to vector<8x128xf32>
    %c0_50 = arith.constant 0 : index
    %c0_51 = arith.constant 0 : index
    %99 = vector.load %arg5[%c0_50, %c0_51] : memref<1x128xf32, #tpu.memory_space<vmem>>, vector<1x128xf32>
    %100 = vector.broadcast %99 : vector<1x128xf32> to vector<8x128xf32>
    %101 = arith.addf %98, %100 : vector<8x128xf32>
    %102 = vector.broadcast %97 : vector<1x128xf32> to vector<8x128xf32>
    %103 = arith.addf %101, %102 : vector<8x128xf32>
    %104 = arith.negf %103 : vector<8x128xf32>
    %105 = math.exp %104 : vector<8x128xf32>
    %cst_52 = arith.constant 1.000000e+00 : f32
    %106 = vector.broadcast %cst_52 : f32 to vector<8x128xf32>
    %107 = arith.addf %106, %105 : vector<8x128xf32>
    %108 = arith.divf %106, %107 : vector<8x128xf32>
    %109 = arith.mulf %108, %71 : vector<8x128xf32>
    %110 = arith.mulf %88, %96 : vector<1x128xf32>
    %cst_53 = arith.constant dense<0.000000e+00> : vector<128xf32>
    %111 = vector.multi_reduction <add>, %109, %cst_53 [0] : vector<8x128xf32> to vector<128xf32>
    %112 = vector.shape_cast %111 : vector<128xf32> to vector<1x128xf32>
    %113 = arith.addf %110, %112 : vector<1x128xf32>
    %114 = math.tanh %113 : vector<1x128xf32>
    %115 = arith.mulf %94, %114 : vector<1x128xf32>
    %116 = arith.index_cast %c1_i32 : i32 to index
    %117 = memref.load %arg1[%116] : memref<6xi32, #tpu.memory_space<smem>>
    %118 = arith.index_cast %117 : i32 to index
    %c0_54 = arith.constant 0 : index
    %119 = vector.load %arg9[%118, %c0_54] : memref<56x128xf32, #tpu.memory_space<vmem>>, vector<1x128xf32>
    tpu.vector_store %arg9[%118, %c0_54], %113 {strides = array<i32>} : memref<56x128xf32, #tpu.memory_space<vmem>>, vector<1x128xf32>,
    %120 = arith.index_cast %117 : i32 to index
    %c0_55 = arith.constant 0 : index
    %121 = vector.load %arg10[%120, %c0_55] : memref<56x128xf32, #tpu.memory_space<vmem>>, vector<1x128xf32>
    tpu.vector_store %arg10[%120, %c0_55], %115 {strides = array<i32>} : memref<56x128xf32, #tpu.memory_space<vmem>>, vector<1x128xf32>,
    %c2_i32 = arith.constant 2 : i32
    %122 = arith.index_cast %c2_i32 : i32 to index
    %c0_56 = arith.constant 0 : index
    %123 = vector.load %arg2[%122, %c0_56] : memref<8x128xf32, #tpu.memory_space<vmem>>, vector<1x128xf32>
    %c8_i32_57 = arith.constant 8 : i32
    %124 = arith.muli %c2_i32, %c8_i32_57 : i32
    %125 = tpu.assume_multiple %124, 8 : i32
    %126 = arith.index_cast %125 : i32 to index
    %c0_58 = arith.constant 0 : index
    %127 = vector.load %arg10[%126, %c0_58] : memref<56x128xf32, #tpu.memory_space<vmem>>, vector<8x128xf32>
    %128 = arith.index_cast %125 : i32 to index
    %c0_59 = arith.constant 0 : index
    %129 = vector.load %arg9[%128, %c0_59] : memref<56x128xf32, #tpu.memory_space<vmem>>, vector<8x128xf32>
    %cst_60 = arith.constant dense<0.000000e+00> : vector<128xf32>
    %130 = vector.multi_reduction <add>, %127, %cst_60 [0] : vector<8x128xf32> to vector<128xf32>
    %131 = vector.shape_cast %130 : vector<128xf32> to vector<1x128xf32>
    %c0_61 = arith.constant 0 : index
    %c0_62 = arith.constant 0 : index
    %132 = vector.load %arg11[%c0_61, %c0_62] : memref<16x256xf32, #tpu.memory_space<vmem>>, vector<1x128xf32>
    tpu.vector_store %arg11[%c0_61, %c0_62], %123 {strides = array<i32>} : memref<16x256xf32, #tpu.memory_space<vmem>>, vector<1x128xf32>,
    %c0_63 = arith.constant 0 : index
    %c128_64 = arith.constant 128 : index
    %133 = vector.load %arg11[%c0_63, %c128_64] : memref<16x256xf32, #tpu.memory_space<vmem>>, vector<1x128xf32>
    tpu.vector_store %arg11[%c0_63, %c128_64], %131 {strides = array<i32>} : memref<16x256xf32, #tpu.memory_space<vmem>>, vector<1x128xf32>,
    %c8_65 = arith.constant 8 : index
    %c128_66 = arith.constant 128 : index
    %134 = vector.load %arg11[%c8_65, %c128_66] : memref<16x256xf32, #tpu.memory_space<vmem>>, vector<8x128xf32>
    tpu.vector_store %arg11[%c8_65, %c128_66], %127 {strides = array<i32>} : memref<16x256xf32, #tpu.memory_space<vmem>>, vector<8x128xf32>,
    %c0_67 = arith.constant 0 : index
    %c0_68 = arith.constant 0 : index
    %135 = vector.load %arg11[%c0_67, %c0_68] : memref<16x256xf32, #tpu.memory_space<vmem>>, vector<16x256xf32>
    %c0_69 = arith.constant 0 : index
    %c0_70 = arith.constant 0 : index
    %136 = vector.load %arg3[%c0_69, %c0_70] : memref<256x640xf32, #tpu.memory_space<vmem>>, vector<256x640xf32>
    %cst_71 = arith.constant dense<0.000000e+00> : vector<16x640xf32>
    %137 = tpu.matmul %135, %136, %cst_71 {dimension_numbers = #tpu.dot_dimension_numbers<[1], [0], [0], [1], [0, 0, 1, 1], [], []>} : vector<16x256xf32>, vector<256x640xf32>, vector<16x640xf32> -> vector<16x640xf32>
    %138 = vector.extract_strided_slice %137 {offsets = [0, 0], sizes = [1, 512], strides = [1, 1]} : vector<16x640xf32> to vector<1x512xf32>
    %c0_72 = arith.constant 0 : index
    %c0_73 = arith.constant 0 : index
    %139 = vector.load %arg4[%c0_72, %c0_73] : memref<1x512xf32, #tpu.memory_space<vmem>>, vector<1x512xf32>
    %140 = arith.addf %138, %139 : vector<1x512xf32>
    %141 = vector.extract_strided_slice %140 {offsets = [0, 0], sizes = [1, 128], strides = [1, 1]} : vector<1x512xf32> to vector<1x128xf32>
    %142 = arith.negf %141 : vector<1x128xf32>
    %143 = math.exp %142 : vector<1x128xf32>
    %cst_74 = arith.constant 1.000000e+00 : f32
    %144 = vector.broadcast %cst_74 : f32 to vector<1x128xf32>
    %145 = arith.addf %144, %143 : vector<1x128xf32>
    %146 = arith.divf %144, %145 : vector<1x128xf32>
    %147 = vector.extract_strided_slice %140 {offsets = [0, 128], sizes = [1, 128], strides = [1, 1]} : vector<1x512xf32> to vector<1x128xf32>
    %148 = arith.negf %147 : vector<1x128xf32>
    %149 = math.exp %148 : vector<1x128xf32>
    %cst_75 = arith.constant 1.000000e+00 : f32
    %150 = vector.broadcast %cst_75 : f32 to vector<1x128xf32>
    %151 = arith.addf %150, %149 : vector<1x128xf32>
    %152 = arith.divf %150, %151 : vector<1x128xf32>
    %153 = vector.extract_strided_slice %140 {offsets = [0, 256], sizes = [1, 128], strides = [1, 1]} : vector<1x512xf32> to vector<1x128xf32>
    %154 = math.tanh %153 : vector<1x128xf32>
    %155 = vector.extract_strided_slice %140 {offsets = [0, 384], sizes = [1, 128], strides = [1, 1]} : vector<1x512xf32> to vector<1x128xf32>
    %156 = vector.extract_strided_slice %137 {offsets = [8, 512], sizes = [8, 128], strides = [1, 1]} : vector<16x640xf32> to vector<8x128xf32>
    %c0_76 = arith.constant 0 : index
    %c0_77 = arith.constant 0 : index
    %157 = vector.load %arg5[%c0_76, %c0_77] : memref<1x128xf32, #tpu.memory_space<vmem>>, vector<1x128xf32>
    %158 = vector.broadcast %157 : vector<1x128xf32> to vector<8x128xf32>
    %159 = arith.addf %156, %158 : vector<8x128xf32>
    %160 = vector.broadcast %155 : vector<1x128xf32> to vector<8x128xf32>
    %161 = arith.addf %159, %160 : vector<8x128xf32>
    %162 = arith.negf %161 : vector<8x128xf32>
    %163 = math.exp %162 : vector<8x128xf32>
    %cst_78 = arith.constant 1.000000e+00 : f32
    %164 = vector.broadcast %cst_78 : f32 to vector<8x128xf32>
    %165 = arith.addf %164, %163 : vector<8x128xf32>
    %166 = arith.divf %164, %165 : vector<8x128xf32>
    %167 = arith.mulf %166, %129 : vector<8x128xf32>
    %168 = arith.mulf %146, %154 : vector<1x128xf32>
    %cst_79 = arith.constant dense<0.000000e+00> : vector<128xf32>
    %169 = vector.multi_reduction <add>, %167, %cst_79 [0] : vector<8x128xf32> to vector<128xf32>
    %170 = vector.shape_cast %169 : vector<128xf32> to vector<1x128xf32>
    %171 = arith.addf %168, %170 : vector<1x128xf32>
    %172 = math.tanh %171 : vector<1x128xf32>
    %173 = arith.mulf %152, %172 : vector<1x128xf32>
    %174 = arith.index_cast %c2_i32 : i32 to index
    %175 = memref.load %arg1[%174] : memref<6xi32, #tpu.memory_space<smem>>
    %176 = arith.index_cast %175 : i32 to index
    %c0_80 = arith.constant 0 : index
    %177 = vector.load %arg9[%176, %c0_80] : memref<56x128xf32, #tpu.memory_space<vmem>>, vector<1x128xf32>
    tpu.vector_store %arg9[%176, %c0_80], %171 {strides = array<i32>} : memref<56x128xf32, #tpu.memory_space<vmem>>, vector<1x128xf32>,
    %178 = arith.index_cast %175 : i32 to index
    %c0_81 = arith.constant 0 : index
    %179 = vector.load %arg10[%178, %c0_81] : memref<56x128xf32, #tpu.memory_space<vmem>>, vector<1x128xf32>
    tpu.vector_store %arg10[%178, %c0_81], %173 {strides = array<i32>} : memref<56x128xf32, #tpu.memory_space<vmem>>, vector<1x128xf32>,
    %c3_i32 = arith.constant 3 : i32
    %180 = arith.index_cast %c3_i32 : i32 to index
    %c0_82 = arith.constant 0 : index
    %181 = vector.load %arg2[%180, %c0_82] : memref<8x128xf32, #tpu.memory_space<vmem>>, vector<1x128xf32>
    %c8_i32_83 = arith.constant 8 : i32
    %182 = arith.muli %c3_i32, %c8_i32_83 : i32
    %183 = tpu.assume_multiple %182, 8 : i32
    %184 = arith.index_cast %183 : i32 to index
    %c0_84 = arith.constant 0 : index
    %185 = vector.load %arg10[%184, %c0_84] : memref<56x128xf32, #tpu.memory_space<vmem>>, vector<8x128xf32>
    %186 = arith.index_cast %183 : i32 to index
    %c0_85 = arith.constant 0 : index
    %187 = vector.load %arg9[%186, %c0_85] : memref<56x128xf32, #tpu.memory_space<vmem>>, vector<8x128xf32>
    %cst_86 = arith.constant dense<0.000000e+00> : vector<128xf32>
    %188 = vector.multi_reduction <add>, %185, %cst_86 [0] : vector<8x128xf32> to vector<128xf32>
    %189 = vector.shape_cast %188 : vector<128xf32> to vector<1x128xf32>
    %c0_87 = arith.constant 0 : index
    %c0_88 = arith.constant 0 : index
    %190 = vector.load %arg11[%c0_87, %c0_88] : memref<16x256xf32, #tpu.memory_space<vmem>>, vector<1x128xf32>
    tpu.vector_store %arg11[%c0_87, %c0_88], %181 {strides = array<i32>} : memref<16x256xf32, #tpu.memory_space<vmem>>, vector<1x128xf32>,
    %c0_89 = arith.constant 0 : index
    %c128_90 = arith.constant 128 : index
    %191 = vector.load %arg11[%c0_89, %c128_90] : memref<16x256xf32, #tpu.memory_space<vmem>>, vector<1x128xf32>
    tpu.vector_store %arg11[%c0_89, %c128_90], %189 {strides = array<i32>} : memref<16x256xf32, #tpu.memory_space<vmem>>, vector<1x128xf32>,
    %c8_91 = arith.constant 8 : index
    %c128_92 = arith.constant 128 : index
    %192 = vector.load %arg11[%c8_91, %c128_92] : memref<16x256xf32, #tpu.memory_space<vmem>>, vector<8x128xf32>
    tpu.vector_store %arg11[%c8_91, %c128_92], %185 {strides = array<i32>} : memref<16x256xf32, #tpu.memory_space<vmem>>, vector<8x128xf32>,
    %c0_93 = arith.constant 0 : index
    %c0_94 = arith.constant 0 : index
    %193 = vector.load %arg11[%c0_93, %c0_94] : memref<16x256xf32, #tpu.memory_space<vmem>>, vector<16x256xf32>
    %c0_95 = arith.constant 0 : index
    %c0_96 = arith.constant 0 : index
    %194 = vector.load %arg3[%c0_95, %c0_96] : memref<256x640xf32, #tpu.memory_space<vmem>>, vector<256x640xf32>
    %cst_97 = arith.constant dense<0.000000e+00> : vector<16x640xf32>
    %195 = tpu.matmul %193, %194, %cst_97 {dimension_numbers = #tpu.dot_dimension_numbers<[1], [0], [0], [1], [0, 0, 1, 1], [], []>} : vector<16x256xf32>, vector<256x640xf32>, vector<16x640xf32> -> vector<16x640xf32>
    %196 = vector.extract_strided_slice %195 {offsets = [0, 0], sizes = [1, 512], strides = [1, 1]} : vector<16x640xf32> to vector<1x512xf32>
    %c0_98 = arith.constant 0 : index
    %c0_99 = arith.constant 0 : index
    %197 = vector.load %arg4[%c0_98, %c0_99] : memref<1x512xf32, #tpu.memory_space<vmem>>, vector<1x512xf32>
    %198 = arith.addf %196, %197 : vector<1x512xf32>
    %199 = vector.extract_strided_slice %198 {offsets = [0, 0], sizes = [1, 128], strides = [1, 1]} : vector<1x512xf32> to vector<1x128xf32>
    %200 = arith.negf %199 : vector<1x128xf32>
    %201 = math.exp %200 : vector<1x128xf32>
    %cst_100 = arith.constant 1.000000e+00 : f32
    %202 = vector.broadcast %cst_100 : f32 to vector<1x128xf32>
    %203 = arith.addf %202, %201 : vector<1x128xf32>
    %204 = arith.divf %202, %203 : vector<1x128xf32>
    %205 = vector.extract_strided_slice %198 {offsets = [0, 128], sizes = [1, 128], strides = [1, 1]} : vector<1x512xf32> to vector<1x128xf32>
    %206 = arith.negf %205 : vector<1x128xf32>
    %207 = math.exp %206 : vector<1x128xf32>
    %cst_101 = arith.constant 1.000000e+00 : f32
    %208 = vector.broadcast %cst_101 : f32 to vector<1x128xf32>
    %209 = arith.addf %208, %207 : vector<1x128xf32>
    %210 = arith.divf %208, %209 : vector<1x128xf32>
    %211 = vector.extract_strided_slice %198 {offsets = [0, 256], sizes = [1, 128], strides = [1, 1]} : vector<1x512xf32> to vector<1x128xf32>
    %212 = math.tanh %211 : vector<1x128xf32>
    %213 = vector.extract_strided_slice %198 {offsets = [0, 384], sizes = [1, 128], strides = [1, 1]} : vector<1x512xf32> to vector<1x128xf32>
    %214 = vector.extract_strided_slice %195 {offsets = [8, 512], sizes = [8, 128], strides = [1, 1]} : vector<16x640xf32> to vector<8x128xf32>
    %c0_102 = arith.constant 0 : index
    %c0_103 = arith.constant 0 : index
    %215 = vector.load %arg5[%c0_102, %c0_103] : memref<1x128xf32, #tpu.memory_space<vmem>>, vector<1x128xf32>
    %216 = vector.broadcast %215 : vector<1x128xf32> to vector<8x128xf32>
    %217 = arith.addf %214, %216 : vector<8x128xf32>
    %218 = vector.broadcast %213 : vector<1x128xf32> to vector<8x128xf32>
    %219 = arith.addf %217, %218 : vector<8x128xf32>
    %220 = arith.negf %219 : vector<8x128xf32>
    %221 = math.exp %220 : vector<8x128xf32>
    %cst_104 = arith.constant 1.000000e+00 : f32
    %222 = vector.broadcast %cst_104 : f32 to vector<8x128xf32>
    %223 = arith.addf %222, %221 : vector<8x128xf32>
    %224 = arith.divf %222, %223 : vector<8x128xf32>
    %225 = arith.mulf %224, %187 : vector<8x128xf32>
    %226 = arith.mulf %204, %212 : vector<1x128xf32>
    %cst_105 = arith.constant dense<0.000000e+00> : vector<128xf32>
    %227 = vector.multi_reduction <add>, %225, %cst_105 [0] : vector<8x128xf32> to vector<128xf32>
    %228 = vector.shape_cast %227 : vector<128xf32> to vector<1x128xf32>
    %229 = arith.addf %226, %228 : vector<1x128xf32>
    %230 = math.tanh %229 : vector<1x128xf32>
    %231 = arith.mulf %210, %230 : vector<1x128xf32>
    %232 = arith.index_cast %c3_i32 : i32 to index
    %233 = memref.load %arg1[%232] : memref<6xi32, #tpu.memory_space<smem>>
    %234 = arith.index_cast %233 : i32 to index
    %c0_106 = arith.constant 0 : index
    %235 = vector.load %arg9[%234, %c0_106] : memref<56x128xf32, #tpu.memory_space<vmem>>, vector<1x128xf32>
    tpu.vector_store %arg9[%234, %c0_106], %229 {strides = array<i32>} : memref<56x128xf32, #tpu.memory_space<vmem>>, vector<1x128xf32>,
    %236 = arith.index_cast %233 : i32 to index
    %c0_107 = arith.constant 0 : index
    %237 = vector.load %arg10[%236, %c0_107] : memref<56x128xf32, #tpu.memory_space<vmem>>, vector<1x128xf32>
    tpu.vector_store %arg10[%236, %c0_107], %231 {strides = array<i32>} : memref<56x128xf32, #tpu.memory_space<vmem>>, vector<1x128xf32>,
    %c4_i32 = arith.constant 4 : i32
    %238 = arith.index_cast %c4_i32 : i32 to index
    %c0_108 = arith.constant 0 : index
    %239 = vector.load %arg2[%238, %c0_108] : memref<8x128xf32, #tpu.memory_space<vmem>>, vector<1x128xf32>
    %c8_i32_109 = arith.constant 8 : i32
    %240 = arith.muli %c4_i32, %c8_i32_109 : i32
    %241 = tpu.assume_multiple %240, 8 : i32
    %242 = arith.index_cast %241 : i32 to index
    %c0_110 = arith.constant 0 : index
    %243 = vector.load %arg10[%242, %c0_110] : memref<56x128xf32, #tpu.memory_space<vmem>>, vector<8x128xf32>
    %244 = arith.index_cast %241 : i32 to index
    %c0_111 = arith.constant 0 : index
    %245 = vector.load %arg9[%244, %c0_111] : memref<56x128xf32, #tpu.memory_space<vmem>>, vector<8x128xf32>
    %cst_112 = arith.constant dense<0.000000e+00> : vector<128xf32>
    %246 = vector.multi_reduction <add>, %243, %cst_112 [0] : vector<8x128xf32> to vector<128xf32>
    %247 = vector.shape_cast %246 : vector<128xf32> to vector<1x128xf32>
    %c0_113 = arith.constant 0 : index
    %c0_114 = arith.constant 0 : index
    %248 = vector.load %arg11[%c0_113, %c0_114] : memref<16x256xf32, #tpu.memory_space<vmem>>, vector<1x128xf32>
    tpu.vector_store %arg11[%c0_113, %c0_114], %239 {strides = array<i32>} : memref<16x256xf32, #tpu.memory_space<vmem>>, vector<1x128xf32>,
    %c0_115 = arith.constant 0 : index
    %c128_116 = arith.constant 128 : index
    %249 = vector.load %arg11[%c0_115, %c128_116] : memref<16x256xf32, #tpu.memory_space<vmem>>, vector<1x128xf32>
    tpu.vector_store %arg11[%c0_115, %c128_116], %247 {strides = array<i32>} : memref<16x256xf32, #tpu.memory_space<vmem>>, vector<1x128xf32>,
    %c8_117 = arith.constant 8 : index
    %c128_118 = arith.constant 128 : index
    %250 = vector.load %arg11[%c8_117, %c128_118] : memref<16x256xf32, #tpu.memory_space<vmem>>, vector<8x128xf32>
    tpu.vector_store %arg11[%c8_117, %c128_118], %243 {strides = array<i32>} : memref<16x256xf32, #tpu.memory_space<vmem>>, vector<8x128xf32>,
    %c0_119 = arith.constant 0 : index
    %c0_120 = arith.constant 0 : index
    %251 = vector.load %arg11[%c0_119, %c0_120] : memref<16x256xf32, #tpu.memory_space<vmem>>, vector<16x256xf32>
    %c0_121 = arith.constant 0 : index
    %c0_122 = arith.constant 0 : index
    %252 = vector.load %arg3[%c0_121, %c0_122] : memref<256x640xf32, #tpu.memory_space<vmem>>, vector<256x640xf32>
    %cst_123 = arith.constant dense<0.000000e+00> : vector<16x640xf32>
    %253 = tpu.matmul %251, %252, %cst_123 {dimension_numbers = #tpu.dot_dimension_numbers<[1], [0], [0], [1], [0, 0, 1, 1], [], []>} : vector<16x256xf32>, vector<256x640xf32>, vector<16x640xf32> -> vector<16x640xf32>
    %254 = vector.extract_strided_slice %253 {offsets = [0, 0], sizes = [1, 512], strides = [1, 1]} : vector<16x640xf32> to vector<1x512xf32>
    %c0_124 = arith.constant 0 : index
    %c0_125 = arith.constant 0 : index
    %255 = vector.load %arg4[%c0_124, %c0_125] : memref<1x512xf32, #tpu.memory_space<vmem>>, vector<1x512xf32>
    %256 = arith.addf %254, %255 : vector<1x512xf32>
    %257 = vector.extract_strided_slice %256 {offsets = [0, 0], sizes = [1, 128], strides = [1, 1]} : vector<1x512xf32> to vector<1x128xf32>
    %258 = arith.negf %257 : vector<1x128xf32>
    %259 = math.exp %258 : vector<1x128xf32>
    %cst_126 = arith.constant 1.000000e+00 : f32
    %260 = vector.broadcast %cst_126 : f32 to vector<1x128xf32>
    %261 = arith.addf %260, %259 : vector<1x128xf32>
    %262 = arith.divf %260, %261 : vector<1x128xf32>
    %263 = vector.extract_strided_slice %256 {offsets = [0, 128], sizes = [1, 128], strides = [1, 1]} : vector<1x512xf32> to vector<1x128xf32>
    %264 = arith.negf %263 : vector<1x128xf32>
    %265 = math.exp %264 : vector<1x128xf32>
    %cst_127 = arith.constant 1.000000e+00 : f32
    %266 = vector.broadcast %cst_127 : f32 to vector<1x128xf32>
    %267 = arith.addf %266, %265 : vector<1x128xf32>
    %268 = arith.divf %266, %267 : vector<1x128xf32>
    %269 = vector.extract_strided_slice %256 {offsets = [0, 256], sizes = [1, 128], strides = [1, 1]} : vector<1x512xf32> to vector<1x128xf32>
    %270 = math.tanh %269 : vector<1x128xf32>
    %271 = vector.extract_strided_slice %256 {offsets = [0, 384], sizes = [1, 128], strides = [1, 1]} : vector<1x512xf32> to vector<1x128xf32>
    %272 = vector.extract_strided_slice %253 {offsets = [8, 512], sizes = [8, 128], strides = [1, 1]} : vector<16x640xf32> to vector<8x128xf32>
    %c0_128 = arith.constant 0 : index
    %c0_129 = arith.constant 0 : index
    %273 = vector.load %arg5[%c0_128, %c0_129] : memref<1x128xf32, #tpu.memory_space<vmem>>, vector<1x128xf32>
    %274 = vector.broadcast %273 : vector<1x128xf32> to vector<8x128xf32>
    %275 = arith.addf %272, %274 : vector<8x128xf32>
    %276 = vector.broadcast %271 : vector<1x128xf32> to vector<8x128xf32>
    %277 = arith.addf %275, %276 : vector<8x128xf32>
    %278 = arith.negf %277 : vector<8x128xf32>
    %279 = math.exp %278 : vector<8x128xf32>
    %cst_130 = arith.constant 1.000000e+00 : f32
    %280 = vector.broadcast %cst_130 : f32 to vector<8x128xf32>
    %281 = arith.addf %280, %279 : vector<8x128xf32>
    %282 = arith.divf %280, %281 : vector<8x128xf32>
    %283 = arith.mulf %282, %245 : vector<8x128xf32>
    %284 = arith.mulf %262, %270 : vector<1x128xf32>
    %cst_131 = arith.constant dense<0.000000e+00> : vector<128xf32>
    %285 = vector.multi_reduction <add>, %283, %cst_131 [0] : vector<8x128xf32> to vector<128xf32>
    %286 = vector.shape_cast %285 : vector<128xf32> to vector<1x128xf32>
    %287 = arith.addf %284, %286 : vector<1x128xf32>
    %288 = math.tanh %287 : vector<1x128xf32>
    %289 = arith.mulf %268, %288 : vector<1x128xf32>
    %290 = arith.index_cast %c4_i32 : i32 to index
    %291 = memref.load %arg1[%290] : memref<6xi32, #tpu.memory_space<smem>>
    %292 = arith.index_cast %291 : i32 to index
    %c0_132 = arith.constant 0 : index
    %293 = vector.load %arg9[%292, %c0_132] : memref<56x128xf32, #tpu.memory_space<vmem>>, vector<1x128xf32>
    tpu.vector_store %arg9[%292, %c0_132], %287 {strides = array<i32>} : memref<56x128xf32, #tpu.memory_space<vmem>>, vector<1x128xf32>,
    %294 = arith.index_cast %291 : i32 to index
    %c0_133 = arith.constant 0 : index
    %295 = vector.load %arg10[%294, %c0_133] : memref<56x128xf32, #tpu.memory_space<vmem>>, vector<1x128xf32>
    tpu.vector_store %arg10[%294, %c0_133], %289 {strides = array<i32>} : memref<56x128xf32, #tpu.memory_space<vmem>>, vector<1x128xf32>,
    %c5_i32 = arith.constant 5 : i32
    %296 = arith.index_cast %c5_i32 : i32 to index
    %c0_134 = arith.constant 0 : index
    %297 = vector.load %arg2[%296, %c0_134] : memref<8x128xf32, #tpu.memory_space<vmem>>, vector<1x128xf32>
    %c8_i32_135 = arith.constant 8 : i32
    %298 = arith.muli %c5_i32, %c8_i32_135 : i32
    %299 = tpu.assume_multiple %298, 8 : i32
    %300 = arith.index_cast %299 : i32 to index
    %c0_136 = arith.constant 0 : index
    %301 = vector.load %arg10[%300, %c0_136] : memref<56x128xf32, #tpu.memory_space<vmem>>, vector<8x128xf32>
    %302 = arith.index_cast %299 : i32 to index
    %c0_137 = arith.constant 0 : index
    %303 = vector.load %arg9[%302, %c0_137] : memref<56x128xf32, #tpu.memory_space<vmem>>, vector<8x128xf32>
    %cst_138 = arith.constant dense<0.000000e+00> : vector<128xf32>
    %304 = vector.multi_reduction <add>, %301, %cst_138 [0] : vector<8x128xf32> to vector<128xf32>
    %305 = vector.shape_cast %304 : vector<128xf32> to vector<1x128xf32>
    %c0_139 = arith.constant 0 : index
    %c0_140 = arith.constant 0 : index
    %306 = vector.load %arg11[%c0_139, %c0_140] : memref<16x256xf32, #tpu.memory_space<vmem>>, vector<1x128xf32>
    tpu.vector_store %arg11[%c0_139, %c0_140], %297 {strides = array<i32>} : memref<16x256xf32, #tpu.memory_space<vmem>>, vector<1x128xf32>,
    %c0_141 = arith.constant 0 : index
    %c128_142 = arith.constant 128 : index
    %307 = vector.load %arg11[%c0_141, %c128_142] : memref<16x256xf32, #tpu.memory_space<vmem>>, vector<1x128xf32>
    tpu.vector_store %arg11[%c0_141, %c128_142], %305 {strides = array<i32>} : memref<16x256xf32, #tpu.memory_space<vmem>>, vector<1x128xf32>,
    %c8_143 = arith.constant 8 : index
    %c128_144 = arith.constant 128 : index
    %308 = vector.load %arg11[%c8_143, %c128_144] : memref<16x256xf32, #tpu.memory_space<vmem>>, vector<8x128xf32>
    tpu.vector_store %arg11[%c8_143, %c128_144], %301 {strides = array<i32>} : memref<16x256xf32, #tpu.memory_space<vmem>>, vector<8x128xf32>,
    %c0_145 = arith.constant 0 : index
    %c0_146 = arith.constant 0 : index
    %309 = vector.load %arg11[%c0_145, %c0_146] : memref<16x256xf32, #tpu.memory_space<vmem>>, vector<16x256xf32>
    %c0_147 = arith.constant 0 : index
    %c0_148 = arith.constant 0 : index
    %310 = vector.load %arg3[%c0_147, %c0_148] : memref<256x640xf32, #tpu.memory_space<vmem>>, vector<256x640xf32>
    %cst_149 = arith.constant dense<0.000000e+00> : vector<16x640xf32>
    %311 = tpu.matmul %309, %310, %cst_149 {dimension_numbers = #tpu.dot_dimension_numbers<[1], [0], [0], [1], [0, 0, 1, 1], [], []>} : vector<16x256xf32>, vector<256x640xf32>, vector<16x640xf32> -> vector<16x640xf32>
    %312 = vector.extract_strided_slice %311 {offsets = [0, 0], sizes = [1, 512], strides = [1, 1]} : vector<16x640xf32> to vector<1x512xf32>
    %c0_150 = arith.constant 0 : index
    %c0_151 = arith.constant 0 : index
    %313 = vector.load %arg4[%c0_150, %c0_151] : memref<1x512xf32, #tpu.memory_space<vmem>>, vector<1x512xf32>
    %314 = arith.addf %312, %313 : vector<1x512xf32>
    %315 = vector.extract_strided_slice %314 {offsets = [0, 0], sizes = [1, 128], strides = [1, 1]} : vector<1x512xf32> to vector<1x128xf32>
    %316 = arith.negf %315 : vector<1x128xf32>
    %317 = math.exp %316 : vector<1x128xf32>
    %cst_152 = arith.constant 1.000000e+00 : f32
    %318 = vector.broadcast %cst_152 : f32 to vector<1x128xf32>
    %319 = arith.addf %318, %317 : vector<1x128xf32>
    %320 = arith.divf %318, %319 : vector<1x128xf32>
    %321 = vector.extract_strided_slice %314 {offsets = [0, 128], sizes = [1, 128], strides = [1, 1]} : vector<1x512xf32> to vector<1x128xf32>
    %322 = arith.negf %321 : vector<1x128xf32>
    %323 = math.exp %322 : vector<1x128xf32>
    %cst_153 = arith.constant 1.000000e+00 : f32
    %324 = vector.broadcast %cst_153 : f32 to vector<1x128xf32>
    %325 = arith.addf %324, %323 : vector<1x128xf32>
    %326 = arith.divf %324, %325 : vector<1x128xf32>
    %327 = vector.extract_strided_slice %314 {offsets = [0, 256], sizes = [1, 128], strides = [1, 1]} : vector<1x512xf32> to vector<1x128xf32>
    %328 = math.tanh %327 : vector<1x128xf32>
    %329 = vector.extract_strided_slice %314 {offsets = [0, 384], sizes = [1, 128], strides = [1, 1]} : vector<1x512xf32> to vector<1x128xf32>
    %330 = vector.extract_strided_slice %311 {offsets = [8, 512], sizes = [8, 128], strides = [1, 1]} : vector<16x640xf32> to vector<8x128xf32>
    %c0_154 = arith.constant 0 : index
    %c0_155 = arith.constant 0 : index
    %331 = vector.load %arg5[%c0_154, %c0_155] : memref<1x128xf32, #tpu.memory_space<vmem>>, vector<1x128xf32>
    %332 = vector.broadcast %331 : vector<1x128xf32> to vector<8x128xf32>
    %333 = arith.addf %330, %332 : vector<8x128xf32>
    %334 = vector.broadcast %329 : vector<1x128xf32> to vector<8x128xf32>
    %335 = arith.addf %333, %334 : vector<8x128xf32>
    %336 = arith.negf %335 : vector<8x128xf32>
    %337 = math.exp %336 : vector<8x128xf32>
    %cst_156 = arith.constant 1.000000e+00 : f32
    %338 = vector.broadcast %cst_156 : f32 to vector<8x128xf32>
    %339 = arith.addf %338, %337 : vector<8x128xf32>
    %340 = arith.divf %338, %339 : vector<8x128xf32>
    %341 = arith.mulf %340, %303 : vector<8x128xf32>
    %342 = arith.mulf %320, %328 : vector<1x128xf32>
    %cst_157 = arith.constant dense<0.000000e+00> : vector<128xf32>
    %343 = vector.multi_reduction <add>, %341, %cst_157 [0] : vector<8x128xf32> to vector<128xf32>
    %344 = vector.shape_cast %343 : vector<128xf32> to vector<1x128xf32>
    %345 = arith.addf %342, %344 : vector<1x128xf32>
    %346 = math.tanh %345 : vector<1x128xf32>
    %347 = arith.mulf %326, %346 : vector<1x128xf32>
    %348 = arith.index_cast %c5_i32 : i32 to index
    %349 = memref.load %arg1[%348] : memref<6xi32, #tpu.memory_space<smem>>
    %350 = arith.index_cast %349 : i32 to index
    %c0_158 = arith.constant 0 : index
    %351 = vector.load %arg9[%350, %c0_158] : memref<56x128xf32, #tpu.memory_space<vmem>>, vector<1x128xf32>
    tpu.vector_store %arg9[%350, %c0_158], %345 {strides = array<i32>} : memref<56x128xf32, #tpu.memory_space<vmem>>, vector<1x128xf32>,
    %352 = arith.index_cast %349 : i32 to index
    %c0_159 = arith.constant 0 : index
    %353 = vector.load %arg10[%352, %c0_159] : memref<56x128xf32, #tpu.memory_space<vmem>>, vector<1x128xf32>
    tpu.vector_store %arg10[%352, %c0_159], %347 {strides = array<i32>} : memref<56x128xf32, #tpu.memory_space<vmem>>, vector<1x128xf32>,
    %c6_i32 = arith.constant 6 : i32
    %c48 = arith.constant 48 : index
    %c0_160 = arith.constant 0 : index
    %354 = vector.load %arg10[%c48, %c0_160] : memref<56x128xf32, #tpu.memory_space<vmem>>, vector<1x128xf32>
    %c0_161 = arith.constant 0 : index
    %c0_162 = arith.constant 0 : index
    %355 = vector.load %arg6[%c0_161, %c0_162] : memref<128x128xf32, #tpu.memory_space<vmem>>, vector<128x128xf32>
    %cst_163 = arith.constant dense<0.000000e+00> : vector<1x128xf32>
    %356 = tpu.matmul %354, %355, %cst_163 {dimension_numbers = #tpu.dot_dimension_numbers<[1], [0], [0], [1], [0, 0, 1, 1], [], []>} : vector<1x128xf32>, vector<128x128xf32>, vector<1x128xf32> -> vector<1x128xf32>
    %c0_164 = arith.constant 0 : index
    %c0_165 = arith.constant 0 : index
    %357 = vector.load %arg7[%c0_164, %c0_165] : memref<1x128xf32, #tpu.memory_space<vmem>>, vector<1x128xf32>
    %358 = arith.addf %356, %357 : vector<1x128xf32>
    %359 = tpu.iota {dimensions = array<i32: 1>} : vector<1x128xi32>
    %c4_i32_166 = arith.constant 4 : i32
    %360 = vector.broadcast %c4_i32_166 : i32 to vector<1x128xi32>
    %361 = arith.cmpi slt, %359, %360 : vector<1x128xi32>
    %cst_167 = arith.constant -1.000000e+30 : f32
    %362 = vector.broadcast %cst_167 : f32 to vector<1x128xf32>
    %363 = arith.select %361, %358, %362 : vector<1x128xi1>, vector<1x128xf32>
    %cst_168 = arith.constant dense<0xFF800000> : vector<1xf32>
    %364 = vector.multi_reduction <maximumf>, %363, %cst_168 [1] : vector<1x128xf32> to vector<1xf32>
    %365 = vector.shape_cast %364 : vector<1xf32> to vector<1x1xf32>
    %366 = vector.broadcast %365 : vector<1x1xf32> to vector<1x128xf32>
    %367 = arith.subf %363, %366 : vector<1x128xf32>
    %368 = math.exp %367 : vector<1x128xf32>
    %cst_169 = arith.constant dense<0.000000e+00> : vector<1xf32>
    %369 = vector.multi_reduction <add>, %368, %cst_169 [1] : vector<1x128xf32> to vector<1xf32>
    %370 = vector.shape_cast %369 : vector<1xf32> to vector<1x1xf32>
    %371 = math.log %370 : vector<1x1xf32>
    %372 = vector.broadcast %371 : vector<1x1xf32> to vector<1x128xf32>
    %373 = arith.subf %367, %372 : vector<1x128xf32>
    %c0_170 = arith.constant 0 : index
    %c0_171 = arith.constant 0 : index
    %374 = vector.load %arg8[%c0_170, %c0_171] : memref<1x128xf32, #tpu.memory_space<vmem>>, vector<1x128xf32>
    tpu.vector_store %arg8[%c0_170, %c0_171], %373 {strides = array<i32>} : memref<1x128xf32, #tpu.memory_space<vmem>>, vector<1x128xf32>,
    return
  }
  func.func @transform_0(%arg0: i32, %arg1: memref<6xi32, #tpu.memory_space<smem>>) -> (i32, i32) {
    %c0_i32 = arith.constant 0 : i32
    %c0_i32_0 = arith.constant 0 : i32
    %c0_i32_1 = arith.constant 0 : i32
    return %c0_i32, %c0_i32_0 : i32, i32
  }
  func.func @transform_1(%arg0: i32, %arg1: memref<6xi32, #tpu.memory_space<smem>>) -> (i32, i32) {
    %c0_i32 = arith.constant 0 : i32
    %c0_i32_0 = arith.constant 0 : i32
    %c0_i32_1 = arith.constant 0 : i32
    return %c0_i32, %c0_i32_0 : i32, i32
  }
  func.func @transform_2(%arg0: i32, %arg1: memref<6xi32, #tpu.memory_space<smem>>) -> (i32, i32) {
    %c0_i32 = arith.constant 0 : i32
    %c0_i32_0 = arith.constant 0 : i32
    %c0_i32_1 = arith.constant 0 : i32
    return %c0_i32, %c0_i32_0 : i32, i32
  }
  func.func @transform_3(%arg0: i32, %arg1: memref<6xi32, #tpu.memory_space<smem>>) -> (i32, i32) {
    %c0_i32 = arith.constant 0 : i32
    %c0_i32_0 = arith.constant 0 : i32
    %c0_i32_1 = arith.constant 0 : i32
    return %c0_i32, %c0_i32_0 : i32, i32
  }
  func.func @transform_4(%arg0: i32, %arg1: memref<6xi32, #tpu.memory_space<smem>>) -> (i32, i32) {
    %c0_i32 = arith.constant 0 : i32
    %c0_i32_0 = arith.constant 0 : i32
    %c0_i32_1 = arith.constant 0 : i32
    return %c0_i32, %c0_i32_0 : i32, i32
  }
  func.func @transform_5(%arg0: i32, %arg1: memref<6xi32, #tpu.memory_space<smem>>) -> (i32, i32) {
    %c0_i32 = arith.constant 0 : i32
    %c0_i32_0 = arith.constant 0 : i32
    %c0_i32_1 = arith.constant 0 : i32
    return %c0_i32, %c0_i32_0 : i32, i32
  }
  func.func @transform_6(%arg0: i32, %arg1: memref<6xi32, #tpu.memory_space<smem>>) -> (i32, i32) {
    %c0_i32 = arith.constant 0 : i32
    %c0_i32_0 = arith.constant 0 : i32
    %c0_i32_1 = arith.constant 0 : i32
    return %c0_i32, %c0_i32_0 : i32, i32
  }
}

</mosaic_0001>

<bundles_post_ra>
// kernel: run.1
= control target key start
LH: loop header
LB: loop body
LE: loop exit
PB: predicated region body
PF: predicated region fallthrough
CT: control target
= control target key end

     0   :  { %s5823_s0 = inlined_call_operand.hbm [shape: s32[6], index: 0, kind: input, shape index: {}]   ;;  %s5824_s1 = inlined_call_operand.hbm [shape: f32[8,128], index: 1, kind: input, shape index: {}]   ;;  %s5825_s2 = inlined_call_operand.hbm [shape: f32[256,640], index: 2, kind: input, shape index: {}]   ;;  %s5826_s3 = inlined_call_operand.vmem [shape: f32[1,512], index: 3, kind: input, shape index: {}]   ;;  %s5827_s4 = inlined_call_operand.vmem [shape: f32[1,128], index: 4, kind: input, shape index: {}]   ;;  %s5828_s5 = inlined_call_operand.hbm [shape: f32[128,128], index: 5, kind: input, shape index: {}]   ;;  %s5829_s6 = inlined_call_operand.vmem [shape: f32[1,128], index: 6, kind: input, shape index: {}]   ;;  %s5830_s7 = inlined_call_operand.hbm [shape: f32[1,128], index: 7, kind: output, shape index: {}]  }
   0x1   :  { %s4482_s26 = scalar_lea.hbm %s5823_s0, 16 }
   0x2   :  { %p4483_p0 = scmp.ne.s32.totalorder %s5823_s0, %s4482_s26  ;;  %p4486_p1 = scmp.lt.u32.totalorder %s4482_s26, %s5823_s0 }
   0x4   :  { %p4488_p2 = pnand %p4486_p1, %p4483_p0 }
   0x6   :  { %4491 = shalt.err (!%p4488_p2)  }
   0x7   :  { %s4588_s8 = smov [#allocation6]  }
   0x8   :  { %13 = dma.hbm_to_smem %s5823_s0, 16, %s4588_s8, [#allocation5] }
   0x9   :  { %4580 = dma.done.wait [#allocation5], 16 }
   0xa   :  { %4581 = vsyncadd [#allocation5], 4294967280 }
   0xb   :  { %15 = sfence }
   0xc   :  { %16 = vsyncpa [#allocation8], 0 }
   0xd   :  { %17 = vsyncpa [#allocation11], 0 }
   0xe   :  { %18 = vsyncpa [#allocation9], 0  ;;  %s4589_s11 = smov [#allocation10]   ;;  %s4492_s15 = scalar_lea.hbm %s5825_s2, 20480 }
   0xf   :  { %s34_s12 = sshll.u32 %s4589_s11, 4  ;;  %p4493_p3 = scmp.ne.s32.totalorder %s5825_s2, %s4492_s15  ;;  %s35_s12 = int_to_ptr.vmem [resolvable:$true] %s34_s12 }
  0x10   :  { %p4496_p4 = scmp.lt.u32.totalorder %s4492_s15, %s5825_s2 }
  0x12   :  { %p4498_p5 = pnand %p4496_p4, %p4493_p3 }
  0x14   :  { %4501 = shalt.err (!%p4498_p5)
}
  0x15   :  { %s4502_s0 = scalar_lea.vmem %s35_s12, 20480  ;;  %p4507_p7 = scmp.lt.s32.totalorder %s35_s12, %s35_s12 }
  0x16   :  { %p4503_p6 = scmp.ne.s32.totalorder %s35_s12, %s4502_s0  ;;  %p4508_p8 = scmp.lt.s32.totalorder %s4502_s0, %s4502_s0 }
  0x18   :  { %p4509_p9 = por %p4508_p8, %p4507_p7 }
  0x1a   :  { %p4510_p10 = pnand %p4509_p9, %p4503_p6 }
  0x1c   :  { %4513 = shalt.err (!%p4510_p10)
}
  0x1d   :  { %s4590_s20 = smov 640   ;;  %s4591_s21 = smov 40  }
  0x1e   :  { %40 = dma.hbm_to_vmem [thread:$0]  %s5825_s2, 20480, %s35_s12, [#allocation11], %s4590_s20, %s4590_s20, %s4591_s21  }
  0x1f   :  { %s4592_s24 = smov [#allocation7]   ;;  %s4593_s26 = smov [#allocation12]  }
  0x20   :  { %s25_s25 = sshll.u32 %s4592_s24, 4  ;;  %s50_s27 = sshll.u32 %s4593_s26, 4  ;;  %s26_s25 = int_to_ptr.vmem [resolvable:$true] %s25_s25  ;;  %s51_s27 = int_to_ptr.vmem [resolvable:$true] %s50_s27 }
  0x21   :  { %s4514_s30 = scalar_lea.hbm %s5824_s1, 128 }
  0x22   :  { %p4515_p11 = scmp.ne.s32.totalorder %s5824_s1, %s4514_s30  ;;  %p4518_p12 = scmp.lt.u32.totalorder %s4514_s30, %s5824_s1 }
  0x24   :  { %p4520_p13 = pnand %p4518_p12, %p4515_p11 }
  0x26   :  { %4523 = shalt.err (!%p4520_p13)
}
  0x27   :  { %s4524_s2 = scalar_lea.vmem %s26_s25, 128  ;;  %p4529_p1 = scmp.lt.s32.totalorder %s26_s25, %s26_s25 }
  0x28   :  { %p4525_p0 = scmp.ne.s32.totalorder %s26_s25, %s4524_s2  ;;  %p4530_p2 = scmp.lt.s32.totalorder %s4524_s2, %s4524_s2 }
  0x2a   :  { %p4531_p3 = por %p4530_p2, %p4529_p1 }
  0x2c   :  { %p4532_p4 = pnand %p4531_p3, %p4525_p0 }
  0x2e   :  { %4535 = shalt.err (!%p4532_p4)
}
  0x2f   :  { %28 = dma.hbm_to_vmem [thread:$0]  %s5824_s1, 128, %s26_s25, [#allocation8]  }
  0x30   :  { %s4536_s16 = scalar_lea.hbm %s5828_s5, 2048 }
  0x31   :  { %p4537_p5 = scmp.ne.s32.totalorder %s5828_s5, %s4536_s16  ;;  %p4540_p6 = scmp.lt.u32.totalorder %s4536_s16, %s5828_s5 }
  0x33   :  { %p4542_p7 = pnand %p4540_p6, %p4537_p5 }
  0x35   :  { %4545 = shalt.err (!%p4542_p7)
}
  0x36   :  { %s4546_s20 = scalar_lea.vmem %s51_s27, 2048  ;;  %p4551_p9 = scmp.lt.s32.totalorder %s51_s27, %s51_s27 }
  0x37   :  { %p4547_p8 = scmp.ne.s32.totalorder %s51_s27, %s4546_s20  ;;  %p4552_p10 = scmp.lt.s32.totalorder %s4546_s20, %s4546_s20 }
  0x39   :  { %p4553_p11 = por %p4552_p10, %p4551_p9 }
  0x3b   :  { %p4554_p12 = pnand %p4553_p11, %p4547_p8 }
  0x3d   :  { %4557 = shalt.err (!%p4554_p12)
}
  0x3e   :  { %s4594_s1 = smov 128   ;;  %s4595_s21 = smov 8  }
  0x3f   :  { %56 = dma.hbm_to_vmem [thread:$0]  %s5828_s5, 2048, %s51_s27, [#allocation11], %s4594_s1, %s4594_s1, %s4595_s21  }
  0x40   :  { %4582 = dma.done.wait [#allocation8], 128  }
  0x41   :  { %4583 = vsyncadd [#allocation8], 4294967168 }
  0x42   :  { %4584 = dma.done.wait [#allocation11], 22528  }
  0x43   :  { %4585 = vsyncadd [#allocation11], 4294944768  ;;  %v5831_v0 = vmov 0.0   ;;  %v103_v3 = vld [vmem:[#allocation10 + $0x8] sm:$0xff]  ;;  %v108_v4 = vld [vmem:[#allocation10 + $0x30] sm:$0xff]  ;;  %s555_s27 = sld [smem:[#allocation6]] }
  0x44   :  { %83 = vst [vmem:[#allocation4 + $0x8] sm:$0xff] %v5831_v0  ;;  %v89_v1 = vrot.slane %v5831_v0, 4  ;;  %69 = vst [vmem:[#allocation2 + $0x8] sm:$0xff] %v5831_v0  ;;  %v102_v5 = vld [vmem:[#allocation10] sm:$0xff]  ;;  %v4703_v7 = vpack.c.bf16 %v108_v4, %v103_v3  ;;  %v107_v8 = vld [vmem:[#allocation10 + $0x28] sm:$0xff]  ;;  %s3082_s9 = sld [smem:[#allocation6 + $0x1]] }
  0x45   :  { %70 = vst [vmem:[#allocation2 + $0x10] sm:$0xff] %v5831_v0  ;;  %71 = vst [vmem:[#allocation2 + $0x18] sm:$0xff] %v5831_v0  ;;  %v113_v9 = vld [vmem:[#allocation10 + $0x58] sm:$0xff]  ;;  %v118_v10 = vld [vmem:[#allocation10 + $0x80] sm:$0xff]  ;;  %v4705_v11 = vpack.c.bf16 %v107_v8, %v102_v5  ;;  %s3087_s15 = sld [smem:[#allocation6 + $0x2]]  ;;  %s3092_s0 = sld [smem:[#allocation6 + $0x3]] }
  0x46   :  { %72 = vst [vmem:[#allocation2 + $0x20] sm:$0xff] %v5831_v0  ;;  %73 = vst [vmem:[#allocation2 + $0x28] sm:$0xff] %v5831_v0  ;;  %v91_v2 = vrot.slane %v89_v1, 2  ;;  %v4707_v12 = vpack.c.bf16 %v118_v10, %v113_v9  ;;  %v112_v13 = vld [vmem:[#allocation10 + $0x50] sm:$0xff]  ;;  %v117_v14 = vld [vmem:[#allocation10 + $0x78] sm:$0xff]  ;;  %3384 = vmatprep.subr.bf16.mxu0 %v4703_v7  ;;  %vm4598_vm0 = vmmov 0  }
  0x47   :  { %76 = vst [vmem:[#allocation3 + $0x8] sm:$0xff] %v5831_v0  ;;  %77 = vst [vmem:[#allocation3 + $0x10] sm:$0xff] %v5831_v0  ;;  %v123_v15 = vld [vmem:[#allocation10 + $0xa8] sm:$0xff]  ;;  %v128_v17 = vld [vmem:[#allocation10 + $0xd0] sm:$0xff]  ;;  %3386 = vmatpush1.bf16.msra.mxu0 %v4705_v11  ;;  %v4711_v18 = vpack.c.bf16 %v117_v14, %v112_v13  ;;  %vm3032_vm2 = vcmask 1040384  }
  0x48   :  { %78 = vst [vmem:[#allocation3 + $0x18] sm:$0xff] %v5831_v0  ;;  %79 = vst [vmem:[#allocation3 + $0x20] sm:$0xff] %v5831_v0  ;;  %v92_v6 = vadd.f32 %v91_v2, %v89_v1  ;;  %3388 = vmatprep.subr.bf16.mxu0 %v4707_v12  ;;  %v4714_v20 = vpack.c.bf16 %v128_v17, %v123_v15  ;;  %v122_v21 = vld [vmem:[#allocation10 + $0xa0] sm:$0xff]  ;;  %v127_v22 = vld [vmem:[#allocation10 + $0xc8] sm:$0xff] }
  0x49   :  { %80 = vst [vmem:[#allocation3 + $0x28] sm:$0xff] %v5831_v0  ;;  %81 = vst [vmem:[#allocation3 + $0x30] sm:$0xff] %v5831_v0  ;;  %v133_v23 = vld [vmem:[#allocation10 + $0xf8] sm:$0xff]  ;;  %v138_v24 = vld [vmem:[#allocation10 + $0x120] sm:$0xff]  ;;  %v4719_v30 = vpack.c.bf16 %v127_v22, %v122_v21  ;;  %s556_s28 = scalar_lea.vmem [#allocation2], %s555_s27  ;;  %s558_s29 = scalar_lea.vmem [#allocation3], %s555_s27 }
  0x4a   :  { %82 = vst [vmem:[#allocation4] sm:$0xff] %v5831_v0  ;;  %84 = vst [vmem:[#allocation4 + $0x10] sm:$0xff] %v5831_v0  ;;  %v93_v16 = vrot.slane %v92_v6, 1  ;;  %v105_v25 = vld [vmem:[#allocation10 + $0x18] sm:$0xff]  ;;  %v110_v26 = vld [vmem:[#allocation10 + $0x40] sm:$0xff]  ;;  %v4724_v34 = vpack.c.bf16 %v138_v24, %v133_v23  ;;  %s1032_s10 = scalar_lea.vmem [#allocation2], %s3082_s9 }
  0x4b   :  { %v4716_v27 = vpack.c.bf16 %v110_v26, %v105_v25  ;;  %v104_v28 = vld [vmem:[#allocation10 + $0x10] sm:$0xff]  ;;  %v109_v29 = vld [vmem:[#allocation10 + $0x38] sm:$0xff]  ;;  %3390 = vmatpush1.bf16.msra.mxu0 %v4711_v18  ;;  %v115_v33 = vld [vmem:[#allocation10 + $0x68] sm:$0xff]  ;;  %s1034_s11 = scalar_lea.vmem [#allocation3], %s3082_s9  ;;  %s1508_s16 = scalar_lea.vmem [#allocation2], %s3087_s15 }
  0x4c   :  { %v94_v19 = vadd.f32 %v93_v16, %v92_v6  ;;  %v132_v31 = vld [vmem:[#allocation10 + $0xf0] sm:$0xff]  ;;  %v4721_v32 = vpack.c.bf16 %v109_v29, %v104_v28  ;;  %3392 = vmatprep.subr.bf16.mxu0 %v4714_v20  ;;  %v137_v35 = vld [vmem:[#allocation10 + $0x118] sm:$0xff]  ;;  %v143_v36 = vld [vmem:[#allocation10 + $0x148] sm:$0xff]  ;;  %s1510_s17 = scalar_lea.vmem [#allocation3], %s3087_s15  ;;  %s1984_s20 = scalar_lea.vmem [#allocation2], %s3092_s0 }
  0x4d   :  { %3448 = vmatprep.subr.bf16.mxu1 %v4716_v27  ;;  %v120_v37 = vld [vmem:[#allocation10 + $0x90] sm:$0xff]  ;;  %v114_v40 = vld [vmem:[#allocation10 + $0x60] sm:$0xff]  ;;  %v119_v41 = vld [vmem:[#allocation10 + $0x88] sm:$0xff]  ;;  %v4733_v45 = vpack.c.bf16 %v137_v35, %v132_v31  ;;  %s1986_s1 = scalar_lea.vmem [#allocation3], %s3092_s0  ;;  %s4599_s9 = smov [#allocation13]  }
  0x4e   :  { %96 = vst [vmem:[#allocation4 + $0x8] sm:$0x1] %v94_v19  ;;  %v148_v38 = vld [vmem:[#allocation10 + $0x170] sm:$0xff]  ;;  %3450 = vmatpush1.bf16.msra.mxu1 %v4721_v32  ;;  %v4728_v39 = vpack.c.bf16 %v120_v37, %v115_v33  ;;  %v4730_v42 = vpack.c.bf16 %v119_v41, %v114_v40  ;;  %v125_v43 = vld [vmem:[#allocation10 + $0xb8] sm:$0xff]  ;;  %v130_v44 = vld [vmem:[#allocation10 + $0xe0] sm:$0xff] }
  0x4f   :  { %3394 = vmatpush1.bf16.msra.mxu0 %v4719_v30  ;;  %v142_v46 = vld [vmem:[#allocation10 + $0x140] sm:$0xff]  ;;  %v4736_v47 = vpack.c.bf16 %v130_v44, %v125_v43  ;;  %v124_v48 = vld [vmem:[#allocation10 + $0xb0] sm:$0xff]  ;;  %v4739_v49 = vpack.c.bf16 %v148_v38, %v143_v36  ;;  %v147_v50 = vld [vmem:[#allocation10 + $0x168] sm:$0xff] }
  0x50   :  { %3452 = vmatprep.subr.bf16.mxu1 %v4728_v39  ;;  %3396 = vmatprep.subr.bf16.mxu0 %v4724_v34  ;;  %v153_v51 = vld [vmem:[#allocation10 + $0x198] sm:$0xff]  ;;  %v158_v53 = vld [vmem:[#allocation10 + $0x1c0] sm:$0xff]  ;;  %v135_v55 = vld [vmem:[#allocation10 + $0x108] sm:$0xff]  ;;  %v4748_v60 = vpack.c.bf16 %v147_v50, %v142_v46 }
  0x51   :  { %v129_v52 = vld [vmem:[#allocation10 + $0xd8] sm:$0xff]  ;;  %v140_v56 = vld [vmem:[#allocation10 + $0x130] sm:$0xff]  ;;  %v134_v58 = vld [vmem:[#allocation10 + $0x100] sm:$0xff]  ;;  %v4751_v62 = vpack.c.bf16 %v158_v53, %v153_v51 }
  0x52   :  { %3454 = vmatpush1.bf16.msra.mxu1 %v4730_v42  ;;  %v4742_v54 = vpack.c.bf16 %v129_v52, %v124_v48  ;;  %v4745_v57 = vpack.c.bf16 %v140_v56, %v135_v55  ;;  %v139_v59 = vld [vmem:[#allocation10 + $0x128] sm:$0xff]  ;;  %v145_v61 = vld [vmem:[#allocation10 + $0x158] sm:$0xff]  ;;  %v152_v63 = vld [vmem:[#allocation10 + $0x190] sm:$0xff] }
  0x53   :  { %3456 = vmatprep.subr.bf16.mxu1 %v4736_v47  ;;  %3398 = vmatpush1.bf16.msra.mxu0 %v4733_v45  ;;  %v157_v1 = vld [vmem:[#allocation10 + $0x1b8] sm:$0xff]  ;;  %v150_v2 = vld [vmem:[#allocation10 + $0x180] sm:$0xff]  ;;  %v163_v3 = vld [vmem:[#allocation10 + $0x1e8] sm:$0xff]  ;;  %v4754_v5 = vpack.c.bf16 %v139_v59, %v134_v58 }
  0x54   :  { %3400 = vmatprep.subr.bf16.mxu0 %v4739_v49  ;;  %v168_v4 = vld [vmem:[#allocation10 + $0x210] sm:$0xff]  ;;  %v4757_v6 = vpack.c.bf16 %v150_v2, %v145_v61  ;;  %v149_v9 = vld [vmem:[#allocation10 + $0x178] sm:$0xff]  ;;  %v4760_v10 = vpack.c.bf16 %v157_v1, %v152_v63  ;;  %v155_v13 = vld [vmem:[#allocation10 + $0x1a8] sm:$0xff] }
  0x55   :  { %v144_v8 = vld [vmem:[#allocation10 + $0x150] sm:$0xff]  ;;  %v4763_v15 = vpack.c.bf16 %v168_v4, %v163_v3  ;;  %v162_v16 = vld [vmem:[#allocation10 + $0x1e0] sm:$0xff]  ;;  %v167_v17 = vld [vmem:[#allocation10 + $0x208] sm:$0xff] }
  0x56   :  { %3458 = vmatpush1.bf16.msra.mxu1 %v4742_v54  ;;  %v160_v14 = vld [vmem:[#allocation10 + $0x1d0] sm:$0xff]  ;;  %v173_v19 = vld [vmem:[#allocation10 + $0x238] sm:$0xff]  ;;  %v178_v21 = vld [vmem:[#allocation10 + $0x260] sm:$0xff]  ;;  %v4766_v22 = vpack.c.bf16 %v149_v9, %v144_v8  ;;  %v4772_v26 = vpack.c.bf16 %v167_v17, %v162_v16 }
  0x57   :  { %3460 = vmatprep.subr.bf16.mxu1 %v4745_v57  ;;  %3402 = vmatpush1.bf16.msra.mxu0 %v4748_v60  ;;  %v4769_v23 = vpack.c.bf16 %v160_v14, %v155_v13  ;;  %v154_v24 = vld [vmem:[#allocation10 + $0x1a0] sm:$0xff]  ;;  %v159_v25 = vld [vmem:[#allocation10 + $0x1c8] sm:$0xff]  ;;  %v165_v28 = vld [vmem:[#allocation10 + $0x1f8] sm:$0xff]  ;;  %v4775_v31 = vpack.c.bf16 %v178_v21, %v173_v19 }
  0x58   :  { %3404 = vmatprep.subr.bf16.mxu0 %v4751_v62  ;;  %v170_v29 = vld [vmem:[#allocation10 + $0x220] sm:$0xff]  ;;  %v172_v33 = vld [vmem:[#allocation10 + $0x230] sm:$0xff]  ;;  %v177_v35 = vld [vmem:[#allocation10 + $0x258] sm:$0xff]  ;;  %v4778_v38 = vpack.c.bf16 %v159_v25, %v154_v24 }
  0x59   :  { %v183_v36 = vld [vmem:[#allocation10 + $0x288] sm:$0xff]  ;;  %v188_v37 = vld [vmem:[#allocation10 + $0x2b0] sm:$0xff]  ;;  %v4781_v40 = vpack.c.bf16 %v170_v29, %v165_v28  ;;  %v169_v43 = vld [vmem:[#allocation10 + $0x218] sm:$0xff]  ;;  %v4784_v44 = vpack.c.bf16 %v177_v35, %v172_v33 }
  0x5a   :  { %3462 = vmatpush1.bf16.msra.mxu1 %v4754_v5  ;;  %v164_v41 = vld [vmem:[#allocation10 + $0x1f0] sm:$0xff]  ;;  %v175_v46 = vld [vmem:[#allocation10 + $0x248] sm:$0xff]  ;;  %v4787_v50 = vpack.c.bf16 %v188_v37, %v183_v36  ;;  %v182_v51 = vld [vmem:[#allocation10 + $0x280] sm:$0xff] }
  0x5b   :  { %3464 = vmatprep.subr.bf16.mxu1 %v4757_v6  ;;  %3406 = vmatpush1.bf16.msra.mxu0 %v4760_v10  ;;  %v180_v48 = vld [vmem:[#allocation10 + $0x270] sm:$0xff]  ;;  %v187_v52 = vld [vmem:[#allocation10 + $0x2a8] sm:$0xff]  ;;  %v193_v53 = vld [vmem:[#allocation10 + $0x2d8] sm:$0xff]  ;;  %v4790_v56 = vpack.c.bf16 %v169_v43, %v164_v41 }
  0x5c   :  { %3408 = vmatprep.subr.bf16.mxu0 %v4763_v15  ;;  %v198_v55 = vld [vmem:[#allocation10 + $0x300] sm:$0xff]  ;;  %v4793_v58 = vpack.c.bf16 %v180_v48, %v175_v46  ;;  %v179_v61 = vld [vmem:[#allocation10 + $0x268] sm:$0xff]  ;;  %v4796_v63 = vpack.c.bf16 %v187_v52, %v182_v51  ;;  %v185_v1 = vld [vmem:[#allocation10 + $0x298] sm:$0xff] }
  0x5d   :  { %v174_v59 = vld [vmem:[#allocation10 + $0x240] sm:$0xff]  ;;  %v4799_v3 = vpack.c.bf16 %v198_v55, %v193_v53  ;;  %v192_v4 = vld [vmem:[#allocation10 + $0x2d0] sm:$0xff]  ;;  %v197_v8 = vld [vmem:[#allocation10 + $0x2f8] sm:$0xff] }
  0x5e   :  { %3466 = vmatpush1.bf16.msra.mxu1 %v4766_v22  ;;  %v190_v2 = vld [vmem:[#allocation10 + $0x2c0] sm:$0xff]  ;;  %v203_v9 = vld [vmem:[#allocation10 + $0x328] sm:$0xff]  ;;  %v208_v13 = vld [vmem:[#allocation10 + $0x350] sm:$0xff]  ;;  %v4802_v14 = vpack.c.bf16 %v179_v61, %v174_v59  ;;  %v4808_v21 = vpack.c.bf16 %v197_v8, %v192_v4 }
  0x5f   :  { %3468 = vmatprep.subr.bf16.mxu1 %v4769_v23  ;;  %3410 = vmatpush1.bf16.msra.mxu0 %v4772_v26  ;;  %v4805_v16 = vpack.c.bf16 %v190_v2, %v185_v1  ;;  %v184_v17 = vld [vmem:[#allocation10 + $0x290] sm:$0xff]  ;;  %v189_v19 = vld [vmem:[#allocation10 + $0x2b8] sm:$0xff]  ;;  %v202_v24 = vld [vmem:[#allocation10 + $0x320] sm:$0xff]  ;;  %v4811_v29 = vpack.c.bf16 %v208_v13, %v203_v9 }
  0x60   :  { %3412 = vmatprep.subr.bf16.mxu0 %v4775_v31  ;;  %5909 = vst [vmem:[#allocation18_spill] sm:$0xff] %v4802_v14  ;;  %v195_v25 = vld [vmem:[#allocation10 + $0x2e8] sm:$0xff]  ;;  %v200_v28 = vld [vmem:[#allocation10 + $0x310] sm:$0xff]  ;;  %v4813_v35 = vld [vmem:[#allocation4 + $0x8] sm:$0xff]  ;;  %v4816_v43 = vpack.c.bf16 %v189_v19, %v184_v17 }
  0x61   :  { %5910 = vst [vmem:[#allocation19_spill] sm:$0xff] %v4805_v16  ;;  %v207_v33 = vld [vmem:[#allocation10 + $0x348] sm:$0xff]  ;;  %v86_v36 = vld [vmem:[#allocation7] sm:$0x1]  ;;  %v218_v41 = vld [vmem:[#allocation10 + $0x3a0] sm:$0xff]  ;;  %326 = vmatprep.mubr.f32.mxu0 %v4813_v35  ;;  %v4820_v46 = vpack.c.bf16 %v200_v28, %v195_v25  ;;  %401 = vmatprep.mubr.f32.mxu1 %v4813_v35 }
  0x62   :  { %3470 = vmatpush1.bf16.msra.mxu1 %v4778_v38  ;;  %v213_v37 = vld [vmem:[#allocation10 + $0x378] sm:$0xff]  ;;  %5911 = vst [vmem:[#allocation20_spill] sm:$0xff] %v4816_v43  ;;  %95 = vst [vmem:[#allocation4] sm:$0x1] %v86_v36  ;;  %v194_v48 = vld [vmem:[#allocation10 + $0x2e0] sm:$0xff]  ;;  %v4824_v52 = vpack.c.bf16 %v207_v33, %v202_v24 }
  0x63   :  { %3472 = vmatprep.subr.bf16.mxu1 %v4781_v40  ;;  %3414 = vmatpush1.bf16.msra.mxu0 %v4784_v44  ;;  %5912 = vst [vmem:[#allocation21_spill] sm:$0xff] %v4820_v46  ;;  %v199_v51 = vld [vmem:[#allocation10 + $0x308] sm:$0xff]  ;;  %v205_v53 = vld [vmem:[#allocation10 + $0x338] sm:$0xff]  ;;  %v210_v55 = vld [vmem:[#allocation10 + $0x360] sm:$0xff]  ;;  %v4827_v59 = vpack.c.bf16 %v218_v41, %v213_v37 }
  0x64   :  { %3416 = vmatprep.subr.bf16.mxu0 %v4787_v50  ;;  %v212_v61 = vld [vmem:[#allocation10 + $0x370] sm:$0xff]  ;;  %v217_v1 = vld [vmem:[#allocation10 + $0x398] sm:$0xff]  ;;  %v223_v2 = vld [vmem:[#allocation10 + $0x3c8] sm:$0xff]  ;;  %v4830_v8 = vpack.c.bf16 %v199_v51, %v194_v48  ;;  %v4833_v9 = vpack.c.bf16 %v210_v55, %v205_v53 }
  0x65   :  { %v228_v4 = vld [vmem:[#allocation10 + $0x3f0] sm:$0xff]  ;;  %v209_v17 = vld [vmem:[#allocation10 + $0x358] sm:$0xff]  ;;  %v4836_v19 = vpack.c.bf16 %v217_v1, %v212_v61  ;;  %v215_v24 = vld [vmem:[#allocation10 + $0x388] sm:$0xff] }
  0x66   :  { %3474 = vmatpush1.bf16.msra.mxu1 %v4790_v56  ;;  %5913 = vst [vmem:[#allocation22_spill] sm:$0xff] %v4830_v8  ;;  %5914 = vst [vmem:[#allocation23_spill] sm:$0xff] %v4833_v9  ;;  %v204_v13 = vld [vmem:[#allocation10 + $0x330] sm:$0xff]  ;;  %v4839_v28 = vpack.c.bf16 %v228_v4, %v223_v2  ;;  %v222_v33 = vld [vmem:[#allocation10 + $0x3c0] sm:$0xff] }
  0x67   :  { %3476 = vmatprep.subr.bf16.mxu1 %v4793_v58  ;;  %3418 = vmatpush1.bf16.msra.mxu0 %v4796_v63  ;;  %v220_v25 = vld [vmem:[#allocation10 + $0x3b0] sm:$0xff]  ;;  %v227_v36 = vld [vmem:[#allocation10 + $0x3e8] sm:$0xff]  ;;  %v233_v37 = vld [vmem:[#allocation10 + $0x418] sm:$0xff]  ;;  %v4842_v48 = vpack.c.bf16 %v209_v17, %v204_v13 }
  0x68   :  { %3420 = vmatprep.subr.bf16.mxu0 %v4799_v3  ;;  %v238_v41 = vld [vmem:[#allocation10 + $0x440] sm:$0xff]  ;;  %v4845_v51 = vpack.c.bf16 %v220_v25, %v215_v24  ;;  %v219_v55 = vld [vmem:[#allocation10 + $0x3a8] sm:$0xff]  ;;  %v4848_v61 = vpack.c.bf16 %v227_v36, %v222_v33  ;;  %v225_v1 = vld [vmem:[#allocation10 + $0x3d8] sm:$0xff] }
  0x69   :  { %5915 = vst [vmem:[#allocation24_spill] sm:$0xff] %v4842_v48  ;;  %v214_v53 = vld [vmem:[#allocation10 + $0x380] sm:$0xff]  ;;  %v4851_v4 = vpack.c.bf16 %v238_v41, %v233_v37  ;;  %v232_v0 = vld [vmem:[#allocation10 + $0x410] sm:$0xff]  ;;  %v243_v13 = vld [vmem:[#allocation10 + $0x468] sm:$0xff] }
  0x6a   :  { %3478 = vmatpush1.bf16.msra.mxu1 %v4802_v14  ;;  %5916 = vst [vmem:[#allocation25_spill] sm:$0xff] %v4845_v51  ;;  %v230_v2 = vld [vmem:[#allocation10 + $0x400] sm:$0xff]  ;;  %v248_v17 = vld [vmem:[#allocation10 + $0x490] sm:$0xff]  ;;  %v4854_v24 = vpack.c.bf16 %v219_v55, %v214_v53  ;;  %v229_v36 = vld [vmem:[#allocation10 + $0x3f8] sm:$0xff] }
  0x6b   :  { %3480 = vmatprep.subr.bf16.mxu1 %v4805_v16  ;;  %3422 = vmatpush1.bf16.msra.mxu0 %v4808_v21  ;;  %v4857_v25 = vpack.c.bf16 %v230_v2, %v225_v1  ;;  %v224_v33 = vld [vmem:[#allocation10 + $0x3d0] sm:$0xff]  ;;  %v235_v37 = vld [vmem:[#allocation10 + $0x428] sm:$0xff]  ;;  %v253_v53 = vld [vmem:[#allocation10 + $0x4b8] sm:$0xff] }
  0x6c   :  { %3424 = vmatprep.subr.bf16.mxu0 %v4811_v29  ;;  %5917 = vst [vmem:[#allocation26_spill] sm:$0xff] %v4854_v24  ;;  %v240_v41 = vld [vmem:[#allocation10 + $0x450] sm:$0xff]  ;;  %v258_v55 = vld [vmem:[#allocation10 + $0x4e0] sm:$0xff]  ;;  %v4866_v1 = vpack.c.bf16 %v229_v36, %v224_v33  ;;  %v191_v36 = vld [vmem:[#allocation10 + $0x2c8] sm:$0xff] }
  0x6d   :  { %5918 = vst [vmem:[#allocation27_spill] sm:$0xff] %v4857_v25  ;;  %v4869_v2 = vpack.c.bf16 %v240_v41, %v235_v37  ;;  %v4875_v16 = vpack.c.bf16 %v258_v55, %v253_v53  ;;  %v252_v14 = vld [vmem:[#allocation10 + $0x4b0] sm:$0xff]  ;;  %v186_v33 = vld [vmem:[#allocation10 + $0x2a0] sm:$0xff]  ;;  %v255_v53 = vld [vmem:[#allocation10 + $0x4c8] sm:$0xff] }
  0x6e   :  { %3482 = vmatpush1.bf16.msra.mxu1 %v4816_v43  ;;  %v242_v43 = vld [vmem:[#allocation10 + $0x460] sm:$0xff]  ;;  %5921 = vst [vmem:[#allocation30_spill] sm:$0xff] %v4866_v1  ;;  %v260_v55 = vld [vmem:[#allocation10 + $0x4f0] sm:$0xff] }
  0x6f   :  { %3484 = vmatprep.subr.bf16.mxu1 %v4820_v46  ;;  %3426 = vmatpush1.bf16.msra.mxu0 %v4824_v52  ;;  %v4863_v46 = vpack.c.bf16 %v248_v17, %v243_v13  ;;  %5922 = vst [vmem:[#allocation31_spill] sm:$0xff] %v4869_v2  ;;  %v245_v13 = vld [vmem:[#allocation10 + $0x478] sm:$0xff]  ;;  %v250_v17 = vld [vmem:[#allocation10 + $0x4a0] sm:$0xff]  ;;  %5923 = vst [vmem:[#allocation32_spill] sm:$0xff] %v4875_v16 }
  0x70   :  { %3428 = vmatprep.subr.bf16.mxu0 %v4827_v59  ;;  %v4881_v41 = vpack.c.bf16 %v250_v17, %v245_v13  ;;  %v4893_v17 = vpack.c.bf16 %v260_v55, %v255_v53 }
  0x71   :  { %5920 = vst [vmem:[#allocation29_spill] sm:$0xff] %v4863_v46 }
  0x72   :  { %3486 = vmatpush1.bf16.msra.mxu1 %v4830_v8  ;;  %v237_v8 = vld [vmem:[#allocation10 + $0x438] sm:$0xff]  ;;  %5925 = vst [vmem:[#allocation34_spill] sm:$0xff] %v4881_v41 }
  0x73   :  { %3488 = vmatprep.subr.bf16.mxu1 %v4833_v9  ;;  %3430 = vmatpush1.bf16.msra.mxu0 %v4836_v19  ;;  %v4860_v9 = vpack.c.bf16 %v237_v8, %v232_v0  ;;  %v234_v0 = vld [vmem:[#allocation10 + $0x420] sm:$0xff]  ;;  %v239_v8 = vld [vmem:[#allocation10 + $0x448] sm:$0xff] }
  0x74   :  { %3432 = vmatprep.subr.bf16.mxu0 %v4839_v28  ;;  %v4878_v37 = vpack.c.bf16 %v239_v8, %v234_v0  ;;  %v196_v0 = vld [vmem:[#allocation10 + $0x2f0] sm:$0xff]  ;;  %v201_v8 = vld [vmem:[#allocation10 + $0x318] sm:$0xff] }
  0x75   :  { %5919 = vst [vmem:[#allocation28_spill] sm:$0xff] %v4860_v9 }
  0x76   :  { %3490 = vmatpush1.bf16.msra.mxu1 %v4842_v48  ;;  %v247_v48 = vld [vmem:[#allocation10 + $0x488] sm:$0xff]  ;;  %5924 = vst [vmem:[#allocation33_spill] sm:$0xff] %v4878_v37 }
  0x77   :  { %3492 = vmatprep.subr.bf16.mxu1 %v4845_v51  ;;  %3434 = vmatpush1.bf16.msra.mxu0 %v4848_v61  ;;  %v4872_v51 = vpack.c.bf16 %v247_v48, %v242_v43  ;;  %v244_v43 = vld [vmem:[#allocation10 + $0x470] sm:$0xff]  ;;  %v249_v48 = vld [vmem:[#allocation10 + $0x498] sm:$0xff] }
  0x78   :  { %3436 = vmatprep.subr.bf16.mxu0 %v4851_v4  ;;  %v4890_v13 = vpack.c.bf16 %v249_v48, %v244_v43  ;;  %v206_v43 = vld [vmem:[#allocation10 + $0x340] sm:$0xff]  ;;  %v211_v48 = vld [vmem:[#allocation10 + $0x368] sm:$0xff] }
  0x79   :  { %v4913_v55 = vpack.c.bf16 %v211_v48, %v206_v43  ;;  %v226_v43 = vld [vmem:[#allocation10 + $0x3e0] sm:$0xff]  ;;  %v231_v48 = vld [vmem:[#allocation10 + $0x408] sm:$0xff] }
  0x7a   :  { %3494 = vmatpush1.bf16.msra.mxu1 %v4854_v24  ;;  %v257_v24 = vld [vmem:[#allocation10 + $0x4d8] sm:$0xff]  ;;  %5926 = vst [vmem:[#allocation35_spill] sm:$0xff] %v4890_v13 }
  0x7b   :  { %3496 = vmatprep.subr.bf16.mxu1 %v4857_v25  ;;  %3438 = vmatpush1.bf16.msra.mxu0 %v4860_v9  ;;  %v4884_v25 = vpack.c.bf16 %v257_v24, %v252_v14  ;;  %v106_v9 = vld [vmem:[#allocation10 + $0x20] sm:$0xff]  ;;  %v259_v24 = vld [vmem:[#allocation10 + $0x4e8] sm:$0xff] }
  0x7c   :  { %3440 = vmatprep.subr.bf16.mxu0 %v4863_v46  ;;  %v4887_v46 = vpack.c.bf16 %v191_v36, %v186_v33  ;;  %v254_v14 = vld [vmem:[#allocation10 + $0x4c0] sm:$0xff]  ;;  %v4901_v36 = vpack.c.bf16 %v201_v8, %v196_v0  ;;  %v131_v8 = vld [vmem:[#allocation10 + $0xe8] sm:$0xff] }
  0x7d   :  { %v4904_v53 = vpack.c.bf16 %v259_v24, %v254_v14  ;;  %v126_v0 = vld [vmem:[#allocation10 + $0xc0] sm:$0xff]  ;;  %v136_v14 = vld [vmem:[#allocation10 + $0x110] sm:$0xff]  ;;  %v141_v24 = vld [vmem:[#allocation10 + $0x138] sm:$0xff] }
  0x7e   :  { %3498 = vmatpush1.bf16.msra.mxu1 %v4866_v1  ;;  %v111_v1 = vld [vmem:[#allocation10 + $0x48] sm:$0xff] }
  0x7f   :  { %3500 = vmatprep.subr.bf16.mxu1 %v4869_v2  ;;  %3442 = vmatpush1.bf16.msra.mxu0 %v4872_v51  ;;  %v4896_v2 = vld [vmem:[#allocation4] sm:$0xff]  ;;  %v4898_v33 = vpack.c.bf16 %v111_v1, %v106_v9  ;;  %v5927_v1 = vmov 0.0  }
  0x80   :  { %3444 = vmatprep.subr.bf16.mxu0 %v4875_v16  ;;  %v116_v16 = vld [vmem:[#allocation10 + $0x70] sm:$0xff] }
  0x82   :  { %3502 = vmatpush1.bf16.msra.mxu1 %v4878_v37  ;;  %v121_v37 = vld [vmem:[#allocation10 + $0x98] sm:$0xff] }
  0x83   :  { %3504 = vmatprep.subr.bf16.mxu1 %v4881_v41  ;;  %3446 = vmatpush1.bf16.msra.mxu0 %v4884_v25  ;;  %v4909_v9 = vpack.c.bf16 %v121_v37, %v116_v16  ;;  %v216_v41 = vld [vmem:[#allocation10 + $0x390] sm:$0xff]  ;;  %v4919_v16 = vpack.c.bf16 %v131_v8, %v126_v0  ;;  %v241_v8 = vld [vmem:[#allocation10 + $0x458] sm:$0xff] }
  0x84   :  { %3512 = vmatprep.subr.bf16.mxu0 %v4887_v46  ;;  %v236_v0 = vld [vmem:[#allocation10 + $0x430] sm:$0xff] }
  0x86   :  { %3506 = vmatpush1.bf16.msra.mxu1 %v4890_v13  ;;  %327 = vmatmul.mubr.f32.vlgmr.msra.gmra.mrb[0].mxu0 %v4896_v2  ;;  %v221_v13 = vld [vmem:[#allocation10 + $0x3b8] sm:$0xff] }
  0x87   :  { %3508 = vmatprep.subr.bf16.mxu1 %v4893_v17  ;;  %3514 = vmatpush3.bf16.msra.mxu0 %v4898_v33  ;;  %v4923_v37 = vpack.c.bf16 %v221_v13, %v216_v41  ;;  %v146_v41 = vld [vmem:[#allocation10 + $0x160] sm:$0xff]  ;;  %v151_v13 = vld [vmem:[#allocation10 + $0x188] sm:$0xff] }
  0x88   :  { %332 = vmatprep.mubr.f32.mxu0 %v5927_v1  ;;  %3516 = vmatprep.subr.bf16.mxu0 %v4901_v36 }
  0x8a   :  { %3510 = vmatpush1.bf16.msra.mxu1 %v4904_v53  ;;  %333 = vmatmul.mubr.f32.gmra.mrb[2].mxu0 %v5927_v1 }
  0x8b   :  { %3544 = vmatprep.subr.bf16.mxu1 %v4703_v7  ;;  %3518 = vmatpush3.bf16.msra.mxu0 %v4909_v9  ;;  %v4930_v7 = vpack.c.bf16 %v141_v24, %v136_v14  ;;  %v156_v14 = vld [vmem:[#allocation10 + $0x1b0] sm:$0xff]  ;;  %v161_v24 = vld [vmem:[#allocation10 + $0x1d8] sm:$0xff] }
  0x8c   :  { %476 = vmatprep.mubr.f32.mxu0 %v4813_v35  ;;  %3520 = vmatprep.subr.bf16.mxu0 %v4913_v55  ;;  %v4933_v35 = vpack.c.bf16 %v231_v48, %v226_v43  ;;  %v246_v43 = vld [vmem:[#allocation10 + $0x480] sm:$0xff]  ;;  %v251_v48 = vld [vmem:[#allocation10 + $0x4a8] sm:$0xff] }
  0x8d   :  { %402 = vmatmul.mubr.f32.vlgmr.msra.gmra.mrb[0].mxu1 %v4896_v2 }
  0x8e   :  { %3546 = vmatpush1.bf16.msra.mxu1 %v4705_v11  ;;  %407 = vmatprep.mubr.f32.mxu1 %v5927_v1  ;;  %v4939_v11 = vpack.c.bf16 %v151_v13, %v146_v41  ;;  %v166_v41 = vld [vmem:[#allocation10 + $0x200] sm:$0xff]  ;;  %v171_v13 = vld [vmem:[#allocation10 + $0x228] sm:$0xff] }
  0x8f   :  { %3548 = vmatprep.subr.bf16.mxu1 %v4707_v12  ;;  %3522 = vmatpush3.bf16.msra.mxu0 %v4919_v16  ;;  %v4942_v12 = vpack.c.bf16 %v241_v8, %v236_v0  ;;  %v256_v0 = vld [vmem:[#allocation10 + $0x4d0] sm:$0xff]  ;;  %v261_v8 = vld [vmem:[#allocation10 + $0x4f8] sm:$0xff] }
  0x90   :  { %3524 = vmatprep.subr.bf16.mxu0 %v4923_v37 }
  0x91   :  { %408 = vmatmul.mubr.f32.gmra.mrb[2].mxu1 %v5927_v1 }
  0x92   :  { %3550 = vmatpush1.bf16.msra.mxu1 %v4711_v18  ;;  %v4947_v18 = vpack.c.bf16 %v161_v24, %v156_v14  ;;  %v176_v14 = vld [vmem:[#allocation10 + $0x250] sm:$0xff]  ;;  %v181_v24 = vld [vmem:[#allocation10 + $0x278] sm:$0xff] }
  0x93   :  { %3552 = vmatprep.subr.bf16.mxu1 %v4714_v20  ;;  %3526 = vmatpush3.bf16.msra.mxu0 %v4930_v7  ;;  %v4950_v20 = vpack.c.bf16 %v251_v48, %v246_v43  ;;  %v4963_v43 = vpack.c.bf16 %v181_v24, %v176_v14 }
  0x94   :  { %3528 = vmatprep.subr.bf16.mxu0 %v4933_v35 }
  0x96   :  { %3554 = vmatpush1.bf16.msra.mxu1 %v4719_v30  ;;  %v4955_v30 = vpack.c.bf16 %v171_v13, %v166_v41 }
  0x97   :  { %3556 = vmatprep.subr.bf16.mxu1 %v4724_v34  ;;  %3530 = vmatpush3.bf16.msra.mxu0 %v4939_v11  ;;  %v4958_v34 = vpack.c.bf16 %v261_v8, %v256_v0 }
  0x98   :  { %3532 = vmatprep.subr.bf16.mxu0 %v4942_v12 }
  0x9a   :  { %3558 = vmatpush1.bf16.msra.mxu1 %v4733_v45  ;;  %v5932_v45 = vld [vmem:[#allocation32_spill] sm:$0xff] }
  0x9b   :  { %3560 = vmatprep.subr.bf16.mxu1 %v4739_v49  ;;  %3534 = vmatpush3.bf16.msra.mxu0 %v4947_v18  ;;  %v5934_v49 = vld [vmem:[#allocation21_spill] sm:$0xff] }
  0x9c   :  { %3536 = vmatprep.subr.bf16.mxu0 %v4950_v20 }
  0x9e   :  { %3562 = vmatpush1.bf16.msra.mxu1 %v4748_v60  ;;  %v5937_v60 = vld [vmem:[#allocation24_spill] sm:$0xff] }
  0x9f   :  { %3564 = vmatprep.subr.bf16.mxu1 %v4751_v62  ;;  %3538 = vmatpush3.bf16.msra.mxu0 %v4955_v30  ;;  %v5938_v62 = vld [vmem:[#allocation25_spill] sm:$0xff] }
  0xa0   :  { %3540 = vmatprep.subr.bf16.mxu0 %v4958_v34 }
  0xa2   :  { %3566 = vmatpush1.bf16.msra.mxu1 %v4760_v10  ;;  %v5941_v10 = vld [vmem:[#allocation30_spill] sm:$0xff] }
  0xa3   :  { %3568 = vmatprep.subr.bf16.mxu1 %v4763_v15  ;;  %3542 = vmatpush3.bf16.msra.mxu0 %v4963_v43  ;;  %v5942_v15 = vld [vmem:[#allocation31_spill] sm:$0xff] }
  0xa4   :  { %3608 = vmatprep.subr.bf16.mxu0 %v4716_v27  ;;  %v5928_v27 = vld [vmem:[#allocation28_spill] sm:$0xff] }
  0xa6   :  { %3570 = vmatpush1.bf16.msra.mxu1 %v4772_v26  ;;  %477 = vmatmul.mubr.f32.vlgmr.msra.gmra.mrb[4].mxu0 %v4896_v2  ;;  %v5945_v26 = vld [vmem:[#allocation35_spill] sm:$0xff] }
  0xa7   :  { %3572 = vmatprep.subr.bf16.mxu1 %v4775_v31  ;;  %480 = vmatprep.mubr.f32.mxu0 %v5927_v1  ;;  %v5851_v31 = vlaneseq }
  0xa8   :  { %3610 = vmatpush1.bf16.msra.mxu0 %v4721_v32  ;;  %v5929_v32 = vld [vmem:[#allocation29_spill] sm:$0xff] }
  0xa9   :  { %3612 = vmatprep.subr.bf16.mxu0 %v4728_v39  ;;  %v5930_v39 = vld [vmem:[#allocation18_spill] sm:$0xff] }
  0xaa   :  { %3574 = vmatpush1.bf16.msra.mxu1 %v4784_v44  ;;  %481 = vmatmul.mubr.f32.gmra.mrb[6].mxu0 %v5927_v1 }
  0xab   :  { %3576 = vmatprep.subr.bf16.mxu1 %v4787_v50  ;;  %v486_v50 = vld [vmem:[%s5826_s3] sm:$0xf] }
  0xac   :  { %3614 = vmatpush1.bf16.msra.mxu0 %v4730_v42  ;;  %v5931_v42 = vld [vmem:[#allocation19_spill] sm:$0xff] }
  0xad   :  { %3616 = vmatprep.subr.bf16.mxu0 %v4736_v47  ;;  %v5933_v47 = vld [vmem:[#allocation20_spill] sm:$0xff] }
  0xae   :  { %3578 = vmatpush1.bf16.msra.mxu1 %v4796_v63 }
  0xaf   :  { %3580 = vmatprep.subr.bf16.mxu1 %v4799_v3  ;;  %v1036_v3 = vld [vmem:[#allocation7 + $0x2] sm:$0x1] }
  0xb0   :  { %3618 = vmatpush1.bf16.msra.mxu0 %v4742_v54  ;;  %v5935_v54 = vld [vmem:[#allocation22_spill] sm:$0xff] }
  0xb1   :  { %3620 = vmatprep.subr.bf16.mxu0 %v4745_v57  ;;  %v5936_v57 = vld [vmem:[#allocation23_spill] sm:$0xff] }
  0xb2   :  { %3582 = vmatpush1.bf16.msra.mxu1 %v4808_v21 }
  0xb3   :  { %3584 = vmatprep.subr.bf16.mxu1 %v4811_v29 }
  0xb4   :  { %3622 = vmatpush1.bf16.msra.mxu0 %v4754_v5  ;;  %v5939_v5 = vld [vmem:[#allocation26_spill] sm:$0xff] }
  0xb5   :  { %3624 = vmatprep.subr.bf16.mxu0 %v4757_v6  ;;  %v5940_v6 = vld [vmem:[#allocation27_spill] sm:$0xff] }
  0xb6   :  { %3586 = vmatpush1.bf16.msra.mxu1 %v4824_v52 }
  0xb7   :  { %3588 = vmatprep.subr.bf16.mxu1 %v4827_v59 }
  0xb8   :  { %3626 = vmatpush1.bf16.msra.mxu0 %v4766_v22  ;;  %v5943_v22 = vld [vmem:[#allocation33_spill] sm:$0xff] }
  0xb9   :  { %3628 = vmatprep.subr.bf16.mxu0 %v4769_v23  ;;  %v5944_v23 = vld [vmem:[#allocation34_spill] sm:$0xff] }
  0xba   :  { %3590 = vmatpush1.bf16.msra.mxu1 %v4836_v19 }
  0xbb   :  { %3592 = vmatprep.subr.bf16.mxu1 %v4839_v28 }
  0xbc   :  { %3630 = vmatpush1.bf16.msra.mxu0 %v4778_v38  ;;  %v489_v38 = vshrl.u32 %v5851_v31, 7  ;;  %v1175_v31 = vld [vmem:[#allocation10 + $0x3c8] sm:$0xff] }
  0xbd   :  { %3632 = vmatprep.subr.bf16.mxu0 %v4781_v40  ;;  %v560_v40 = vld [vmem:[#allocation7 + $0x1] sm:$0x1] }
  0xbe   :  { %3594 = vmatpush1.bf16.msra.mxu1 %v4848_v61  ;;  %571 = vst [vmem:[#allocation4] sm:$0x1] %v560_v40  ;;  %v5025_v44 = vsub.s32 0, %v489_v38  ;;  %v5033_v52 = vsub.s32 2, %v489_v38  ;;  %v5036_v41 = vsub.s32 3, %v489_v38 }
  0xbf   :  { %3596 = vmatprep.subr.bf16.mxu1 %v4851_v4 }
  0xc0   :  { %3634 = vmatpush1.bf16.msra.mxu0 %v4790_v56  ;;  %v491_v56 = vrot.slane %v486_v50, %v5025_v44  ;;  %v499_v61 = vrot.slane %v486_v50, %v5033_v52  ;;  %5946 = vst [vmem:[#allocation28_spill] sm:$0xff] %v5036_v41  ;;  %v503_v8 = vrot.slane %v486_v50, %v5036_v41 }
  0xc1   :  { %3636 = vmatprep.subr.bf16.mxu0 %v4793_v58 }
  0xc2   :  { %3598 = vmatpush1.bf16.msra.mxu1 %v5928_v27 }
  0xc3   :  { %3600 = vmatprep.subr.bf16.mxu1 %v5929_v32 }
  0xc4   :  { %3638 = vmatpush1.bf16.msra.mxu0 %v5930_v39 }
  0xc5   :  { %3640 = vmatprep.subr.bf16.mxu0 %v5931_v42  ;;  %v5031_v63 = vld [vmem:[#allocation4] sm:$0xff]  ;;  %v5042_v42 = vld [vmem:[%s5827_s4] ss:$0 sm:$0xff] }
  0xc6   :  { %3602 = vmatpush1.bf16.msra.mxu1 %v4872_v51  ;;  %1047 = vst [vmem:[#allocation4] sm:$0x1] %v1036_v3 }
  0xc7   :  { %3604 = vmatprep.subr.bf16.mxu1 %v5932_v45 }
  0xc8   :  { %3642 = vmatpush1.bf16.msra.mxu0 %v5933_v47 }
  0xc9   :  { %3644 = vmatprep.subr.bf16.mxu0 %v5934_v49 }
  0xca   :  { %3606 = vmatpush1.bf16.msra.mxu1 %v4884_v25 }
  0xcb   :  { %3672 = vmatprep.subr.bf16.mxu1 %v4887_v46 }
  0xcc   :  { %3646 = vmatpush1.bf16.msra.mxu0 %v5935_v54 }
  0xcd   :  { %3648 = vmatprep.subr.bf16.mxu0 %v5936_v57 }
  0xd0   :  { %3650 = vmatpush1.bf16.msra.mxu0 %v5937_v60  ;;  %v5046_v60 = vsub.s32 1, %v489_v38 }
  0xd1   :  { %3652 = vmatprep.subr.bf16.mxu0 %v5938_v62 }
  0xd4   :  { %3654 = vmatpush1.bf16.msra.mxu0 %v5939_v5  ;;  %v495_v5 = vrot.slane %v486_v50, %v5046_v60 }
  0xd5   :  { %3656 = vmatprep.subr.bf16.mxu0 %v5940_v6 }
  0xd8   :  { %3658 = vmatpush1.bf16.msra.mxu0 %v5941_v10 }
  0xd9   :  { %3660 = vmatprep.subr.bf16.mxu0 %v5942_v15 }
  0xdc   :  { %3662 = vmatpush1.bf16.msra.mxu0 %v5943_v22 }
  0xdd   :  { %3664 = vmatprep.subr.bf16.mxu0 %v5944_v23 }
  0xe0   :  { %3666 = vmatpush1.bf16.msra.mxu0 %v5945_v26 }
  0xe1   :  { %3668 = vmatprep.subr.bf16.mxu0 %v4893_v17 }
  0xe4   :  { %3670 = vmatpush1.bf16.msra.mxu0 %v4904_v53 }
 0x159   :  { %v328_v58 = vpop.f32.mrb[0].mxu0 }
 0x15a   :  { %v508_v21 = vadd.f32 %v491_v56, %v328_v58  ;;  %v330_v29 = vpop.f32.mrb[1].mxu0 }
 0x15b   :  { %v509_v10 = vadd.f32 %v495_v5, %v330_v29  ;;  %v1082_v5 = vld [vmem:[#allocation10 + $0xe0] sm:$0xff] }
 0x15c   :  { %v3074_v46 = vmul.f32 -1.442695, %v508_v21 }
 0x15d   :  { %v334_v59 = vpop.f32.mrb[2].mxu0  ;;  %v3075_v15 = vmul.f32 -1.442695, %v509_v10  ;;  %v1081_v10 = vld [vmem:[#allocation10 + $0xd8] sm:$0xff] }
 0x15e   :  { %4379 = vpow2.f32 %v3074_v46  ;;  %v335_v19 = vpop.f32.mrb[3].mxu0 }
 0x160   :  { %v403_v28 = vpop.f32.mrb[0].mxu1 }
 0x161   :  { %v405_v51 = vpop.f32.mrb[1].mxu1  ;;  %v510_v2 = vadd.f32 %v499_v61, %v403_v28 }
 0x162   :  { %v511_v27 = vadd.f32 %v503_v8, %v405_v51  ;;  %v1072_v8 = vld [vmem:[#allocation10 + $0x90] sm:$0xff] }
 0x163   :  { %4381 = vtanh.f32 %v510_v2 }
 0x164   :  { %v409_v4 = vpop.f32.mrb[2].mxu1  ;;  %v536_v45 = vrot.slane %v511_v27, %v5025_v44 }
 0x165   :  { %v410_v25 = vpop.f32.mrb[3].mxu1 }
 0x168   :  { %v4380_v17 = vpop.eup %4379 }
 0x169   :  { %v515_v53 = vadd.f32 1.0, %v4380_v17 }
 0x16b   :  { %4383 = vrcp.f32 %v515_v53 }
 0x16d   :  { %v4382_v48 = vpop.eup %4381 }
 0x175   :  { %v4384_v13 = vpop.eup %4383 }
 0x176   :  { %v545_v0 = vmul.f32 %v4384_v13, %v4382_v48  ;;  %v1069_v48 = vld [vmem:[#allocation10 + $0x78] sm:$0xff]  ;;  %v1067_v13 = vld [vmem:[#allocation10 + $0x68] sm:$0xff] }
 0x177   :  { %v5089_v27 = vpack.c.bf16 %v1072_v8, %v1067_v13  ;;  %v1111_v13 = vld [vmem:[#allocation10 + $0x1c8] sm:$0xff] }
 0x179   :  { %v3135_v14 = vpop.f32.mrb[4].mxu0 }
 0x17a   :  { %v3136_v24 = vpop.f32.mrb[5].mxu0  ;;  %v1066_v14 = vld [vmem:[#allocation10 + $0x60] sm:$0xff] }
 0x17b   :  { %v1071_v24 = vld [vmem:[#allocation10 + $0x88] sm:$0xff] }
 0x17d   :  { %v3138_v32 = vpop.f32.mrb[6].mxu0 }
 0x17e   :  { %v3139_v39 = vpop.f32.mrb[7].mxu0 }
 0x17f   :  { %v3140_v47 = vadd.f32 %v3139_v39, %v3138_v32  ;;  %v5091_v32 = vpack.c.bf16 %v1071_v24, %v1066_v14  ;;  %v1075_v39 = vld [vmem:[#allocation10 + $0xa8] sm:$0xff] }
 0x180   :  { %v1115_v24 = vld [vmem:[#allocation10 + $0x1e8] sm:$0xff] }
 0x181   :  { %v532_v49 = vadd.f32 %v3140_v47, %v5042_v42 }
 0x183   :  { %v537_v54 = vadd.f32 %v536_v45, %v532_v49  ;;  %v1080_v45 = vld [vmem:[#allocation10 + $0xd0] sm:$0xff]  ;;  %v1074_v49 = vld [vmem:[#allocation10 + $0xa0] sm:$0xff] }
 0x184   :  { %v5095_v47 = vpack.c.bf16 %v1080_v45, %v1075_v39  ;;  %v1120_v39 = vld [vmem:[#allocation10 + $0x210] sm:$0xff] }
 0x185   :  { %v3077_v57 = vmul.f32 -1.442695, %v537_v54  ;;  %v1079_v54 = vld [vmem:[#allocation10 + $0xc8] sm:$0xff]  ;;  %v5143_v45 = vpack.c.bf16 %v1120_v39, %v1115_v24  ;;  %v1141_v24 = vld [vmem:[#allocation10 + $0x2b8] sm:$0xff] }
 0x187   :  { %4385 = vpow2.f32 %v3077_v57  ;;  %v1077_v57 = vld [vmem:[#allocation10 + $0xb8] sm:$0xff] }
 0x191   :  { %v4386_v62 = vpop.eup %4385 }
 0x192   :  { %v541_v6 = vadd.f32 1.0, %v4386_v62  ;;  %v5098_v62 = vpack.c.bf16 %v1079_v54, %v1074_v49  ;;  %v1114_v49 = vld [vmem:[#allocation10 + $0x1e0] sm:$0xff]  ;;  %v1119_v54 = vld [vmem:[#allocation10 + $0x208] sm:$0xff] }
 0x194   :  { %4387 = vrcp.f32 %v541_v6  ;;  %v1076_v6 = vld [vmem:[#allocation10 + $0xb0] sm:$0xff] }
 0x195   :  { %4389 = vpow2.f32 %v3075_v15  ;;  %v5101_v15 = vpack.c.bf16 %v1082_v5, %v1077_v57  ;;  %v1117_v57 = vld [vmem:[#allocation10 + $0x1f8] sm:$0xff]  ;;  %v5146_v5 = vpack.c.bf16 %v1119_v54, %v1114_v49 }
 0x196   :  { %v1145_v54 = vld [vmem:[#allocation10 + $0x2d8] sm:$0xff] }
 0x19e   :  { %v4388_v22 = vpop.eup %4387 }
 0x19f   :  { %v544_v23 = vmul.f32 0.0, %v4388_v22  ;;  %v4390_v58 = vpop.eup %4389  ;;  %v5103_v22 = vpack.c.bf16 %v1081_v10, %v1076_v6  ;;  %v1122_v6 = vld [vmem:[#allocation10 + $0x220] sm:$0xff]  ;;  %v1116_v10 = vld [vmem:[#allocation10 + $0x1f0] sm:$0xff] }
 0x1a0   :  { %v521_v46 = vadd.f32 1.0, %v4390_v58  ;;  %v1089_v58 = vld [vmem:[#allocation10 + $0x118] sm:$0xff] }
 0x1a1   :  { %v546_v26 = vrot.slane %v544_v23, 4 }
 0x1a2   :  { %4391 = vrcp.f32 %v521_v46  ;;  %v1092_v46 = vld [vmem:[#allocation10 + $0x130] sm:$0xff] }
 0x1a3   :  { %v547_v40 = vadd.f32 %v546_v26, %v544_v23  ;;  %v1085_v23 = vld [vmem:[#allocation10 + $0xf8] sm:$0xff]  ;;  %v1090_v26 = vld [vmem:[#allocation10 + $0x120] sm:$0xff] }
 0x1a5   :  { %v548_v56 = vrot.slane %v547_v40, 2 }
 0x1a7   :  { %v549_v3 = vadd.f32 %v548_v56, %v547_v40  ;;  %v5107_v40 = vpack.c.bf16 %v1090_v26, %v1085_v23  ;;  %v1084_v56 = vld [vmem:[#allocation10 + $0xf0] sm:$0xff]  ;;  %v1121_v23 = vld [vmem:[#allocation10 + $0x218] sm:$0xff]  ;;  %v5149_v26 = vpack.c.bf16 %v1122_v6, %v1117_v57  ;;  %v1150_v57 = vld [vmem:[#allocation10 + $0x300] sm:$0xff] }
 0x1a8   :  { %v5179_v6 = vpack.c.bf16 %v1150_v57, %v1145_v54  ;;  %v1156_v54 = vld [vmem:[#allocation10 + $0x330] sm:$0xff]  ;;  %v1161_v57 = vld [vmem:[#allocation10 + $0x358] sm:$0xff] }
 0x1a9   :  { %v550_v21 = vrot.slane %v549_v3, 1  ;;  %5948 = vst [vmem:[#allocation18_spill] sm:$0xff] %v5149_v26 }
 0x1ab   :  { %v551_v38 = vadd.f32 %v550_v21, %v549_v3  ;;  %v1087_v3 = vld [vmem:[#allocation10 + $0x108] sm:$0xff]  ;;  %v5110_v21 = vpack.c.bf16 %v1089_v58, %v1084_v56  ;;  %v5151_v56 = vpack.c.bf16 %v1121_v23, %v1116_v10  ;;  %v1125_v58 = vld [vmem:[#allocation10 + $0x238] sm:$0xff]  ;;  %v1144_v10 = vld [vmem:[#allocation10 + $0x2d0] sm:$0xff] }
 0x1ac   :  { %v4392_v50 = vpop.eup %4391  ;;  %v1149_v23 = vld [vmem:[#allocation10 + $0x2f8] sm:$0xff] }
 0x1ad   :  { %v552_v59 = vadd.f32 %v551_v38, %v545_v0  ;;  %v1086_v38 = vld [vmem:[#allocation10 + $0x100] sm:$0xff]  ;;  %5949 = vst [vmem:[#allocation19_spill] sm:$0xff] %v5151_v56 }
 0x1af   :  { %4393 = vtanh.f32 %v552_v59  ;;  %557 = vst [vmem:[%s556_s28] sm:$0x1] %v552_v59  ;;  %v1091_v59 = vld [vmem:[#allocation10 + $0x128] sm:$0xff] }
 0x1b9   :  { %v4394_v29 = vpop.eup %4393 }
 0x1ba   :  { %v554_v19 = vmul.f32 %v4394_v29, %v4392_v50  ;;  %v5113_v50 = vpack.c.bf16 %v1092_v46, %v1087_v3  ;;  %v5115_v29 = vpack.c.bf16 %v1091_v59, %v1086_v38  ;;  %v1130_v3 = vld [vmem:[#allocation10 + $0x260] sm:$0xff]  ;;  %v1124_v38 = vld [vmem:[#allocation10 + $0x230] sm:$0xff]  ;;  %v1129_v59 = vld [vmem:[#allocation10 + $0x258] sm:$0xff] }
 0x1bb   :  { %v5155_v46 = vpack.c.bf16 %v1130_v3, %v1125_v58  ;;  %v1147_v58 = vld [vmem:[#allocation10 + $0x2e8] sm:$0xff]  ;;  %v5182_v3 = vpack.c.bf16 %v1149_v23, %v1144_v10  ;;  %v1165_v10 = vld [vmem:[#allocation10 + $0x378] sm:$0xff]  ;;  %v5199_v23 = vpack.c.bf16 %v1161_v57, %v1156_v54  ;;  %v1180_v54 = vld [vmem:[#allocation10 + $0x3f0] sm:$0xff] }
 0x1bc   :  { %559 = vst [vmem:[%s558_s29] sm:$0x1] %v554_v19  ;;  %v1095_v19 = vld [vmem:[#allocation10 + $0x148] sm:$0xff]  ;;  %v5210_v57 = vpack.c.bf16 %v1180_v54, %v1175_v31 }
 0x1bd   :  { %5957 = vst [vmem:[#allocation26_spill] sm:$0xff] %v5199_v23  ;;  %v1187_v54 = vld [vmem:[#allocation10 + $0x428] sm:$0xff] }
 0x1c3   :  { %v562_v28 = vld [vmem:[#allocation3 + $0x8] sm:$0xff] }
 0x1c4   :  { %v565_v51 = vrot.slane %v562_v28, 4 }
 0x1c6   :  { %v566_v61 = vadd.f32 %v565_v51, %v562_v28 }
 0x1c8   :  { %v567_v4 = vrot.slane %v566_v61, 2 }
 0x1ca   :  { %v568_v25 = vadd.f32 %v567_v4, %v566_v61  ;;  %v1094_v61 = vld [vmem:[#allocation10 + $0x140] sm:$0xff]  ;;  %v1099_v4 = vld [vmem:[#allocation10 + $0x168] sm:$0xff] }
 0x1cc   :  { %v569_v2 = vrot.slane %v568_v25, 1 }
 0x1ce   :  { %v570_v17 = vadd.f32 %v569_v2, %v568_v25  ;;  %v1097_v25 = vld [vmem:[#allocation10 + $0x158] sm:$0xff]  ;;  %v5122_v2 = vpack.c.bf16 %v1099_v4, %v1094_v61  ;;  %v1132_v61 = vld [vmem:[#allocation10 + $0x270] sm:$0xff]  ;;  %v1126_v4 = vld [vmem:[#allocation10 + $0x240] sm:$0xff] }
 0x1d0   :  { %572 = vst [vmem:[#allocation4 + $0x8] sm:$0x1] %v570_v17  ;;  %v1102_v17 = vld [vmem:[#allocation10 + $0x180] sm:$0xff] }
 0x1d7   :  { %v575_v53 = vld [vmem:[#allocation4 + $0x8] sm:$0xff] }
 0x1d8   :  { %802 = vmatprep.mubr.f32.mxu1 %v575_v53  ;;  %877 = vmatprep.mubr.f32.mxu0 %v575_v53 }
 0x1d9   :  { %803 = vmatmul.mubr.f32.vlgmr.msra.gmra.mrb[4].mxu1 %v5031_v63  ;;  %878 = vmatmul.mubr.f32.vlgmr.msra.gmra.mrb[8].mxu0 %v5031_v63 }
 0x1da   :  { %3674 = vmatpush3.bf16.msra.mxu1 %v4898_v33  ;;  %808 = vmatprep.mubr.f32.mxu1 %v562_v28  ;;  %v5069_v33 = vld [vmem:[#allocation4 + $0x10] sm:$0xff] }
 0x1db   :  { %883 = vmatprep.mubr.f32.mxu0 %v562_v28  ;;  %3676 = vmatprep.subr.bf16.mxu1 %v4901_v36  ;;  %v1055_v36 = vld [vmem:[#allocation10 + $0x8] sm:$0xff] }
 0x1dd   :  { %809 = vmatmul.mubr.f32.gmra.mrb[6].mxu1 %v5927_v1  ;;  %884 = vmatmul.mubr.f32.gmra.mrb[10].mxu0 %v5927_v1 }
 0x1de   :  { %3678 = vmatpush3.bf16.msra.mxu1 %v4909_v9  ;;  %952 = vmatprep.mubr.f32.mxu1 %v575_v53  ;;  %v1060_v9 = vld [vmem:[#allocation10 + $0x30] sm:$0xff] }
 0x1df   :  { %3680 = vmatprep.subr.bf16.mxu1 %v4913_v55  ;;  %v5072_v1 = vpack.c.bf16 %v1060_v9, %v1055_v36  ;;  %v1054_v55 = vld [vmem:[#allocation10] sm:$0xff]  ;;  %v1096_v53 = vld [vmem:[#allocation10 + $0x150] sm:$0xff]  ;;  %v1101_v36 = vld [vmem:[#allocation10 + $0x178] sm:$0xff]  ;;  %v5125_v9 = vpack.c.bf16 %v1102_v17, %v1097_v25 }
 0x1e0   :  { %v1131_v25 = vld [vmem:[#allocation10 + $0x268] sm:$0xff] }
 0x1e1   :  { %3704 = vmatprep.subr.bf16.mxu0 %v5072_v1 }
 0x1e2   :  { %3682 = vmatpush3.bf16.msra.mxu1 %v4919_v16  ;;  %v1059_v16 = vld [vmem:[#allocation10 + $0x28] sm:$0xff] }
 0x1e3   :  { %3684 = vmatprep.subr.bf16.mxu1 %v4923_v37  ;;  %v1057_v37 = vld [vmem:[#allocation10 + $0x18] sm:$0xff] }
 0x1e6   :  { %3686 = vmatpush3.bf16.msra.mxu1 %v4930_v7  ;;  %v5074_v7 = vpack.c.bf16 %v1059_v16, %v1054_v55  ;;  %v5127_v55 = vpack.c.bf16 %v1101_v36, %v1096_v53  ;;  %v1105_v16 = vld [vmem:[#allocation10 + $0x198] sm:$0xff]  ;;  %v5163_v53 = vpack.c.bf16 %v1131_v25, %v1126_v4  ;;  %v1135_v36 = vld [vmem:[#allocation10 + $0x288] sm:$0xff] }
 0x1e7   :  { %3688 = vmatprep.subr.bf16.mxu1 %v4933_v35  ;;  %v1062_v35 = vld [vmem:[#allocation10 + $0x40] sm:$0xff]  ;;  %v1155_v25 = vld [vmem:[#allocation10 + $0x328] sm:$0xff] }
 0x1e8   :  { %3706 = vmatpush1.bf16.msra.mxu0 %v5074_v7  ;;  %5951 = vst [vmem:[#allocation20_spill] sm:$0xff] %v5163_v53 }
 0x1ea   :  { %3690 = vmatpush3.bf16.msra.mxu1 %v4939_v11  ;;  %v1056_v11 = vld [vmem:[#allocation10 + $0x10] sm:$0xff] }
 0x1eb   :  { %3692 = vmatprep.subr.bf16.mxu1 %v4942_v12  ;;  %v1061_v12 = vld [vmem:[#allocation10 + $0x38] sm:$0xff] }
 0x1ee   :  { %3694 = vmatpush3.bf16.msra.mxu1 %v4947_v18  ;;  %v5077_v18 = vpack.c.bf16 %v1062_v35, %v1057_v37  ;;  %v1110_v37 = vld [vmem:[#allocation10 + $0x1c0] sm:$0xff] }
 0x1ef   :  { %3696 = vmatprep.subr.bf16.mxu1 %v4950_v20  ;;  %v5079_v20 = vpack.c.bf16 %v1061_v12, %v1056_v11  ;;  %v5131_v35 = vpack.c.bf16 %v1110_v37, %v1105_v16  ;;  %v1104_v11 = vld [vmem:[#allocation10 + $0x190] sm:$0xff]  ;;  %v1109_v12 = vld [vmem:[#allocation10 + $0x1b8] sm:$0xff] }
 0x1f0   :  { %v1140_v16 = vld [vmem:[#allocation10 + $0x2b0] sm:$0xff] }
 0x1f1   :  { %v5167_v37 = vpack.c.bf16 %v1140_v16, %v1135_v36  ;;  %v1160_v36 = vld [vmem:[#allocation10 + $0x350] sm:$0xff]  ;;  %v1154_v16 = vld [vmem:[#allocation10 + $0x320] sm:$0xff] }
 0x1f2   :  { %3698 = vmatpush3.bf16.msra.mxu1 %v4955_v30  ;;  %v1065_v30 = vld [vmem:[#allocation10 + $0x58] sm:$0xff] }
 0x1f3   :  { %3700 = vmatprep.subr.bf16.mxu1 %v4958_v34  ;;  %v1070_v34 = vld [vmem:[#allocation10 + $0x80] sm:$0xff] }
 0x1f6   :  { %3702 = vmatpush3.bf16.msra.mxu1 %v4963_v43  ;;  %v5083_v43 = vpack.c.bf16 %v1070_v34, %v1065_v30  ;;  %v1107_v30 = vld [vmem:[#allocation10 + $0x1a8] sm:$0xff]  ;;  %v5134_v34 = vpack.c.bf16 %v1109_v12, %v1104_v11  ;;  %v1134_v11 = vld [vmem:[#allocation10 + $0x280] sm:$0xff] }
 0x1f7   :  { %3768 = vmatprep.subr.bf16.mxu1 %v5077_v18  ;;  %v1139_v12 = vld [vmem:[#allocation10 + $0x2a8] sm:$0xff] }
 0x1f8   :  { %3708 = vmatprep.subr.bf16.mxu0 %v5083_v43 }
 0x1f9   :  { %953 = vmatmul.mubr.f32.vlgmr.msra.gmra.mrb[8].mxu1 %v5031_v63  ;;  %v1064_v63 = vld [vmem:[#allocation10 + $0x50] sm:$0xff] }
 0x1fa   :  { %956 = vmatprep.mubr.f32.mxu1 %v562_v28  ;;  %3770 = vmatpush1.bf16.msra.mxu1 %v5079_v20  ;;  %v5086_v0 = vpack.c.bf16 %v1069_v48, %v1064_v63  ;;  %v1100_v28 = vld [vmem:[#allocation10 + $0x170] sm:$0xff]  ;;  %v1106_v48 = vld [vmem:[#allocation10 + $0x1a0] sm:$0xff] }
 0x1fb   :  { %3772 = vmatprep.subr.bf16.mxu1 %v5089_v27  ;;  %v5119_v51 = vpack.c.bf16 %v1100_v28, %v1095_v19  ;;  %v1112_v63 = vld [vmem:[#allocation10 + $0x1d0] sm:$0xff]  ;;  %v5139_v14 = vpack.c.bf16 %v1111_v13, %v1106_v48  ;;  %v1127_v19 = vld [vmem:[#allocation10 + $0x248] sm:$0xff]  ;;  %v5158_v28 = vpack.c.bf16 %v1129_v59, %v1124_v38  ;;  %v1142_v48 = vld [vmem:[#allocation10 + $0x2c0] sm:$0xff] }
 0x1fc   :  { %3710 = vmatpush1.bf16.msra.mxu0 %v5086_v0  ;;  %v5137_v8 = vpack.c.bf16 %v1112_v63, %v1107_v30  ;;  %v5161_v17 = vpack.c.bf16 %v1132_v61, %v1127_v19  ;;  %v1137_v30 = vld [vmem:[#allocation10 + $0x298] sm:$0xff]  ;;  %v5170_v63 = vpack.c.bf16 %v1139_v12, %v1134_v11  ;;  %v1136_v13 = vld [vmem:[#allocation10 + $0x290] sm:$0xff]  ;;  %v1146_v59 = vld [vmem:[#allocation10 + $0x2e0] sm:$0xff]  ;;  %v5190_v11 = vpack.c.bf16 %v1160_v36, %v1155_v25 }
 0x1fd   :  { %957 = vmatmul.mubr.f32.gmra.mrb[10].mxu1 %v5069_v33  ;;  %3712 = vmatprep.subr.bf16.mxu0 %v5095_v47  ;;  %5947 = vst [vmem:[#allocation29_spill] sm:$0xff] %v5139_v14  ;;  %v5173_v39 = vpack.c.bf16 %v1142_v48, %v1137_v30  ;;  %v5175_v49 = vpack.c.bf16 %v1141_v24, %v1136_v13  ;;  %v1152_v38 = vld [vmem:[#allocation10 + $0x310] sm:$0xff]  ;;  %v1151_v19 = vld [vmem:[#allocation10 + $0x308] sm:$0xff]  ;;  %v1157_v30 = vld [vmem:[#allocation10 + $0x338] sm:$0xff] }
 0x1fe   :  { %3774 = vmatpush1.bf16.msra.mxu1 %v5091_v32  ;;  %5950 = vst [vmem:[#allocation32_spill] sm:$0xff] %v5161_v17  ;;  %v5185_v61 = vpack.c.bf16 %v1152_v38, %v1147_v58  ;;  %v5187_v4 = vpack.c.bf16 %v1151_v19, %v1146_v59  ;;  %v1159_v12 = vld [vmem:[#allocation10 + $0x348] sm:$0xff]  ;;  %v1162_v48 = vld [vmem:[#allocation10 + $0x360] sm:$0xff]  ;;  %v1164_v38 = vld [vmem:[#allocation10 + $0x370] sm:$0xff] }
 0x1ff   :  { %3776 = vmatprep.subr.bf16.mxu1 %v5101_v15  ;;  %5952 = vst [vmem:[#allocation21_spill] sm:$0xff] %v5173_v39  ;;  %5953 = vst [vmem:[#allocation22_spill] sm:$0xff] %v5175_v49  ;;  %v5193_v13 = vpack.c.bf16 %v1159_v12, %v1154_v16  ;;  %v5195_v24 = vpack.c.bf16 %v1162_v48, %v1157_v30  ;;  %v1170_v58 = vld [vmem:[#allocation10 + $0x3a0] sm:$0xff]  ;;  %v1169_v59 = vld [vmem:[#allocation10 + $0x398] sm:$0xff] }
 0x200   :  { %3714 = vmatpush1.bf16.msra.mxu0 %v5098_v62  ;;  %5954 = vst [vmem:[#allocation23_spill] sm:$0xff] %v5185_v61  ;;  %5955 = vst [vmem:[#allocation24_spill] sm:$0xff] %v5187_v4  ;;  %v5202_v19 = vpack.c.bf16 %v1170_v58, %v1165_v10  ;;  %v1167_v25 = vld [vmem:[#allocation10 + $0x388] sm:$0xff]  ;;  %v1172_v36 = vld [vmem:[#allocation10 + $0x3b0] sm:$0xff]  ;;  %v5205_v12 = vpack.c.bf16 %v1169_v59, %v1164_v38 }
 0x201   :  { %3716 = vmatprep.subr.bf16.mxu0 %v5107_v40  ;;  %5956 = vst [vmem:[#allocation25_spill] sm:$0xff] %v5195_v24  ;;  %v1166_v16 = vld [vmem:[#allocation10 + $0x380] sm:$0xff]  ;;  %v5207_v30 = vpack.c.bf16 %v1172_v36, %v1167_v25  ;;  %v1171_v48 = vld [vmem:[#allocation10 + $0x3a8] sm:$0xff]  ;;  %v1177_v10 = vld [vmem:[#allocation10 + $0x3d8] sm:$0xff] }
 0x202   :  { %3778 = vmatpush1.bf16.msra.mxu1 %v5103_v22  ;;  %v5213_v58 = vpack.c.bf16 %v1171_v48, %v1166_v16  ;;  %v1181_v59 = vld [vmem:[#allocation10 + $0x3f8] sm:$0xff]  ;;  %v1190_v36 = vld [vmem:[#allocation10 + $0x440] sm:$0xff]  ;;  %v1184_v16 = vld [vmem:[#allocation10 + $0x410] sm:$0xff] }
 0x203   :  { %3780 = vmatprep.subr.bf16.mxu1 %v5113_v50  ;;  %5958 = vst [vmem:[#allocation27_spill] sm:$0xff] %v5207_v30  ;;  %v1185_v25 = vld [vmem:[#allocation10 + $0x418] sm:$0xff] }
 0x204   :  { %3718 = vmatpush1.bf16.msra.mxu0 %v5110_v21  ;;  %5959 = vst [vmem:[#allocation30_spill] sm:$0xff] %v5213_v58  ;;  %v1189_v48 = vld [vmem:[#allocation10 + $0x438] sm:$0xff] }
 0x205   :  { %3720 = vmatprep.subr.bf16.mxu0 %v5119_v51 }
 0x206   :  { %3782 = vmatpush1.bf16.msra.mxu1 %v5115_v29 }
 0x207   :  { %3784 = vmatprep.subr.bf16.mxu1 %v5125_v9 }
 0x208   :  { %3722 = vmatpush1.bf16.msra.mxu0 %v5122_v2 }
 0x209   :  { %3724 = vmatprep.subr.bf16.mxu0 %v5131_v35 }
 0x20a   :  { %3786 = vmatpush1.bf16.msra.mxu1 %v5127_v55 }
 0x20b   :  { %3788 = vmatprep.subr.bf16.mxu1 %v5137_v8 }
 0x20c   :  { %3726 = vmatpush1.bf16.msra.mxu0 %v5134_v34 }
 0x20d   :  { %3728 = vmatprep.subr.bf16.mxu0 %v5143_v45 }
 0x20e   :  { %3790 = vmatpush1.bf16.msra.mxu1 %v5139_v14 }
 0x20f   :  { %3792 = vmatprep.subr.bf16.mxu1 %v5149_v26 }
 0x210   :  { %3730 = vmatpush1.bf16.msra.mxu0 %v5146_v5 }
 0x211   :  { %3732 = vmatprep.subr.bf16.mxu0 %v5155_v46 }
 0x212   :  { %3794 = vmatpush1.bf16.msra.mxu1 %v5151_v56 }
 0x213   :  { %3796 = vmatprep.subr.bf16.mxu1 %v5161_v17  ;;  %v5231_v17 = vpack.c.bf16 %v1189_v48, %v1184_v16  ;;  %v1196_v16 = vld [vmem:[#allocation10 + $0x470] sm:$0xff]  ;;  %v1201_v48 = vld [vmem:[#allocation10 + $0x498] sm:$0xff] }
 0x214   :  { %3734 = vmatpush1.bf16.msra.mxu0 %v5158_v28 }
 0x215   :  { %3736 = vmatprep.subr.bf16.mxu0 %v5167_v37  ;;  %5963 = vst [vmem:[#allocation35_spill] sm:$0xff] %v5231_v17 }
 0x216   :  { %3798 = vmatpush1.bf16.msra.mxu1 %v5163_v53 }
 0x217   :  { %3800 = vmatprep.subr.bf16.mxu1 %v5173_v39  ;;  %v1192_v39 = vld [vmem:[#allocation10 + $0x450] sm:$0xff] }
 0x218   :  { %3738 = vmatpush1.bf16.msra.mxu0 %v5170_v63  ;;  %v5228_v53 = vpack.c.bf16 %v1192_v39, %v1187_v54  ;;  %v1205_v39 = vld [vmem:[#allocation10 + $0x4b8] sm:$0xff]  ;;  %v1210_v54 = vld [vmem:[#allocation10 + $0x4e0] sm:$0xff] }
 0x219   :  { %3740 = vmatprep.subr.bf16.mxu0 %v5179_v6  ;;  %v5246_v14 = vpack.c.bf16 %v1210_v54, %v1205_v39  ;;  %v1138_v54 = vld [vmem:[#allocation10 + $0x2a0] sm:$0xff] }
 0x21a   :  { %3802 = vmatpush1.bf16.msra.mxu1 %v5175_v49  ;;  %v1176_v49 = vld [vmem:[#allocation10 + $0x3d0] sm:$0xff]  ;;  %5962 = vst [vmem:[#allocation34_spill] sm:$0xff] %v5228_v53 }
 0x21b   :  { %3804 = vmatprep.subr.bf16.mxu1 %v5185_v61  ;;  %v1182_v61 = vld [vmem:[#allocation10 + $0x400] sm:$0xff]  ;;  %5968 = vst [vmem:[#allocation40_spill] sm:$0xff] %v5246_v14 }
 0x21c   :  { %3742 = vmatpush1.bf16.msra.mxu0 %v5182_v3  ;;  %v5216_v38 = vpack.c.bf16 %v1182_v61, %v1177_v10  ;;  %v1195_v61 = vld [vmem:[#allocation10 + $0x468] sm:$0xff]  ;;  %v1200_v10 = vld [vmem:[#allocation10 + $0x490] sm:$0xff] }
 0x21d   :  { %3744 = vmatprep.subr.bf16.mxu0 %v5190_v11  ;;  %v5234_v56 = vpack.c.bf16 %v1200_v10, %v1195_v61  ;;  %v1207_v61 = vld [vmem:[#allocation10 + $0x4c8] sm:$0xff]  ;;  %v1212_v10 = vld [vmem:[#allocation10 + $0x4f0] sm:$0xff] }
 0x21e   :  { %3806 = vmatpush1.bf16.msra.mxu1 %v5187_v4  ;;  %v1174_v4 = vld [vmem:[#allocation10 + $0x3c0] sm:$0xff]  ;;  %5960 = vst [vmem:[#allocation31_spill] sm:$0xff] %v5216_v38 }
 0x21f   :  { %3808 = vmatprep.subr.bf16.mxu1 %v5195_v24  ;;  %v1179_v24 = vld [vmem:[#allocation10 + $0x3e8] sm:$0xff]  ;;  %5964 = vst [vmem:[#allocation36_spill] sm:$0xff] %v5234_v56 }
 0x220   :  { %3746 = vmatpush1.bf16.msra.mxu0 %v5193_v13  ;;  %v5219_v31 = vpack.c.bf16 %v1179_v24, %v1174_v4  ;;  %v1186_v4 = vld [vmem:[#allocation10 + $0x420] sm:$0xff]  ;;  %v1191_v24 = vld [vmem:[#allocation10 + $0x448] sm:$0xff] }
 0x221   :  { %3748 = vmatprep.subr.bf16.mxu0 %v5202_v19 }
 0x222   :  { %3810 = vmatpush1.bf16.msra.mxu1 %v5199_v23  ;;  %v5222_v23 = vpack.c.bf16 %v1190_v36, %v1185_v25  ;;  %v1197_v25 = vld [vmem:[#allocation10 + $0x478] sm:$0xff]  ;;  %v1202_v36 = vld [vmem:[#allocation10 + $0x4a0] sm:$0xff] }
 0x223   :  { %3812 = vmatprep.subr.bf16.mxu1 %v5207_v30  ;;  %v5225_v30 = vpack.c.bf16 %v1181_v59, %v1176_v49  ;;  %v1194_v49 = vld [vmem:[#allocation10 + $0x460] sm:$0xff]  ;;  %v1199_v59 = vld [vmem:[#allocation10 + $0x488] sm:$0xff] }
 0x224   :  { %3750 = vmatpush1.bf16.msra.mxu0 %v5205_v12  ;;  %v5243_v26 = vpack.c.bf16 %v1199_v59, %v1194_v49  ;;  %v962_v59 = vld [vmem:[%s5826_s3] sm:$0xf] }
 0x225   :  { %3752 = vmatprep.subr.bf16.mxu0 %v5210_v57  ;;  %5961 = vst [vmem:[#allocation33_spill] sm:$0xff] %v5225_v30 }
 0x226   :  { %3814 = vmatpush1.bf16.msra.mxu1 %v5213_v58  ;;  %v5237_v58 = vpack.c.bf16 %v1191_v24, %v1186_v4  ;;  %5967 = vst [vmem:[#allocation39_spill] sm:$0xff] %v5243_v26  ;;  %v1204_v4 = vld [vmem:[#allocation10 + $0x4b0] sm:$0xff]  ;;  %v1209_v24 = vld [vmem:[#allocation10 + $0x4d8] sm:$0xff] }
 0x227   :  { %3816 = vmatprep.subr.bf16.mxu1 %v5216_v38  ;;  %v5240_v38 = vpack.c.bf16 %v1202_v36, %v1197_v25  ;;  %v5252_v25 = vpack.c.bf16 %v1212_v10, %v1207_v61  ;;  %v1206_v36 = vld [vmem:[#allocation10 + $0x4c0] sm:$0xff]  ;;  %v5255_v49 = vpack.c.bf16 %v1209_v24, %v1204_v4  ;;  %v1512_v24 = vld [vmem:[#allocation7 + $0x3] sm:$0x1] }
 0x228   :  { %3754 = vmatpush1.bf16.msra.mxu0 %v5219_v31  ;;  %5965 = vst [vmem:[#allocation37_spill] sm:$0xff] %v5237_v58 }
 0x229   :  { %3756 = vmatprep.subr.bf16.mxu0 %v5222_v23  ;;  %5966 = vst [vmem:[#allocation38_spill] sm:$0xff] %v5240_v38  ;;  %5970 = vst [vmem:[#allocation42_spill] sm:$0xff] %v5252_v25 }
 0x22a   :  { %3818 = vmatpush1.bf16.msra.mxu1 %v5225_v30  ;;  %v5249_v30 = vpack.c.bf16 %v1201_v48, %v1196_v16  ;;  %5971 = vst [vmem:[#allocation43_spill] sm:$0xff] %v5255_v49  ;;  %v1143_v16 = vld [vmem:[#allocation10 + $0x2c8] sm:$0xff]  ;;  %v967_v48 = vrot.slane %v962_v59, %v5025_v44 }
 0x22b   :  { %3820 = vmatprep.subr.bf16.mxu1 %v5228_v53  ;;  %v1211_v53 = vld [vmem:[#allocation10 + $0x4e8] sm:$0xff]  ;;  %v5267_v61 = vpack.c.bf16 %v1143_v16, %v1138_v54 }
 0x22c   :  { %3758 = vmatpush1.bf16.msra.mxu0 %v5231_v17  ;;  %5969 = vst [vmem:[#allocation41_spill] sm:$0xff] %v5249_v30  ;;  %v5262_v39 = vpack.c.bf16 %v1211_v53, %v1206_v36  ;;  %v5272_v53 = vld [vmem:[#allocation4] sm:$0xff] }
 0x22d   :  { %3760 = vmatprep.subr.bf16.mxu0 %v5234_v56  ;;  %5973 = vst [vmem:[#allocation45_spill] sm:$0xff] %v5267_v61  ;;  %1523 = vst [vmem:[#allocation4] sm:$0x1] %v1512_v24 }
 0x22e   :  { %3822 = vmatpush1.bf16.msra.mxu1 %v5237_v58  ;;  %5972 = vst [vmem:[#allocation44_spill] sm:$0xff] %v5262_v39 }
 0x22f   :  { %3824 = vmatprep.subr.bf16.mxu1 %v5240_v38 }
 0x230   :  { %3762 = vmatpush1.bf16.msra.mxu0 %v5243_v26 }
 0x231   :  { %3764 = vmatprep.subr.bf16.mxu0 %v5246_v14 }
 0x232   :  { %3826 = vmatpush1.bf16.msra.mxu1 %v5249_v30 }
 0x233   :  { %3828 = vmatprep.subr.bf16.mxu1 %v5252_v25 }
 0x234   :  { %3766 = vmatpush1.bf16.msra.mxu0 %v5255_v49 }
 0x235   :  { %3832 = vmatprep.subr.bf16.mxu0 %v5267_v61 }
 0x236   :  { %3830 = vmatpush1.bf16.msra.mxu1 %v5262_v39  ;;  %v975_v39 = vrot.slane %v962_v59, %v5033_v52 }
 0x237   :  { %3864 = vmatprep.subr.bf16.mxu1 %v5072_v1 }
 0x2ac   :  { %v804_v10 = vpop.f32.mrb[4].mxu1  ;;  %v879_v4 = vpop.f32.mrb[8].mxu0 }
 0x2ad   :  { %v984_v36 = vadd.f32 %v967_v48, %v804_v10  ;;  %v806_v25 = vpop.f32.mrb[5].mxu1  ;;  %v881_v30 = vpop.f32.mrb[9].mxu0  ;;  %v986_v61 = vadd.f32 %v975_v39, %v879_v4  ;;  %v979_v48 = vrot.slane %v962_v59, %v5036_v41 }
 0x2af   :  { %v3078_v38 = vmul.f32 -1.442695, %v984_v36  ;;  %v987_v36 = vadd.f32 %v979_v48, %v881_v30  ;;  %v564_v30 = vld [vmem:[#allocation2 + $0x8] sm:$0xff] }
 0x2b0   :  { %v810_v58 = vpop.f32.mrb[6].mxu1  ;;  %v885_v49 = vpop.f32.mrb[10].mxu0 }
 0x2b1   :  { %4395 = vpow2.f32 %v3078_v38  ;;  %v811_v54 = vpop.f32.mrb[7].mxu1  ;;  %v886_v16 = vpop.f32.mrb[11].mxu0  ;;  %v1012_v38 = vrot.slane %v987_v36, %v5025_v44 }
 0x2b2   :  { %4397 = vtanh.f32 %v986_v61  ;;  %v971_v61 = vrot.slane %v962_v59, %v5046_v60 }
 0x2bb   :  { %v4396_v14 = vpop.eup %4395 }
 0x2bc   :  { %v991_v1 = vadd.f32 1.0, %v4396_v14  ;;  %v4398_v26 = vpop.eup %4397 }
 0x2be   :  { %4399 = vrcp.f32 %v991_v1 }
 0x2c8   :  { %v4400_v56 = vpop.eup %4399 }
 0x2c9   :  { %v1021_v17 = vmul.f32 %v4400_v56, %v4398_v26  ;;  %v985_v26 = vadd.f32 %v971_v61, %v806_v25 }
 0x2cb   :  { %v3079_v56 = vmul.f32 -1.442695, %v985_v26 }
 0x2cc   :  { %v3173_v10 = vpop.f32.mrb[8].mxu1 }
 0x2cd   :  { %v3174_v24 = vpop.f32.mrb[9].mxu1 }
 0x2d0   :  { %v3176_v58 = vpop.f32.mrb[10].mxu1 }
 0x2d1   :  { %v3177_v49 = vpop.f32.mrb[11].mxu1 }
 0x2d2   :  { %v3178_v54 = vadd.f32 %v3177_v49, %v3176_v58 }
 0x2d4   :  { %v1008_v16 = vadd.f32 %v3178_v54, %v5042_v42 }
 0x2d6   :  { %v1013_v39 = vadd.f32 %v1012_v38, %v1008_v16 }
 0x2d8   :  { %v3081_v4 = vmul.f32 -1.442695, %v1013_v39 }
 0x2da   :  { %4401 = vpow2.f32 %v3081_v4 }
 0x2e4   :  { %v4402_v14 = vpop.eup %4401 }
 0x2e5   :  { %v1017_v1 = vadd.f32 1.0, %v4402_v14 }
 0x2e7   :  { %4403 = vrcp.f32 %v1017_v1 }
 0x2e8   :  { %4405 = vpow2.f32 %v3079_v56 }
 0x2f1   :  { %v4404_v10 = vpop.eup %4403 }
 0x2f2   :  { %v1020_v48 = vmul.f32 %v4404_v10, %v564_v30  ;;  %v4406_v58 = vpop.eup %4405  ;;  %v1063_v10 = vld [vmem:[#allocation10 + $0x48] sm:$0xff]  ;;  %v1148_v30 = vld [vmem:[#allocation10 + $0x2f0] sm:$0xff] }
 0x2f3   :  { %v997_v38 = vadd.f32 1.0, %v4406_v58 }
 0x2f4   :  { %v1022_v24 = vrot.slane %v1020_v48, 4 }
 0x2f5   :  { %4407 = vrcp.f32 %v997_v38  ;;  %v1158_v38 = vld [vmem:[#allocation10 + $0x340] sm:$0xff] }
 0x2f6   :  { %v1023_v41 = vadd.f32 %v1022_v24, %v1020_v48  ;;  %v1153_v48 = vld [vmem:[#allocation10 + $0x318] sm:$0xff] }
 0x2f7   :  { %v5285_v58 = vpack.c.bf16 %v1153_v48, %v1148_v30  ;;  %v1098_v30 = vld [vmem:[#allocation10 + $0x160] sm:$0xff]  ;;  %v1103_v48 = vld [vmem:[#allocation10 + $0x188] sm:$0xff] }
 0x2f8   :  { %v1024_v36 = vrot.slane %v1023_v41, 2 }
 0x2fa   :  { %v1025_v42 = vadd.f32 %v1024_v36, %v1023_v41 }
 0x2fc   :  { %v1026_v49 = vrot.slane %v1025_v42, 1 }
 0x2fe   :  { %v1027_v54 = vadd.f32 %v1026_v49, %v1025_v42  ;;  %v1068_v42 = vld [vmem:[#allocation10 + $0x70] sm:$0xff]  ;;  %v1073_v49 = vld [vmem:[#allocation10 + $0x98] sm:$0xff] }
 0x2ff   :  { %v4408_v25 = vpop.eup %4407 }
 0x300   :  { %v1028_v16 = vadd.f32 %v1027_v54, %v1021_v17  ;;  %v1058_v17 = vld [vmem:[#allocation10 + $0x20] sm:$0xff]  ;;  %v1163_v54 = vld [vmem:[#allocation10 + $0x368] sm:$0xff] }
 0x301   :  { %v5283_v24 = vpack.c.bf16 %v1063_v10, %v1058_v17  ;;  %v1178_v17 = vld [vmem:[#allocation10 + $0x3e0] sm:$0xff]  ;;  %v1183_v10 = vld [vmem:[#allocation10 + $0x408] sm:$0xff] }
 0x302   :  { %4409 = vtanh.f32 %v1028_v16  ;;  %1033 = vst [vmem:[%s1032_s10] sm:$0x1] %v1028_v16  ;;  %v5291_v16 = vpack.c.bf16 %v1073_v49, %v1068_v42  ;;  %v1193_v42 = vld [vmem:[#allocation10 + $0x458] sm:$0xff]  ;;  %v1108_v49 = vld [vmem:[#allocation10 + $0x1b0] sm:$0xff] }
 0x30c   :  { %v4410_v59 = vpop.eup %4409 }
 0x30d   :  { %v1030_v39 = vmul.f32 %v4410_v59, %v4408_v25  ;;  %v5295_v25 = vpack.c.bf16 %v1163_v54, %v1158_v38  ;;  %v1078_v59 = vld [vmem:[#allocation10 + $0xc0] sm:$0xff]  ;;  %v1113_v38 = vld [vmem:[#allocation10 + $0x1d8] sm:$0xff] }
 0x30e   :  { %v1198_v54 = vld [vmem:[#allocation10 + $0x480] sm:$0xff] }
 0x30f   :  { %1035 = vst [vmem:[%s1034_s11] sm:$0x1] %v1030_v39  ;;  %v1083_v39 = vld [vmem:[#allocation10 + $0xe8] sm:$0xff] }
 0x316   :  { %v5279_v4 = vld [vmem:[#allocation3 + $0x10] sm:$0xff] }
 0x317   :  { %v1041_v14 = vrot.slane %v5279_v4, 4 }
 0x319   :  { %v1042_v61 = vadd.f32 %v1041_v14, %v5279_v4  ;;  %v1168_v14 = vld [vmem:[#allocation10 + $0x390] sm:$0xff] }
 0x31b   :  { %v1043_v41 = vrot.slane %v1042_v61, 2 }
 0x31d   :  { %v1044_v1 = vadd.f32 %v1043_v41, %v1042_v61  ;;  %v1173_v61 = vld [vmem:[#allocation10 + $0x3b8] sm:$0xff]  ;;  %v5301_v41 = vpack.c.bf16 %v1083_v39, %v1078_v59  ;;  %v1203_v59 = vld [vmem:[#allocation10 + $0x4a8] sm:$0xff]  ;;  %v1118_v39 = vld [vmem:[#allocation10 + $0x200] sm:$0xff] }
 0x31f   :  { %v1045_v26 = vrot.slane %v1044_v1, 1 }
 0x321   :  { %v1046_v56 = vadd.f32 %v1045_v26, %v1044_v1  ;;  %v5304_v1 = vpack.c.bf16 %v1173_v61, %v1168_v14  ;;  %v1088_v26 = vld [vmem:[#allocation10 + $0x110] sm:$0xff]  ;;  %v1123_v14 = vld [vmem:[#allocation10 + $0x228] sm:$0xff] }
 0x322   :  { %v1208_v61 = vld [vmem:[#allocation10 + $0x4d0] sm:$0xff] }
 0x323   :  { %1048 = vst [vmem:[#allocation4 + $0x8] sm:$0x1] %v1046_v56  ;;  %v1093_v56 = vld [vmem:[#allocation10 + $0x138] sm:$0xff] }
 0x32a   :  { %v1051_v36 = vld [vmem:[#allocation4 + $0x8] sm:$0xff] }
 0x32b   :  { %1278 = vmatprep.mubr.f32.mxu0 %v1051_v36  ;;  %1353 = vmatprep.mubr.f32.mxu1 %v1051_v36 }
 0x32c   :  { %1279 = vmatmul.mubr.f32.vlgmr.msra.gmra.mrb[12].mxu0 %v5272_v53  ;;  %1354 = vmatmul.mubr.f32.vlgmr.msra.gmra.mrb[12].mxu1 %v5272_v53 }
 0x32d   :  { %3834 = vmatpush3.bf16.msra.mxu0 %v5283_v24  ;;  %1284 = vmatprep.mubr.f32.mxu0 %v5279_v4 }
 0x32e   :  { %1359 = vmatprep.mubr.f32.mxu1 %v5279_v4  ;;  %3836 = vmatprep.subr.bf16.mxu0 %v5285_v58 }
 0x32f   :  { %3866 = vmatpush1.bf16.msra.mxu1 %v5074_v7  ;;  %v5310_v7 = vpack.c.bf16 %v1093_v56, %v1088_v26  ;;  %v1213_v26 = vld [vmem:[#allocation10 + $0x4f8] sm:$0xff]  ;;  %v1128_v56 = vld [vmem:[#allocation10 + $0x250] sm:$0xff] }
 0x330   :  { %1285 = vmatmul.mubr.f32.gmra.mrb[14].mxu0 %v5069_v33  ;;  %3868 = vmatprep.subr.bf16.mxu1 %v5083_v43  ;;  %v5313_v43 = vpack.c.bf16 %v1183_v10, %v1178_v17  ;;  %v1133_v17 = vld [vmem:[#allocation10 + $0x278] sm:$0xff] }
 0x331   :  { %3838 = vmatpush3.bf16.msra.mxu0 %v5291_v16  ;;  %1428 = vmatprep.mubr.f32.mxu0 %v1051_v36  ;;  %v1188_v36 = vld [vmem:[#allocation10 + $0x430] sm:$0xff]  ;;  %v5342_v10 = vpack.c.bf16 %v1133_v17, %v1128_v56 }
 0x332   :  { %3840 = vmatprep.subr.bf16.mxu0 %v5295_v25  ;;  %1360 = vmatmul.mubr.f32.gmra.mrb[14].mxu1 %v5069_v33 }
 0x333   :  { %3870 = vmatpush1.bf16.msra.mxu1 %v5086_v0  ;;  %v5318_v0 = vpack.c.bf16 %v1103_v48, %v1098_v30  ;;  %v1988_v30 = vld [vmem:[#allocation7 + $0x4] sm:$0x1] }
 0x334   :  { %3872 = vmatprep.subr.bf16.mxu1 %v5095_v47  ;;  %v5321_v47 = vpack.c.bf16 %v1193_v42, %v1188_v36 }
 0x335   :  { %3842 = vmatpush3.bf16.msra.mxu0 %v5301_v41 }
 0x336   :  { %3844 = vmatprep.subr.bf16.mxu0 %v5304_v1 }
 0x337   :  { %3874 = vmatpush1.bf16.msra.mxu1 %v5098_v62  ;;  %v5326_v62 = vpack.c.bf16 %v1113_v38, %v1108_v49 }
 0x338   :  { %3876 = vmatprep.subr.bf16.mxu1 %v5107_v40  ;;  %v5329_v40 = vpack.c.bf16 %v1203_v59, %v1198_v54 }
 0x339   :  { %3846 = vmatpush3.bf16.msra.mxu0 %v5310_v7 }
 0x33a   :  { %3848 = vmatprep.subr.bf16.mxu0 %v5313_v43 }
 0x33b   :  { %3878 = vmatpush1.bf16.msra.mxu1 %v5110_v21  ;;  %v5334_v21 = vpack.c.bf16 %v1123_v14, %v1118_v39 }
 0x33c   :  { %3880 = vmatprep.subr.bf16.mxu1 %v5119_v51  ;;  %v5337_v51 = vpack.c.bf16 %v1213_v26, %v1208_v61 }
 0x33d   :  { %3850 = vmatpush3.bf16.msra.mxu0 %v5318_v0 }
 0x33e   :  { %3852 = vmatprep.subr.bf16.mxu0 %v5321_v47 }
 0x33f   :  { %3882 = vmatpush1.bf16.msra.mxu1 %v5122_v2  ;;  %v5983_v2 = vld [vmem:[#allocation21_spill] sm:$0xff] }
 0x340   :  { %3884 = vmatprep.subr.bf16.mxu1 %v5131_v35  ;;  %v5986_v35 = vld [vmem:[#allocation22_spill] sm:$0xff] }
 0x341   :  { %3854 = vmatpush3.bf16.msra.mxu0 %v5326_v62 }
 0x342   :  { %3856 = vmatprep.subr.bf16.mxu0 %v5329_v40 }
 0x343   :  { %3886 = vmatpush1.bf16.msra.mxu1 %v5134_v34  ;;  %v5987_v34 = vld [vmem:[#allocation23_spill] sm:$0xff] }
 0x344   :  { %3888 = vmatprep.subr.bf16.mxu1 %v5143_v45  ;;  %v5989_v45 = vld [vmem:[#allocation25_spill] sm:$0xff] }
 0x345   :  { %3858 = vmatpush3.bf16.msra.mxu0 %v5334_v21 }
 0x346   :  { %3860 = vmatprep.subr.bf16.mxu0 %v5337_v51 }
 0x347   :  { %3890 = vmatpush1.bf16.msra.mxu1 %v5146_v5  ;;  %v5990_v5 = vld [vmem:[#allocation26_spill] sm:$0xff] }
 0x348   :  { %3892 = vmatprep.subr.bf16.mxu1 %v5155_v46  ;;  %v5991_v46 = vld [vmem:[#allocation27_spill] sm:$0xff] }
 0x349   :  { %3862 = vmatpush3.bf16.msra.mxu0 %v5342_v10 }
 0x34a   :  { %3928 = vmatprep.subr.bf16.mxu0 %v5077_v18  ;;  %v5975_v18 = vld [vmem:[#allocation18_spill] sm:$0xff] }
 0x34b   :  { %3894 = vmatpush1.bf16.msra.mxu1 %v5158_v28  ;;  %v5992_v28 = vld [vmem:[#allocation30_spill] sm:$0xff] }
 0x34c   :  { %1429 = vmatmul.mubr.f32.vlgmr.msra.gmra.mrb[16].mxu0 %v5272_v53  ;;  %3896 = vmatprep.subr.bf16.mxu1 %v5167_v37  ;;  %v5993_v37 = vld [vmem:[#allocation31_spill] sm:$0xff] }
 0x34d   :  { %1432 = vmatprep.mubr.f32.mxu0 %v5279_v4  ;;  %3930 = vmatpush1.bf16.msra.mxu0 %v5079_v20  ;;  %v5976_v20 = vld [vmem:[#allocation35_spill] sm:$0xff]  ;;  %v5405_v4 = vld [vmem:[#allocation4] sm:$0xff] }
 0x34e   :  { %3932 = vmatprep.subr.bf16.mxu0 %v5089_v27  ;;  %v5977_v27 = vld [vmem:[#allocation36_spill] sm:$0xff]  ;;  %1999 = vst [vmem:[#allocation4] sm:$0x1] %v1988_v30 }
 0x34f   :  { %3898 = vmatpush1.bf16.msra.mxu1 %v5170_v63  ;;  %v5994_v63 = vld [vmem:[#allocation33_spill] sm:$0xff] }
 0x350   :  { %1433 = vmatmul.mubr.f32.gmra.mrb[18].mxu0 %v5069_v33  ;;  %3900 = vmatprep.subr.bf16.mxu1 %v5179_v6  ;;  %v5974_v33 = vld [vmem:[#allocation29_spill] sm:$0xff]  ;;  %v5995_v6 = vld [vmem:[#allocation34_spill] sm:$0xff] }
 0x351   :  { %3934 = vmatpush1.bf16.msra.mxu0 %v5091_v32  ;;  %v5978_v32 = vld [vmem:[#allocation19_spill] sm:$0xff] }
 0x352   :  { %3936 = vmatprep.subr.bf16.mxu0 %v5101_v15  ;;  %v5979_v15 = vld [vmem:[#allocation32_spill] sm:$0xff] }
 0x353   :  { %3902 = vmatpush1.bf16.msra.mxu1 %v5182_v3  ;;  %v5996_v3 = vld [vmem:[#allocation37_spill] sm:$0xff] }
 0x354   :  { %3904 = vmatprep.subr.bf16.mxu1 %v5190_v11  ;;  %v5997_v11 = vld [vmem:[#allocation38_spill] sm:$0xff] }
 0x355   :  { %3938 = vmatpush1.bf16.msra.mxu0 %v5103_v22  ;;  %v5980_v22 = vld [vmem:[#allocation39_spill] sm:$0xff] }
 0x356   :  { %3940 = vmatprep.subr.bf16.mxu0 %v5113_v50  ;;  %v5981_v50 = vld [vmem:[#allocation40_spill] sm:$0xff] }
 0x357   :  { %3906 = vmatpush1.bf16.msra.mxu1 %v5193_v13  ;;  %v5998_v13 = vld [vmem:[#allocation41_spill] sm:$0xff] }
 0x358   :  { %3908 = vmatprep.subr.bf16.mxu1 %v5202_v19  ;;  %v6000_v19 = vld [vmem:[#allocation44_spill] sm:$0xff] }
 0x359   :  { %3942 = vmatpush1.bf16.msra.mxu0 %v5115_v29  ;;  %v5982_v29 = vld [vmem:[#allocation20_spill] sm:$0xff] }
 0x35a   :  { %3944 = vmatprep.subr.bf16.mxu0 %v5125_v9  ;;  %v5984_v9 = vld [vmem:[#allocation43_spill] sm:$0xff] }
 0x35b   :  { %3910 = vmatpush1.bf16.msra.mxu1 %v5205_v12  ;;  %v1438_v12 = vld [vmem:[%s5826_s3] sm:$0xf] }
 0x35c   :  { %3912 = vmatprep.subr.bf16.mxu1 %v5210_v57  ;;  %v1443_v57 = vrot.slane %v1438_v12, %v5025_v44  ;;  %v1451_v14 = vrot.slane %v1438_v12, %v5033_v52 }
 0x35d   :  { %3946 = vmatpush1.bf16.msra.mxu0 %v5127_v55  ;;  %v5985_v55 = vld [vmem:[#allocation45_spill] sm:$0xff] }
 0x35e   :  { %3948 = vmatprep.subr.bf16.mxu0 %v5137_v8  ;;  %v5988_v8 = vld [vmem:[#allocation24_spill] sm:$0xff] }
 0x35f   :  { %3914 = vmatpush1.bf16.msra.mxu1 %v5219_v31 }
 0x360   :  { %3916 = vmatprep.subr.bf16.mxu1 %v5222_v23  ;;  %v5999_v23 = vld [vmem:[#allocation42_spill] sm:$0xff] }
 0x361   :  { %3950 = vmatpush1.bf16.msra.mxu0 %v5974_v33 }
 0x362   :  { %3952 = vmatprep.subr.bf16.mxu0 %v5975_v18 }
 0x363   :  { %3918 = vmatpush1.bf16.msra.mxu1 %v5976_v20  ;;  %v6001_v20 = vld [vmem:[#allocation28_spill] sm:$0xff] }
 0x364   :  { %3920 = vmatprep.subr.bf16.mxu1 %v5977_v27  ;;  %v1455_v27 = vrot.slane %v1438_v12, %v6001_v20 }
 0x365   :  { %3954 = vmatpush1.bf16.msra.mxu0 %v5978_v32 }
 0x366   :  { %3956 = vmatprep.subr.bf16.mxu0 %v5979_v15 }
 0x367   :  { %3922 = vmatpush1.bf16.msra.mxu1 %v5980_v22 }
 0x368   :  { %3924 = vmatprep.subr.bf16.mxu1 %v5981_v50 }
 0x369   :  { %3958 = vmatpush1.bf16.msra.mxu0 %v5982_v29 }
 0x36a   :  { %3960 = vmatprep.subr.bf16.mxu0 %v5983_v2  ;;  %v5412_v2 = vld [vmem:[%s5827_s4] ss:$0 sm:$0xff] }
 0x36b   :  { %3926 = vmatpush1.bf16.msra.mxu1 %v5984_v9 }
 0x36c   :  { %3992 = vmatprep.subr.bf16.mxu1 %v5985_v55 }
 0x36d   :  { %3962 = vmatpush1.bf16.msra.mxu0 %v5986_v35 }
 0x36e   :  { %3964 = vmatprep.subr.bf16.mxu0 %v5987_v34 }
 0x371   :  { %3966 = vmatpush1.bf16.msra.mxu0 %v5988_v8 }
 0x372   :  { %3968 = vmatprep.subr.bf16.mxu0 %v5989_v45 }
 0x375   :  { %3970 = vmatpush1.bf16.msra.mxu0 %v5990_v5  ;;  %v1447_v5 = vrot.slane %v1438_v12, %v5046_v60 }
 0x376   :  { %3972 = vmatprep.subr.bf16.mxu0 %v5991_v46 }
 0x379   :  { %3974 = vmatpush1.bf16.msra.mxu0 %v5992_v28 }
 0x37a   :  { %3976 = vmatprep.subr.bf16.mxu0 %v5993_v37 }
 0x37d   :  { %3978 = vmatpush1.bf16.msra.mxu0 %v5994_v63 }
 0x37e   :  { %3980 = vmatprep.subr.bf16.mxu0 %v5995_v6  ;;  %v1040_v6 = vld [vmem:[#allocation2 + $0x10] sm:$0xff] }
 0x381   :  { %3982 = vmatpush1.bf16.msra.mxu0 %v5996_v3 }
 0x382   :  { %3984 = vmatprep.subr.bf16.mxu0 %v5997_v11 }
 0x385   :  { %3986 = vmatpush1.bf16.msra.mxu0 %v5998_v13 }
 0x386   :  { %3988 = vmatprep.subr.bf16.mxu0 %v5999_v23 }
 0x389   :  { %3990 = vmatpush1.bf16.msra.mxu0 %v6000_v19 }
 0x3ff   :  { %v1280_v31 = vpop.f32.mrb[12].mxu0  ;;  %v1355_v53 = vpop.f32.mrb[12].mxu1 }
 0x400   :  { %v1460_v48 = vadd.f32 %v1443_v57, %v1280_v31  ;;  %v1282_v36 = vpop.f32.mrb[13].mxu0  ;;  %v1357_v42 = vpop.f32.mrb[13].mxu1  ;;  %v1462_v61 = vadd.f32 %v1451_v14, %v1355_v53 }
 0x401   :  { %v1463_v22 = vadd.f32 %v1455_v27, %v1357_v42  ;;  %v1461_v28 = vadd.f32 %v1447_v5, %v1282_v36  ;;  %v2024_v27 = vld [vmem:[#allocation10 + $0x90] sm:$0xff]  ;;  %v2034_v5 = vld [vmem:[#allocation10 + $0xe0] sm:$0xff] }
 0x402   :  { %v3083_v49 = vmul.f32 -1.442695, %v1460_v48 }
 0x403   :  { %v1286_v38 = vpop.f32.mrb[14].mxu0  ;;  %v1488_v9 = vrot.slane %v1463_v22, %v5025_v44  ;;  %v3084_v37 = vmul.f32 -1.442695, %v1461_v28  ;;  %v2033_v28 = vld [vmem:[#allocation10 + $0xd8] sm:$0xff] }
 0x404   :  { %4411 = vpow2.f32 %v3083_v49  ;;  %v1287_v54 = vpop.f32.mrb[15].mxu0 }
 0x405   :  { %v1361_v59 = vpop.f32.mrb[14].mxu1  ;;  %4413 = vtanh.f32 %v1462_v61 }
 0x406   :  { %v1362_v39 = vpop.f32.mrb[15].mxu1 }
 0x40e   :  { %v4412_v26 = vpop.eup %4411 }
 0x40f   :  { %v1467_v56 = vadd.f32 1.0, %v4412_v26  ;;  %v4414_v17 = vpop.eup %4413 }
 0x411   :  { %4415 = vrcp.f32 %v1467_v56  ;;  %v5421_v56 = vld [vmem:[#allocation4 + $0x10] sm:$0xff] }
 0x41b   :  { %v4416_v33 = vpop.eup %4415 }
 0x41c   :  { %v1497_v18 = vmul.f32 %v4416_v33, %v4414_v17  ;;  %v2021_v17 = vld [vmem:[#allocation10 + $0x78] sm:$0xff]  ;;  %v2019_v33 = vld [vmem:[#allocation10 + $0x68] sm:$0xff] }
 0x41d   :  { %v5457_v22 = vpack.c.bf16 %v2024_v27, %v2019_v33 }
 0x41f   :  { %v3211_v32 = vpop.f32.mrb[16].mxu0 }
 0x420   :  { %v3212_v15 = vpop.f32.mrb[17].mxu0  ;;  %v2018_v32 = vld [vmem:[#allocation10 + $0x60] sm:$0xff] }
 0x421   :  { %v2023_v15 = vld [vmem:[#allocation10 + $0x88] sm:$0xff] }
 0x423   :  { %v3214_v50 = vpop.f32.mrb[18].mxu0 }
 0x424   :  { %v3215_v29 = vpop.f32.mrb[19].mxu0 }
 0x425   :  { %v3216_v55 = vadd.f32 %v3215_v29, %v3214_v50  ;;  %v5459_v50 = vpack.c.bf16 %v2023_v15, %v2018_v32  ;;  %v2027_v29 = vld [vmem:[#allocation10 + $0xa8] sm:$0xff]  ;;  %v2072_v15 = vld [vmem:[#allocation10 + $0x210] sm:$0xff] }
 0x426   :  { %v2067_v32 = vld [vmem:[#allocation10 + $0x1e8] sm:$0xff] }
 0x427   :  { %v1484_v35 = vadd.f32 %v3216_v55, %v5412_v2 }
 0x429   :  { %v1489_v34 = vadd.f32 %v1488_v9, %v1484_v35  ;;  %v2032_v9 = vld [vmem:[#allocation10 + $0xd0] sm:$0xff]  ;;  %v2026_v35 = vld [vmem:[#allocation10 + $0xa0] sm:$0xff] }
 0x42a   :  { %v5463_v55 = vpack.c.bf16 %v2032_v9, %v2027_v29  ;;  %v5511_v29 = vpack.c.bf16 %v2072_v15, %v2067_v32  ;;  %v2066_v9 = vld [vmem:[#allocation10 + $0x1e0] sm:$0xff] }
 0x42b   :  { %v3086_v8 = vmul.f32 -1.442695, %v1489_v34  ;;  %v2031_v34 = vld [vmem:[#allocation10 + $0xc8] sm:$0xff] }
 0x42d   :  { %4417 = vpow2.f32 %v3086_v8  ;;  %v2029_v8 = vld [vmem:[#allocation10 + $0xb8] sm:$0xff] }
 0x437   :  { %v4418_v45 = vpop.eup %4417 }
 0x438   :  { %v1493_v46 = vadd.f32 1.0, %v4418_v45  ;;  %v5466_v45 = vpack.c.bf16 %v2031_v34, %v2026_v35  ;;  %v2071_v35 = vld [vmem:[#allocation10 + $0x208] sm:$0xff]  ;;  %v2069_v34 = vld [vmem:[#allocation10 + $0x1f8] sm:$0xff] }
 0x43a   :  { %4419 = vrcp.f32 %v1493_v46  ;;  %v2028_v46 = vld [vmem:[#allocation10 + $0xb0] sm:$0xff] }
 0x43b   :  { %4421 = vpow2.f32 %v3084_v37  ;;  %v5469_v37 = vpack.c.bf16 %v2034_v5, %v2029_v8  ;;  %v5514_v8 = vpack.c.bf16 %v2071_v35, %v2066_v9  ;;  %v2074_v5 = vld [vmem:[#allocation10 + $0x220] sm:$0xff]  ;;  %v2097_v9 = vld [vmem:[#allocation10 + $0x2d8] sm:$0xff] }
 0x43c   :  { %v2102_v35 = vld [vmem:[#allocation10 + $0x300] sm:$0xff] }
 0x444   :  { %v4420_v63 = vpop.eup %4419 }
 0x445   :  { %v1496_v3 = vmul.f32 %v4420_v63, %v1040_v6  ;;  %v4422_v19 = vpop.eup %4421  ;;  %v5471_v63 = vpack.c.bf16 %v2033_v28, %v2028_v46  ;;  %v2037_v6 = vld [vmem:[#allocation10 + $0xf8] sm:$0xff]  ;;  %v2068_v46 = vld [vmem:[#allocation10 + $0x1f0] sm:$0xff] }
 0x446   :  { %v1473_v53 = vadd.f32 1.0, %v4422_v19  ;;  %v2039_v19 = vld [vmem:[#allocation10 + $0x108] sm:$0xff]  ;;  %v2073_v28 = vld [vmem:[#allocation10 + $0x218] sm:$0xff] }
 0x447   :  { %v1498_v11 = vrot.slane %v1496_v3, 4 }
 0x448   :  { %4423 = vrcp.f32 %v1473_v53  ;;  %v2038_v53 = vld [vmem:[#allocation10 + $0x100] sm:$0xff] }
 0x449   :  { %v1499_v13 = vadd.f32 %v1498_v11, %v1496_v3  ;;  %v2042_v3 = vld [vmem:[#allocation10 + $0x120] sm:$0xff] }
 0x44a   :  { %v5475_v11 = vpack.c.bf16 %v2042_v3, %v2037_v6  ;;  %v5517_v6 = vpack.c.bf16 %v2074_v5, %v2069_v34  ;;  %v5519_v3 = vpack.c.bf16 %v2073_v28, %v2068_v46  ;;  %v5547_v34 = vpack.c.bf16 %v2102_v35, %v2097_v9  ;;  %v2096_v5 = vld [vmem:[#allocation10 + $0x2d0] sm:$0xff]  ;;  %v2101_v46 = vld [vmem:[#allocation10 + $0x2f8] sm:$0xff]  ;;  %v2099_v28 = vld [vmem:[#allocation10 + $0x2e8] sm:$0xff] }
 0x44b   :  { %v1500_v23 = vrot.slane %v1499_v13, 2  ;;  %v2113_v9 = vld [vmem:[#allocation10 + $0x358] sm:$0xff] }
 0x44c   :  { %6003 = vst [vmem:[#allocation18_spill] sm:$0xff] %v5517_v6  ;;  %6004 = vst [vmem:[#allocation35_spill] sm:$0xff] %v5519_v3  ;;  %v2117_v35 = vld [vmem:[#allocation10 + $0x378] sm:$0xff] }
 0x44d   :  { %v1501_v57 = vadd.f32 %v1500_v23, %v1499_v13  ;;  %v2036_v13 = vld [vmem:[#allocation10 + $0xf0] sm:$0xff]  ;;  %v2041_v23 = vld [vmem:[#allocation10 + $0x118] sm:$0xff] }
 0x44f   :  { %v1502_v31 = vrot.slane %v1501_v57, 1 }
 0x451   :  { %v1503_v30 = vadd.f32 %v1502_v31, %v1501_v57  ;;  %v5478_v57 = vpack.c.bf16 %v2041_v23, %v2036_v13  ;;  %v2044_v31 = vld [vmem:[#allocation10 + $0x130] sm:$0xff]  ;;  %v2077_v13 = vld [vmem:[#allocation10 + $0x238] sm:$0xff]  ;;  %v2082_v23 = vld [vmem:[#allocation10 + $0x260] sm:$0xff] }
 0x452   :  { %v4424_v12 = vpop.eup %4423 }
 0x453   :  { %v1504_v48 = vadd.f32 %v1503_v30, %v1497_v18  ;;  %v2043_v30 = vld [vmem:[#allocation10 + $0x128] sm:$0xff] }
 0x455   :  { %4425 = vtanh.f32 %v1504_v48  ;;  %1509 = vst [vmem:[%s1508_s16] sm:$0x1] %v1504_v48  ;;  %v5481_v48 = vpack.c.bf16 %v2044_v31, %v2039_v19  ;;  %v5523_v19 = vpack.c.bf16 %v2082_v23, %v2077_v13  ;;  %v2076_v31 = vld [vmem:[#allocation10 + $0x230] sm:$0xff]  ;;  %v5550_v13 = vpack.c.bf16 %v2101_v46, %v2096_v5  ;;  %v2122_v46 = vld [vmem:[#allocation10 + $0x3a0] sm:$0xff] }
 0x456   :  { %v2104_v23 = vld [vmem:[#allocation10 + $0x310] sm:$0xff] }
 0x45f   :  { %v4426_v36 = vpop.eup %4425 }
 0x460   :  { %v1506_v42 = vmul.f32 %v4426_v36, %v4424_v12  ;;  %v5483_v12 = vpack.c.bf16 %v2043_v30, %v2038_v53  ;;  %v2047_v36 = vld [vmem:[#allocation10 + $0x148] sm:$0xff]  ;;  %v2081_v53 = vld [vmem:[#allocation10 + $0x258] sm:$0xff] }
 0x461   :  { %v2079_v30 = vld [vmem:[#allocation10 + $0x248] sm:$0xff] }
 0x462   :  { %1511 = vst [vmem:[%s1510_s17] sm:$0x1] %v1506_v42  ;;  %v2052_v42 = vld [vmem:[#allocation10 + $0x170] sm:$0xff] }
 0x469   :  { %v1514_v49 = vld [vmem:[#allocation3 + $0x18] sm:$0xff] }
 0x46a   :  { %v1517_v38 = vrot.slane %v1514_v49, 4 }
 0x46c   :  { %v1518_v54 = vadd.f32 %v1517_v38, %v1514_v49  ;;  %v2046_v38 = vld [vmem:[#allocation10 + $0x140] sm:$0xff] }
 0x46e   :  { %v1519_v59 = vrot.slane %v1518_v54, 2 }
 0x470   :  { %v1520_v39 = vadd.f32 %v1519_v59, %v1518_v54  ;;  %v2051_v54 = vld [vmem:[#allocation10 + $0x168] sm:$0xff]  ;;  %v2049_v59 = vld [vmem:[#allocation10 + $0x158] sm:$0xff] }
 0x472   :  { %v1521_v14 = vrot.slane %v1520_v39, 1 }
 0x474   :  { %v1522_v61 = vadd.f32 %v1521_v14, %v1520_v39  ;;  %v5490_v39 = vpack.c.bf16 %v2051_v54, %v2046_v38  ;;  %v2054_v14 = vld [vmem:[#allocation10 + $0x180] sm:$0xff]  ;;  %v2083_v54 = vld [vmem:[#allocation10 + $0x268] sm:$0xff] }
 0x475   :  { %v2078_v38 = vld [vmem:[#allocation10 + $0x240] sm:$0xff] }
 0x476   :  { %1524 = vst [vmem:[#allocation4 + $0x8] sm:$0x1] %v1522_v61  ;;  %v2048_v61 = vld [vmem:[#allocation10 + $0x150] sm:$0xff] }
 0x47d   :  { %v1527_v26 = vld [vmem:[#allocation4 + $0x8] sm:$0xff] }
 0x47e   :  { %1754 = vmatprep.mubr.f32.mxu1 %v1527_v26  ;;  %1829 = vmatprep.mubr.f32.mxu0 %v1527_v26 }
 0x47f   :  { %1755 = vmatmul.mubr.f32.vlgmr.msra.gmra.mrb[16].mxu1 %v5405_v4  ;;  %1830 = vmatmul.mubr.f32.vlgmr.msra.gmra.mrb[20].mxu0 %v5405_v4 }
 0x480   :  { %3994 = vmatpush3.bf16.msra.mxu1 %v5283_v24  ;;  %1760 = vmatprep.mubr.f32.mxu1 %v1514_v49  ;;  %v2007_v24 = vld [vmem:[#allocation10 + $0x8] sm:$0xff] }
 0x481   :  { %1835 = vmatprep.mubr.f32.mxu0 %v1514_v49  ;;  %3996 = vmatprep.subr.bf16.mxu1 %v5285_v58  ;;  %v2012_v58 = vld [vmem:[#allocation10 + $0x30] sm:$0xff] }
 0x483   :  { %1761 = vmatmul.mubr.f32.gmra.mrb[18].mxu1 %v5421_v56  ;;  %1836 = vmatmul.mubr.f32.gmra.mrb[22].mxu0 %v5421_v56 }
 0x484   :  { %3998 = vmatpush3.bf16.msra.mxu1 %v5291_v16  ;;  %1904 = vmatprep.mubr.f32.mxu1 %v1527_v26  ;;  %v5440_v16 = vpack.c.bf16 %v2012_v58, %v2007_v24  ;;  %v2053_v26 = vld [vmem:[#allocation10 + $0x178] sm:$0xff]  ;;  %v5493_v24 = vpack.c.bf16 %v2054_v14, %v2049_v59  ;;  %v5531_v14 = vpack.c.bf16 %v2083_v54, %v2078_v38  ;;  %v2107_v38 = vld [vmem:[#allocation10 + $0x328] sm:$0xff]  ;;  %v2112_v54 = vld [vmem:[#allocation10 + $0x350] sm:$0xff] }
 0x485   :  { %4000 = vmatprep.subr.bf16.mxu1 %v5295_v25  ;;  %v2006_v25 = vld [vmem:[#allocation10] sm:$0xff]  ;;  %v5495_v58 = vpack.c.bf16 %v2053_v26, %v2048_v61  ;;  %v2087_v61 = vld [vmem:[#allocation10 + $0x288] sm:$0xff]  ;;  %v2092_v26 = vld [vmem:[#allocation10 + $0x2b0] sm:$0xff] }
 0x486   :  { %4024 = vmatprep.subr.bf16.mxu0 %v5440_v16  ;;  %6006 = vst [vmem:[#allocation19_spill] sm:$0xff] %v5531_v14 }
 0x488   :  { %4002 = vmatpush3.bf16.msra.mxu1 %v5301_v41  ;;  %v2011_v41 = vld [vmem:[#allocation10 + $0x28] sm:$0xff] }
 0x489   :  { %4004 = vmatprep.subr.bf16.mxu1 %v5304_v1  ;;  %v2009_v1 = vld [vmem:[#allocation10 + $0x18] sm:$0xff] }
 0x48c   :  { %4006 = vmatpush3.bf16.msra.mxu1 %v5310_v7  ;;  %v5442_v7 = vpack.c.bf16 %v2011_v41, %v2006_v25  ;;  %v2057_v25 = vld [vmem:[#allocation10 + $0x198] sm:$0xff]  ;;  %v2062_v41 = vld [vmem:[#allocation10 + $0x1c0] sm:$0xff] }
 0x48d   :  { %4008 = vmatprep.subr.bf16.mxu1 %v5313_v43  ;;  %v2014_v43 = vld [vmem:[#allocation10 + $0x40] sm:$0xff] }
 0x48e   :  { %4026 = vmatpush1.bf16.msra.mxu0 %v5442_v7 }
 0x490   :  { %4010 = vmatpush3.bf16.msra.mxu1 %v5318_v0  ;;  %v2008_v0 = vld [vmem:[#allocation10 + $0x10] sm:$0xff] }
 0x491   :  { %4012 = vmatprep.subr.bf16.mxu1 %v5321_v47  ;;  %v2013_v47 = vld [vmem:[#allocation10 + $0x38] sm:$0xff] }
 0x494   :  { %4014 = vmatpush3.bf16.msra.mxu1 %v5326_v62  ;;  %v5445_v62 = vpack.c.bf16 %v2014_v43, %v2009_v1  ;;  %v5499_v1 = vpack.c.bf16 %v2062_v41, %v2057_v25  ;;  %v2056_v43 = vld [vmem:[#allocation10 + $0x190] sm:$0xff]  ;;  %v5535_v25 = vpack.c.bf16 %v2092_v26, %v2087_v61  ;;  %v2086_v41 = vld [vmem:[#allocation10 + $0x280] sm:$0xff]  ;;  %v5558_v26 = vpack.c.bf16 %v2112_v54, %v2107_v38 }
 0x495   :  { %4016 = vmatprep.subr.bf16.mxu1 %v5329_v40  ;;  %v5447_v40 = vpack.c.bf16 %v2013_v47, %v2008_v0  ;;  %v2061_v0 = vld [vmem:[#allocation10 + $0x1b8] sm:$0xff]  ;;  %v2059_v47 = vld [vmem:[#allocation10 + $0x1a8] sm:$0xff]  ;;  %v2106_v61 = vld [vmem:[#allocation10 + $0x320] sm:$0xff] }
 0x496   :  { %v2124_v38 = vld [vmem:[#allocation10 + $0x3b0] sm:$0xff]  ;;  %v2118_v54 = vld [vmem:[#allocation10 + $0x380] sm:$0xff] }
 0x498   :  { %4018 = vmatpush3.bf16.msra.mxu1 %v5334_v21  ;;  %v2017_v21 = vld [vmem:[#allocation10 + $0x58] sm:$0xff] }
 0x499   :  { %4020 = vmatprep.subr.bf16.mxu1 %v5337_v51  ;;  %v2022_v51 = vld [vmem:[#allocation10 + $0x80] sm:$0xff] }
 0x49c   :  { %4022 = vmatpush3.bf16.msra.mxu1 %v5342_v10  ;;  %v5451_v10 = vpack.c.bf16 %v2022_v51, %v2017_v21  ;;  %v5502_v21 = vpack.c.bf16 %v2061_v0, %v2056_v43  ;;  %v2064_v51 = vld [vmem:[#allocation10 + $0x1d0] sm:$0xff]  ;;  %v2091_v43 = vld [vmem:[#allocation10 + $0x2a8] sm:$0xff]  ;;  %v2089_v0 = vld [vmem:[#allocation10 + $0x298] sm:$0xff] }
 0x49d   :  { %4088 = vmatprep.subr.bf16.mxu1 %v5445_v62  ;;  %v5505_v33 = vpack.c.bf16 %v2064_v51, %v2059_v47  ;;  %v5538_v47 = vpack.c.bf16 %v2091_v43, %v2086_v41  ;;  %v2094_v51 = vld [vmem:[#allocation10 + $0x2c0] sm:$0xff]  ;;  %v2111_v41 = vld [vmem:[#allocation10 + $0x348] sm:$0xff]  ;;  %v2109_v43 = vld [vmem:[#allocation10 + $0x338] sm:$0xff] }
 0x49e   :  { %4028 = vmatprep.subr.bf16.mxu0 %v5451_v10  ;;  %v5541_v32 = vpack.c.bf16 %v2094_v51, %v2089_v0  ;;  %v2114_v0 = vld [vmem:[#allocation10 + $0x360] sm:$0xff]  ;;  %v5561_v51 = vpack.c.bf16 %v2111_v41, %v2106_v61 }
 0x49f   :  { %1905 = vmatmul.mubr.f32.vlgmr.msra.gmra.mrb[20].mxu1 %v5405_v4  ;;  %v2016_v4 = vld [vmem:[#allocation10 + $0x50] sm:$0xff] }
 0x4a0   :  { %1908 = vmatprep.mubr.f32.mxu1 %v1514_v49  ;;  %4090 = vmatpush1.bf16.msra.mxu1 %v5447_v40  ;;  %v5454_v18 = vpack.c.bf16 %v2021_v17, %v2016_v4  ;;  %v5487_v49 = vpack.c.bf16 %v2052_v42, %v2047_v36  ;;  %v2058_v4 = vld [vmem:[#allocation10 + $0x1a0] sm:$0xff]  ;;  %v2063_v17 = vld [vmem:[#allocation10 + $0x1c8] sm:$0xff]  ;;  %v5526_v36 = vpack.c.bf16 %v2081_v53, %v2076_v31  ;;  %v2084_v42 = vld [vmem:[#allocation10 + $0x270] sm:$0xff] }
 0x4a1   :  { %4092 = vmatprep.subr.bf16.mxu1 %v5457_v22  ;;  %v5507_v27 = vpack.c.bf16 %v2063_v17, %v2058_v4  ;;  %v5529_v59 = vpack.c.bf16 %v2084_v42, %v2079_v30  ;;  %v2088_v4 = vld [vmem:[#allocation10 + $0x290] sm:$0xff]  ;;  %v2093_v17 = vld [vmem:[#allocation10 + $0x2b8] sm:$0xff]  ;;  %6007 = vst [vmem:[#allocation32_spill] sm:$0xff] %v5541_v32  ;;  %v2098_v31 = vld [vmem:[#allocation10 + $0x2e0] sm:$0xff]  ;;  %v5553_v30 = vpack.c.bf16 %v2104_v23, %v2099_v28 }
 0x4a2   :  { %4030 = vmatpush1.bf16.msra.mxu0 %v5454_v18  ;;  %v5543_v15 = vpack.c.bf16 %v2093_v17, %v2088_v4  ;;  %v2103_v53 = vld [vmem:[#allocation10 + $0x308] sm:$0xff]  ;;  %v5563_v4 = vpack.c.bf16 %v2114_v0, %v2109_v43  ;;  %v2108_v17 = vld [vmem:[#allocation10 + $0x330] sm:$0xff]  ;;  %v2121_v23 = vld [vmem:[#allocation10 + $0x398] sm:$0xff] }
 0x4a3   :  { %1909 = vmatmul.mubr.f32.gmra.mrb[22].mxu1 %v5421_v56  ;;  %4032 = vmatprep.subr.bf16.mxu0 %v5463_v55  ;;  %6002 = vst [vmem:[#allocation29_spill] sm:$0xff] %v5507_v27  ;;  %6005 = vst [vmem:[#allocation36_spill] sm:$0xff] %v5529_v59  ;;  %v5555_v42 = vpack.c.bf16 %v2103_v53, %v2098_v31  ;;  %v5567_v5 = vpack.c.bf16 %v2113_v9, %v2108_v17  ;;  %v2116_v28 = vld [vmem:[#allocation10 + $0x370] sm:$0xff]  ;;  %v2119_v53 = vld [vmem:[#allocation10 + $0x388] sm:$0xff] }
 0x4a4   :  { %4094 = vmatpush1.bf16.msra.mxu1 %v5459_v50  ;;  %6008 = vst [vmem:[#allocation39_spill] sm:$0xff] %v5543_v15  ;;  %6009 = vst [vmem:[#allocation40_spill] sm:$0xff] %v5553_v30  ;;  %v5570_v31 = vpack.c.bf16 %v2122_v46, %v2117_v35  ;;  %v5573_v61 = vpack.c.bf16 %v2121_v23, %v2116_v28  ;;  %v5575_v41 = vpack.c.bf16 %v2124_v38, %v2119_v53  ;;  %v2123_v43 = vld [vmem:[#allocation10 + $0x3a8] sm:$0xff]  ;;  %v2132_v17 = vld [vmem:[#allocation10 + $0x3f0] sm:$0xff] }
 0x4a5   :  { %4096 = vmatprep.subr.bf16.mxu1 %v5469_v37  ;;  %6010 = vst [vmem:[#allocation20_spill] sm:$0xff] %v5555_v42  ;;  %6011 = vst [vmem:[#allocation21_spill] sm:$0xff] %v5563_v4  ;;  %v2127_v0 = vld [vmem:[#allocation10 + $0x3c8] sm:$0xff]  ;;  %v2129_v35 = vld [vmem:[#allocation10 + $0x3d8] sm:$0xff]  ;;  %v5581_v46 = vpack.c.bf16 %v2123_v43, %v2118_v54 }
 0x4a6   :  { %4034 = vmatpush1.bf16.msra.mxu0 %v5466_v45  ;;  %6012 = vst [vmem:[#allocation43_spill] sm:$0xff] %v5567_v5  ;;  %6013 = vst [vmem:[#allocation45_spill] sm:$0xff] %v5575_v41  ;;  %v5578_v9 = vpack.c.bf16 %v2132_v17, %v2127_v0  ;;  %v2133_v23 = vld [vmem:[#allocation10 + $0x3f8] sm:$0xff]  ;;  %v2142_v38 = vld [vmem:[#allocation10 + $0x440] sm:$0xff] }
 0x4a7   :  { %4036 = vmatprep.subr.bf16.mxu0 %v5475_v11  ;;  %6014 = vst [vmem:[#allocation22_spill] sm:$0xff] %v5581_v46  ;;  %v2137_v53 = vld [vmem:[#allocation10 + $0x418] sm:$0xff]  ;;  %v2139_v17 = vld [vmem:[#allocation10 + $0x428] sm:$0xff]  ;;  %v2136_v54 = vld [vmem:[#allocation10 + $0x410] sm:$0xff] }
 0x4a8   :  { %4098 = vmatpush1.bf16.msra.mxu1 %v5471_v63  ;;  %v2141_v43 = vld [vmem:[#allocation10 + $0x438] sm:$0xff] }
 0x4a9   :  { %4100 = vmatprep.subr.bf16.mxu1 %v5481_v48 }
 0x4aa   :  { %4038 = vmatpush1.bf16.msra.mxu0 %v5478_v57 }
 0x4ab   :  { %4040 = vmatprep.subr.bf16.mxu0 %v5487_v49 }
 0x4ac   :  { %4102 = vmatpush1.bf16.msra.mxu1 %v5483_v12 }
 0x4ad   :  { %4104 = vmatprep.subr.bf16.mxu1 %v5493_v24 }
 0x4ae   :  { %4042 = vmatpush1.bf16.msra.mxu0 %v5490_v39 }
 0x4af   :  { %4044 = vmatprep.subr.bf16.mxu0 %v5499_v1 }
 0x4b0   :  { %4106 = vmatpush1.bf16.msra.mxu1 %v5495_v58 }
 0x4b1   :  { %4108 = vmatprep.subr.bf16.mxu1 %v5505_v33 }
 0x4b2   :  { %4046 = vmatpush1.bf16.msra.mxu0 %v5502_v21 }
 0x4b3   :  { %4048 = vmatprep.subr.bf16.mxu0 %v5511_v29 }
 0x4b4   :  { %4110 = vmatpush1.bf16.msra.mxu1 %v5507_v27 }
 0x4b5   :  { %4112 = vmatprep.subr.bf16.mxu1 %v5517_v6 }
 0x4b6   :  { %4050 = vmatpush1.bf16.msra.mxu0 %v5514_v8 }
 0x4b7   :  { %4052 = vmatprep.subr.bf16.mxu0 %v5523_v19 }
 0x4b8   :  { %4114 = vmatpush1.bf16.msra.mxu1 %v5519_v3 }
 0x4b9   :  { %4116 = vmatprep.subr.bf16.mxu1 %v5529_v59  ;;  %v5599_v59 = vpack.c.bf16 %v2141_v43, %v2136_v54  ;;  %v2148_v54 = vld [vmem:[#allocation10 + $0x470] sm:$0xff]  ;;  %v2153_v43 = vld [vmem:[#allocation10 + $0x498] sm:$0xff] }
 0x4ba   :  { %4054 = vmatpush1.bf16.msra.mxu0 %v5526_v36 }
 0x4bb   :  { %4056 = vmatprep.subr.bf16.mxu0 %v5535_v25  ;;  %6018 = vst [vmem:[#allocation26_spill] sm:$0xff] %v5599_v59 }
 0x4bc   :  { %4118 = vmatpush1.bf16.msra.mxu1 %v5531_v14 }
 0x4bd   :  { %4120 = vmatprep.subr.bf16.mxu1 %v5541_v32  ;;  %v2144_v32 = vld [vmem:[#allocation10 + $0x450] sm:$0xff] }
 0x4be   :  { %4058 = vmatpush1.bf16.msra.mxu0 %v5538_v47  ;;  %v5596_v14 = vpack.c.bf16 %v2144_v32, %v2139_v17  ;;  %v2157_v32 = vld [vmem:[#allocation10 + $0x4b8] sm:$0xff]  ;;  %v2162_v17 = vld [vmem:[#allocation10 + $0x4e0] sm:$0xff] }
 0x4bf   :  { %4060 = vmatprep.subr.bf16.mxu0 %v5547_v34  ;;  %v5614_v27 = vpack.c.bf16 %v2162_v17, %v2157_v32  ;;  %v2090_v17 = vld [vmem:[#allocation10 + $0x2a0] sm:$0xff] }
 0x4c0   :  { %4122 = vmatpush1.bf16.msra.mxu1 %v5543_v15  ;;  %v2128_v15 = vld [vmem:[#allocation10 + $0x3d0] sm:$0xff]  ;;  %6017 = vst [vmem:[#allocation25_spill] sm:$0xff] %v5596_v14 }
 0x4c1   :  { %4124 = vmatprep.subr.bf16.mxu1 %v5553_v30  ;;  %v2134_v30 = vld [vmem:[#allocation10 + $0x400] sm:$0xff]  ;;  %6023 = vst [vmem:[#allocation34_spill] sm:$0xff] %v5614_v27 }
 0x4c2   :  { %4062 = vmatpush1.bf16.msra.mxu0 %v5550_v13  ;;  %v5584_v28 = vpack.c.bf16 %v2134_v30, %v2129_v35  ;;  %v2147_v30 = vld [vmem:[#allocation10 + $0x468] sm:$0xff]  ;;  %v2152_v35 = vld [vmem:[#allocation10 + $0x490] sm:$0xff] }
 0x4c3   :  { %4064 = vmatprep.subr.bf16.mxu0 %v5558_v26  ;;  %v5602_v3 = vpack.c.bf16 %v2152_v35, %v2147_v30  ;;  %v2159_v30 = vld [vmem:[#allocation10 + $0x4c8] sm:$0xff]  ;;  %v2164_v35 = vld [vmem:[#allocation10 + $0x4f0] sm:$0xff] }
 0x4c4   :  { %4126 = vmatpush1.bf16.msra.mxu1 %v5555_v42  ;;  %v2126_v42 = vld [vmem:[#allocation10 + $0x3c0] sm:$0xff]  ;;  %6015 = vst [vmem:[#allocation23_spill] sm:$0xff] %v5584_v28 }
 0x4c5   :  { %4128 = vmatprep.subr.bf16.mxu1 %v5563_v4  ;;  %v2131_v4 = vld [vmem:[#allocation10 + $0x3e8] sm:$0xff]  ;;  %6019 = vst [vmem:[#allocation27_spill] sm:$0xff] %v5602_v3 }
 0x4c6   :  { %4066 = vmatpush1.bf16.msra.mxu0 %v5561_v51  ;;  %v5587_v0 = vpack.c.bf16 %v2131_v4, %v2126_v42  ;;  %v2138_v42 = vld [vmem:[#allocation10 + $0x420] sm:$0xff]  ;;  %v2143_v4 = vld [vmem:[#allocation10 + $0x448] sm:$0xff] }
 0x4c7   :  { %4068 = vmatprep.subr.bf16.mxu0 %v5570_v31 }
 0x4c8   :  { %4130 = vmatpush1.bf16.msra.mxu1 %v5567_v5  ;;  %v5590_v5 = vpack.c.bf16 %v2142_v38, %v2137_v53  ;;  %v2149_v53 = vld [vmem:[#allocation10 + $0x478] sm:$0xff]  ;;  %v2154_v38 = vld [vmem:[#allocation10 + $0x4a0] sm:$0xff] }
 0x4c9   :  { %4132 = vmatprep.subr.bf16.mxu1 %v5575_v41  ;;  %v5593_v41 = vpack.c.bf16 %v2133_v23, %v2128_v15  ;;  %v2146_v15 = vld [vmem:[#allocation10 + $0x460] sm:$0xff]  ;;  %v2151_v23 = vld [vmem:[#allocation10 + $0x488] sm:$0xff] }
 0x4ca   :  { %4070 = vmatpush1.bf16.msra.mxu0 %v5573_v61  ;;  %v5611_v6 = vpack.c.bf16 %v2151_v23, %v2146_v15  ;;  %v1914_v23 = vld [vmem:[%s5826_s3] sm:$0xf] }
 0x4cb   :  { %4072 = vmatprep.subr.bf16.mxu0 %v5578_v9  ;;  %6016 = vst [vmem:[#allocation24_spill] sm:$0xff] %v5593_v41 }
 0x4cc   :  { %4134 = vmatpush1.bf16.msra.mxu1 %v5581_v46  ;;  %v5605_v46 = vpack.c.bf16 %v2143_v4, %v2138_v42  ;;  %6022 = vst [vmem:[#allocation33_spill] sm:$0xff] %v5611_v6  ;;  %v2156_v42 = vld [vmem:[#allocation10 + $0x4b0] sm:$0xff]  ;;  %v2161_v4 = vld [vmem:[#allocation10 + $0x4d8] sm:$0xff] }
 0x4cd   :  { %4136 = vmatprep.subr.bf16.mxu1 %v5584_v28  ;;  %v5608_v28 = vpack.c.bf16 %v2154_v38, %v2149_v53  ;;  %v5620_v53 = vpack.c.bf16 %v2164_v35, %v2159_v30  ;;  %v2158_v38 = vld [vmem:[#allocation10 + $0x4c0] sm:$0xff]  ;;  %v5623_v15 = vpack.c.bf16 %v2161_v4, %v2156_v42  ;;  %v2464_v4 = vld [vmem:[#allocation7 + $0x5] sm:$0x1] }
 0x4ce   :  { %4074 = vmatpush1.bf16.msra.mxu0 %v5587_v0  ;;  %6020 = vst [vmem:[#allocation30_spill] sm:$0xff] %v5605_v46 }
 0x4cf   :  { %4076 = vmatprep.subr.bf16.mxu0 %v5590_v5  ;;  %6021 = vst [vmem:[#allocation31_spill] sm:$0xff] %v5608_v28  ;;  %6025 = vst [vmem:[#allocation38_spill] sm:$0xff] %v5620_v53 }
 0x4d0   :  { %4138 = vmatpush1.bf16.msra.mxu1 %v5593_v41  ;;  %v5617_v41 = vpack.c.bf16 %v2153_v43, %v2148_v54  ;;  %6026 = vst [vmem:[#allocation41_spill] sm:$0xff] %v5623_v15  ;;  %v2095_v54 = vld [vmem:[#allocation10 + $0x2c8] sm:$0xff]  ;;  %v1919_v43 = vrot.slane %v1914_v23, %v5025_v44 }
 0x4d1   :  { %4140 = vmatprep.subr.bf16.mxu1 %v5596_v14  ;;  %v2163_v14 = vld [vmem:[#allocation10 + $0x4e8] sm:$0xff]  ;;  %v5635_v30 = vpack.c.bf16 %v2095_v54, %v2090_v17 }
 0x4d2   :  { %4078 = vmatpush1.bf16.msra.mxu0 %v5599_v59  ;;  %6024 = vst [vmem:[#allocation37_spill] sm:$0xff] %v5617_v41  ;;  %v5630_v32 = vpack.c.bf16 %v2163_v14, %v2158_v38  ;;  %v5640_v14 = vld [vmem:[#allocation4] sm:$0xff] }
 0x4d3   :  { %4080 = vmatprep.subr.bf16.mxu0 %v5602_v3  ;;  %6028 = vst [vmem:[#allocation44_spill] sm:$0xff] %v5635_v30  ;;  %2475 = vst [vmem:[#allocation4] sm:$0x1] %v2464_v4 }
 0x4d4   :  { %4142 = vmatpush1.bf16.msra.mxu1 %v5605_v46  ;;  %6027 = vst [vmem:[#allocation42_spill] sm:$0xff] %v5630_v32 }
 0x4d5   :  { %4144 = vmatprep.subr.bf16.mxu1 %v5608_v28 }
 0x4d6   :  { %4082 = vmatpush1.bf16.msra.mxu0 %v5611_v6 }
 0x4d7   :  { %4084 = vmatprep.subr.bf16.mxu0 %v5614_v27 }
 0x4d8   :  { %4146 = vmatpush1.bf16.msra.mxu1 %v5617_v41 }
 0x4d9   :  { %4148 = vmatprep.subr.bf16.mxu1 %v5620_v53 }
 0x4da   :  { %4086 = vmatpush1.bf16.msra.mxu0 %v5623_v15 }
 0x4db   :  { %4152 = vmatprep.subr.bf16.mxu0 %v5635_v30 }
 0x4dc   :  { %4150 = vmatpush1.bf16.msra.mxu1 %v5630_v32  ;;  %v1927_v32 = vrot.slane %v1914_v23, %v5033_v52 }
 0x4dd   :  { %4184 = vmatprep.subr.bf16.mxu1 %v5440_v16 }
 0x552   :  { %v1756_v35 = vpop.f32.mrb[16].mxu1  ;;  %v1831_v42 = vpop.f32.mrb[20].mxu0 }
 0x553   :  { %v1936_v38 = vadd.f32 %v1919_v43, %v1756_v35  ;;  %v1758_v53 = vpop.f32.mrb[17].mxu1  ;;  %v1833_v41 = vpop.f32.mrb[21].mxu0  ;;  %v1938_v30 = vadd.f32 %v1927_v32, %v1831_v42  ;;  %v1931_v43 = vrot.slane %v1914_v23, %v6001_v20 }
 0x555   :  { %v3088_v28 = vmul.f32 -1.442695, %v1936_v38  ;;  %v1939_v38 = vadd.f32 %v1931_v43, %v1833_v41  ;;  %v1516_v41 = vld [vmem:[#allocation2 + $0x18] sm:$0xff] }
 0x556   :  { %v1762_v46 = vpop.f32.mrb[18].mxu1  ;;  %v1837_v15 = vpop.f32.mrb[22].mxu0 }
 0x557   :  { %4427 = vpow2.f32 %v3088_v28  ;;  %v1763_v17 = vpop.f32.mrb[19].mxu1  ;;  %v1838_v54 = vpop.f32.mrb[23].mxu0  ;;  %v1964_v28 = vrot.slane %v1939_v38, %v5025_v44 }
 0x558   :  { %4429 = vtanh.f32 %v1938_v30  ;;  %v1923_v30 = vrot.slane %v1914_v23, %v5046_v60 }
 0x561   :  { %v4428_v27 = vpop.eup %4427 }
 0x562   :  { %v1943_v16 = vadd.f32 1.0, %v4428_v27  ;;  %v4430_v6 = vpop.eup %4429 }
 0x564   :  { %4431 = vrcp.f32 %v1943_v16 }
 0x56e   :  { %v4432_v3 = vpop.eup %4431 }
 0x56f   :  { %v1973_v59 = vmul.f32 %v4432_v3, %v4430_v6  ;;  %v1937_v6 = vadd.f32 %v1923_v30, %v1758_v53 }
 0x571   :  { %v3089_v3 = vmul.f32 -1.442695, %v1937_v6 }
 0x572   :  { %v3249_v35 = vpop.f32.mrb[20].mxu1 }
 0x573   :  { %v3250_v4 = vpop.f32.mrb[21].mxu1 }
 0x576   :  { %v3252_v46 = vpop.f32.mrb[22].mxu1 }
 0x577   :  { %v3253_v15 = vpop.f32.mrb[23].mxu1 }
 0x578   :  { %v3254_v17 = vadd.f32 %v3253_v15, %v3252_v46 }
 0x57a   :  { %v1960_v54 = vadd.f32 %v3254_v17, %v5412_v2 }
 0x57c   :  { %v1965_v32 = vadd.f32 %v1964_v28, %v1960_v54 }
 0x57e   :  { %v3091_v42 = vmul.f32 -1.442695, %v1965_v32 }
 0x580   :  { %4433 = vpow2.f32 %v3091_v42 }
 0x58a   :  { %v4434_v27 = vpop.eup %4433 }
 0x58b   :  { %v1969_v16 = vadd.f32 1.0, %v4434_v27 }
 0x58d   :  { %4435 = vrcp.f32 %v1969_v16 }
 0x58e   :  { %4437 = vpow2.f32 %v3089_v3 }
 0x597   :  { %v4436_v35 = vpop.eup %4435 }
 0x598   :  { %v1972_v43 = vmul.f32 %v4436_v35, %v1516_v41  ;;  %v4438_v46 = vpop.eup %4437  ;;  %v2015_v35 = vld [vmem:[#allocation10 + $0x48] sm:$0xff]  ;;  %v2100_v41 = vld [vmem:[#allocation10 + $0x2f0] sm:$0xff] }
 0x599   :  { %v1949_v28 = vadd.f32 1.0, %v4438_v46 }
 0x59a   :  { %v1974_v4 = vrot.slane %v1972_v43, 4 }
 0x59b   :  { %4439 = vrcp.f32 %v1949_v28  ;;  %v2110_v28 = vld [vmem:[#allocation10 + $0x340] sm:$0xff] }
 0x59c   :  { %v1975_v20 = vadd.f32 %v1974_v4, %v1972_v43  ;;  %v2105_v43 = vld [vmem:[#allocation10 + $0x318] sm:$0xff] }
 0x59d   :  { %v5653_v46 = vpack.c.bf16 %v2105_v43, %v2100_v41  ;;  %v2050_v41 = vld [vmem:[#allocation10 + $0x160] sm:$0xff]  ;;  %v2055_v43 = vld [vmem:[#allocation10 + $0x188] sm:$0xff] }
 0x59e   :  { %v1976_v38 = vrot.slane %v1975_v20, 2 }
 0x5a0   :  { %v1977_v2 = vadd.f32 %v1976_v38, %v1975_v20 }
 0x5a2   :  { %v1978_v15 = vrot.slane %v1977_v2, 1 }
 0x5a4   :  { %v1979_v17 = vadd.f32 %v1978_v15, %v1977_v2  ;;  %v2020_v2 = vld [vmem:[#allocation10 + $0x70] sm:$0xff]  ;;  %v2025_v15 = vld [vmem:[#allocation10 + $0x98] sm:$0xff] }
 0x5a5   :  { %v4440_v53 = vpop.eup %4439 }
 0x5a6   :  { %v1980_v54 = vadd.f32 %v1979_v17, %v1973_v59  ;;  %v2010_v59 = vld [vmem:[#allocation10 + $0x20] sm:$0xff]  ;;  %v2115_v17 = vld [vmem:[#allocation10 + $0x368] sm:$0xff] }
 0x5a7   :  { %v5651_v4 = vpack.c.bf16 %v2015_v35, %v2010_v59  ;;  %v2130_v59 = vld [vmem:[#allocation10 + $0x3e0] sm:$0xff]  ;;  %v2135_v35 = vld [vmem:[#allocation10 + $0x408] sm:$0xff] }
 0x5a8   :  { %4441 = vtanh.f32 %v1980_v54  ;;  %1985 = vst [vmem:[%s1984_s20] sm:$0x1] %v1980_v54  ;;  %v5659_v54 = vpack.c.bf16 %v2025_v15, %v2020_v2  ;;  %v2145_v2 = vld [vmem:[#allocation10 + $0x458] sm:$0xff]  ;;  %v2060_v15 = vld [vmem:[#allocation10 + $0x1b0] sm:$0xff] }
 0x5b2   :  { %v4442_v23 = vpop.eup %4441 }
 0x5b3   :  { %v1982_v32 = vmul.f32 %v4442_v23, %v4440_v53  ;;  %v5663_v53 = vpack.c.bf16 %v2115_v17, %v2110_v28  ;;  %v2030_v23 = vld [vmem:[#allocation10 + $0xc0] sm:$0xff]  ;;  %v2065_v28 = vld [vmem:[#allocation10 + $0x1d8] sm:$0xff] }
 0x5b4   :  { %v2150_v17 = vld [vmem:[#allocation10 + $0x480] sm:$0xff] }
 0x5b5   :  { %1987 = vst [vmem:[%s1986_s1] sm:$0x1] %v1982_v32  ;;  %v2035_v32 = vld [vmem:[#allocation10 + $0xe8] sm:$0xff] }
 0x5bc   :  { %v5647_v42 = vld [vmem:[#allocation3 + $0x20] sm:$0xff] }
 0x5bd   :  { %v1993_v27 = vrot.slane %v5647_v42, 4 }
 0x5bf   :  { %v1994_v30 = vadd.f32 %v1993_v27, %v5647_v42  ;;  %v2120_v27 = vld [vmem:[#allocation10 + $0x390] sm:$0xff] }
 0x5c1   :  { %v1995_v20 = vrot.slane %v1994_v30, 2 }
 0x5c3   :  { %v1996_v16 = vadd.f32 %v1995_v20, %v1994_v30  ;;  %v2125_v30 = vld [vmem:[#allocation10 + $0x3b8] sm:$0xff]  ;;  %v5669_v20 = vpack.c.bf16 %v2035_v32, %v2030_v23  ;;  %v2155_v23 = vld [vmem:[#allocation10 + $0x4a8] sm:$0xff]  ;;  %v2070_v32 = vld [vmem:[#allocation10 + $0x200] sm:$0xff] }
 0x5c5   :  { %v1997_v6 = vrot.slane %v1996_v16, 1 }
 0x5c7   :  { %v1998_v3 = vadd.f32 %v1997_v6, %v1996_v16  ;;  %v5672_v16 = vpack.c.bf16 %v2125_v30, %v2120_v27  ;;  %v2040_v6 = vld [vmem:[#allocation10 + $0x110] sm:$0xff]  ;;  %v2075_v27 = vld [vmem:[#allocation10 + $0x228] sm:$0xff] }
 0x5c8   :  { %v2160_v30 = vld [vmem:[#allocation10 + $0x4d0] sm:$0xff] }
 0x5c9   :  { %2000 = vst [vmem:[#allocation4 + $0x8] sm:$0x1] %v1998_v3  ;;  %v2045_v3 = vld [vmem:[#allocation10 + $0x138] sm:$0xff] }
 0x5d0   :  { %v2003_v38 = vld [vmem:[#allocation4 + $0x8] sm:$0xff] }
 0x5d1   :  { %2230 = vmatprep.mubr.f32.mxu0 %v2003_v38  ;;  %2305 = vmatprep.mubr.f32.mxu1 %v2003_v38 }
 0x5d2   :  { %2231 = vmatmul.mubr.f32.vlgmr.msra.gmra.mrb[24].mxu0 %v5640_v14  ;;  %2306 = vmatmul.mubr.f32.vlgmr.msra.gmra.mrb[24].mxu1 %v5640_v14 }
 0x5d3   :  { %4154 = vmatpush3.bf16.msra.mxu0 %v5651_v4  ;;  %2236 = vmatprep.mubr.f32.mxu0 %v5647_v42 }
 0x5d4   :  { %2311 = vmatprep.mubr.f32.mxu1 %v5647_v42  ;;  %4156 = vmatprep.subr.bf16.mxu0 %v5653_v46 }
 0x5d5   :  { %4186 = vmatpush1.bf16.msra.mxu1 %v5442_v7  ;;  %v5678_v7 = vpack.c.bf16 %v2045_v3, %v2040_v6  ;;  %v2165_v6 = vld [vmem:[#allocation10 + $0x4f8] sm:$0xff]  ;;  %v2080_v3 = vld [vmem:[#allocation10 + $0x250] sm:$0xff] }
 0x5d6   :  { %2237 = vmatmul.mubr.f32.gmra.mrb[26].mxu0 %v5421_v56  ;;  %4188 = vmatprep.subr.bf16.mxu1 %v5451_v10  ;;  %v5681_v10 = vpack.c.bf16 %v2135_v35, %v2130_v59  ;;  %v2085_v59 = vld [vmem:[#allocation10 + $0x278] sm:$0xff] }
 0x5d7   :  { %4158 = vmatpush3.bf16.msra.mxu0 %v5659_v54  ;;  %2380 = vmatprep.mubr.f32.mxu0 %v2003_v38  ;;  %v2140_v38 = vld [vmem:[#allocation10 + $0x430] sm:$0xff]  ;;  %v5710_v35 = vpack.c.bf16 %v2085_v59, %v2080_v3 }
 0x5d8   :  { %4160 = vmatprep.subr.bf16.mxu0 %v5663_v53  ;;  %2312 = vmatmul.mubr.f32.gmra.mrb[26].mxu1 %v5421_v56 }
 0x5d9   :  { %4190 = vmatpush1.bf16.msra.mxu1 %v5454_v18  ;;  %v5686_v18 = vpack.c.bf16 %v2055_v43, %v2050_v41 }
 0x5da   :  { %4192 = vmatprep.subr.bf16.mxu1 %v5463_v55  ;;  %v5689_v55 = vpack.c.bf16 %v2145_v2, %v2140_v38 }
 0x5db   :  { %4162 = vmatpush3.bf16.msra.mxu0 %v5669_v20 }
 0x5dc   :  { %4164 = vmatprep.subr.bf16.mxu0 %v5672_v16 }
 0x5dd   :  { %4194 = vmatpush1.bf16.msra.mxu1 %v5466_v45  ;;  %v5694_v45 = vpack.c.bf16 %v2065_v28, %v2060_v15 }
 0x5de   :  { %4196 = vmatprep.subr.bf16.mxu1 %v5475_v11  ;;  %v5697_v11 = vpack.c.bf16 %v2155_v23, %v2150_v17 }
 0x5df   :  { %4166 = vmatpush3.bf16.msra.mxu0 %v5678_v7 }
 0x5e0   :  { %4168 = vmatprep.subr.bf16.mxu0 %v5681_v10 }
 0x5e1   :  { %4198 = vmatpush1.bf16.msra.mxu1 %v5478_v57  ;;  %v5702_v57 = vpack.c.bf16 %v2075_v27, %v2070_v32 }
 0x5e2   :  { %4200 = vmatprep.subr.bf16.mxu1 %v5487_v49  ;;  %v5705_v49 = vpack.c.bf16 %v2165_v6, %v2160_v30 }
 0x5e3   :  { %4170 = vmatpush3.bf16.msra.mxu0 %v5686_v18 }
 0x5e4   :  { %4172 = vmatprep.subr.bf16.mxu0 %v5689_v55 }
 0x5e5   :  { %4202 = vmatpush1.bf16.msra.mxu1 %v5490_v39  ;;  %v6038_v39 = vld [vmem:[#allocation32_spill] sm:$0xff] }
 0x5e6   :  { %4204 = vmatprep.subr.bf16.mxu1 %v5499_v1  ;;  %v6041_v1 = vld [vmem:[#allocation39_spill] sm:$0xff] }
 0x5e7   :  { %4174 = vmatpush3.bf16.msra.mxu0 %v5694_v45 }
 0x5e8   :  { %4176 = vmatprep.subr.bf16.mxu0 %v5697_v11 }
 0x5e9   :  { %4206 = vmatpush1.bf16.msra.mxu1 %v5502_v21  ;;  %v6042_v21 = vld [vmem:[#allocation40_spill] sm:$0xff] }
 0x5ea   :  { %4208 = vmatprep.subr.bf16.mxu1 %v5511_v29  ;;  %v6044_v29 = vld [vmem:[#allocation21_spill] sm:$0xff] }
 0x5eb   :  { %4178 = vmatpush3.bf16.msra.mxu0 %v5702_v57 }
 0x5ec   :  { %4180 = vmatprep.subr.bf16.mxu0 %v5705_v49 }
 0x5ed   :  { %4210 = vmatpush1.bf16.msra.mxu1 %v5514_v8  ;;  %v6045_v8 = vld [vmem:[#allocation43_spill] sm:$0xff] }
 0x5ee   :  { %4212 = vmatprep.subr.bf16.mxu1 %v5523_v19  ;;  %v6046_v19 = vld [vmem:[#allocation45_spill] sm:$0xff] }
 0x5ef   :  { %4182 = vmatpush3.bf16.msra.mxu0 %v5710_v35 }
 0x5f0   :  { %4248 = vmatprep.subr.bf16.mxu0 %v5445_v62  ;;  %v6030_v62 = vld [vmem:[#allocation18_spill] sm:$0xff] }
 0x5f1   :  { %4214 = vmatpush1.bf16.msra.mxu1 %v5526_v36  ;;  %v6047_v36 = vld [vmem:[#allocation22_spill] sm:$0xff] }
 0x5f2   :  { %2381 = vmatmul.mubr.f32.vlgmr.msra.gmra.mrb[28].mxu0 %v5640_v14  ;;  %4216 = vmatprep.subr.bf16.mxu1 %v5535_v25  ;;  %v6048_v25 = vld [vmem:[#allocation23_spill] sm:$0xff] }
 0x5f3   :  { %2384 = vmatprep.mubr.f32.mxu0 %v5647_v42  ;;  %4250 = vmatpush1.bf16.msra.mxu0 %v5447_v40  ;;  %v6031_v40 = vld [vmem:[#allocation26_spill] sm:$0xff] }
 0x5f4   :  { %4252 = vmatprep.subr.bf16.mxu0 %v5457_v22  ;;  %v6032_v22 = vld [vmem:[#allocation27_spill] sm:$0xff] }
 0x5f5   :  { %4218 = vmatpush1.bf16.msra.mxu1 %v5538_v47  ;;  %v6049_v47 = vld [vmem:[#allocation24_spill] sm:$0xff] }
 0x5f6   :  { %2385 = vmatmul.mubr.f32.gmra.mrb[30].mxu0 %v5421_v56  ;;  %4220 = vmatprep.subr.bf16.mxu1 %v5547_v34  ;;  %v6029_v56 = vld [vmem:[#allocation29_spill] sm:$0xff] }
 0x5f7   :  { %4254 = vmatpush1.bf16.msra.mxu0 %v5459_v50  ;;  %v6033_v50 = vld [vmem:[#allocation35_spill] sm:$0xff]  ;;  %v6050_v34 = vld [vmem:[#allocation25_spill] sm:$0xff] }
 0x5f8   :  { %4256 = vmatprep.subr.bf16.mxu0 %v5469_v37  ;;  %v6034_v37 = vld [vmem:[#allocation36_spill] sm:$0xff] }
 0x5f9   :  { %4222 = vmatpush1.bf16.msra.mxu1 %v5550_v13  ;;  %v6051_v13 = vld [vmem:[#allocation30_spill] sm:$0xff] }
 0x5fa   :  { %4224 = vmatprep.subr.bf16.mxu1 %v5558_v26  ;;  %v6052_v26 = vld [vmem:[#allocation31_spill] sm:$0xff] }
 0x5fb   :  { %4258 = vmatpush1.bf16.msra.mxu0 %v5471_v63  ;;  %v6035_v63 = vld [vmem:[#allocation33_spill] sm:$0xff] }
 0x5fc   :  { %4260 = vmatprep.subr.bf16.mxu0 %v5481_v48  ;;  %v6036_v48 = vld [vmem:[#allocation34_spill] sm:$0xff] }
 0x5fd   :  { %4226 = vmatpush1.bf16.msra.mxu1 %v5561_v51  ;;  %v6053_v51 = vld [vmem:[#allocation37_spill] sm:$0xff] }
 0x5fe   :  { %4228 = vmatprep.subr.bf16.mxu1 %v5570_v31  ;;  %v6055_v31 = vld [vmem:[#allocation42_spill] sm:$0xff] }
 0x5ff   :  { %4262 = vmatpush1.bf16.msra.mxu0 %v5483_v12  ;;  %v6037_v12 = vld [vmem:[#allocation19_spill] sm:$0xff] }
 0x600   :  { %4264 = vmatprep.subr.bf16.mxu0 %v5493_v24  ;;  %v6039_v24 = vld [vmem:[#allocation41_spill] sm:$0xff] }
 0x601   :  { %4230 = vmatpush1.bf16.msra.mxu1 %v5573_v61  ;;  %v2390_v61 = vld [vmem:[%s5826_s3] sm:$0xf] }
 0x602   :  { %4232 = vmatprep.subr.bf16.mxu1 %v5578_v9  ;;  %v2395_v9 = vrot.slane %v2390_v61, %v5025_v44  ;;  %v2403_v23 = vrot.slane %v2390_v61, %v5033_v52 }
 0x603   :  { %4266 = vmatpush1.bf16.msra.mxu0 %v5495_v58  ;;  %v6040_v58 = vld [vmem:[#allocation44_spill] sm:$0xff] }
 0x604   :  { %4268 = vmatprep.subr.bf16.mxu0 %v5505_v33  ;;  %v6043_v33 = vld [vmem:[#allocation20_spill] sm:$0xff] }
 0x605   :  { %4234 = vmatpush1.bf16.msra.mxu1 %v5587_v0 }
 0x606   :  { %4236 = vmatprep.subr.bf16.mxu1 %v5590_v5  ;;  %v6054_v5 = vld [vmem:[#allocation38_spill] sm:$0xff] }
 0x607   :  { %4270 = vmatpush1.bf16.msra.mxu0 %v6029_v56  ;;  %v6056_v56 = vld [vmem:[#allocation28_spill] sm:$0xff] }
 0x608   :  { %4272 = vmatprep.subr.bf16.mxu0 %v6030_v62  ;;  %v2407_v62 = vrot.slane %v2390_v61, %v6056_v56 }
 0x609   :  { %4238 = vmatpush1.bf16.msra.mxu1 %v6031_v40 }
 0x60a   :  { %4240 = vmatprep.subr.bf16.mxu1 %v6032_v22 }
 0x60b   :  { %4274 = vmatpush1.bf16.msra.mxu0 %v6033_v50 }
 0x60c   :  { %4276 = vmatprep.subr.bf16.mxu0 %v6034_v37 }
 0x60d   :  { %4242 = vmatpush1.bf16.msra.mxu1 %v6035_v63 }
 0x60e   :  { %4244 = vmatprep.subr.bf16.mxu1 %v6036_v48  ;;  %v5778_v48 = vld [vmem:[%s5827_s4] ss:$0 sm:$0xff]  ;;  %s3097_s4 = sld [smem:[#allocation6 + $0x4]] }
 0x60f   :  { %4278 = vmatpush1.bf16.msra.mxu0 %v6037_v12 }
 0x610   :  { %4280 = vmatprep.subr.bf16.mxu0 %v6038_v39 }
 0x611   :  { %4246 = vmatpush1.bf16.msra.mxu1 %v6039_v24 }
 0x612   :  { %4312 = vmatprep.subr.bf16.mxu1 %v6040_v58 }
 0x613   :  { %4282 = vmatpush1.bf16.msra.mxu0 %v6041_v1 }
 0x614   :  { %4284 = vmatprep.subr.bf16.mxu0 %v6042_v21  ;;  %s2460_s24 = scalar_lea.vmem [#allocation2], %s3097_s4  ;;  %s2462_s25 = scalar_lea.vmem [#allocation3], %s3097_s4 }
 0x617   :  { %4286 = vmatpush1.bf16.msra.mxu0 %v6043_v33  ;;  %v2399_v33 = vrot.slane %v2390_v61, %v5046_v60 }
 0x618   :  { %4288 = vmatprep.subr.bf16.mxu0 %v6044_v29 }
 0x61b   :  { %4290 = vmatpush1.bf16.msra.mxu0 %v6045_v8 }
 0x61c   :  { %4292 = vmatprep.subr.bf16.mxu0 %v6046_v19 }
 0x61f   :  { %4294 = vmatpush1.bf16.msra.mxu0 %v6047_v36 }
 0x620   :  { %4296 = vmatprep.subr.bf16.mxu0 %v6048_v25  ;;  %v1992_v25 = vld [vmem:[#allocation2 + $0x20] sm:$0xff] }
 0x623   :  { %4298 = vmatpush1.bf16.msra.mxu0 %v6049_v47 }
 0x624   :  { %4300 = vmatprep.subr.bf16.mxu0 %v6050_v34 }
 0x627   :  { %4302 = vmatpush1.bf16.msra.mxu0 %v6051_v13 }
 0x628   :  { %4304 = vmatprep.subr.bf16.mxu0 %v6052_v26 }
 0x62b   :  { %4306 = vmatpush1.bf16.msra.mxu0 %v6053_v51 }
 0x62c   :  { %4308 = vmatprep.subr.bf16.mxu0 %v6054_v5 }
 0x62f   :  { %4310 = vmatpush1.bf16.msra.mxu0 %v6055_v31 }
 0x6a5   :  { %v2232_v0 = vpop.f32.mrb[24].mxu0  ;;  %v2307_v14 = vpop.f32.mrb[24].mxu1 }
 0x6a6   :  { %v2412_v42 = vadd.f32 %v2395_v9, %v2232_v0  ;;  %v2234_v41 = vpop.f32.mrb[25].mxu0  ;;  %v2309_v43 = vpop.f32.mrb[25].mxu1  ;;  %v2414_v32 = vadd.f32 %v2403_v23, %v2307_v14 }
 0x6a7   :  { %v2415_v50 = vadd.f32 %v2407_v62, %v2309_v43  ;;  %v2413_v8 = vadd.f32 %v2399_v33, %v2234_v41 }
 0x6a8   :  { %v3093_v38 = vmul.f32 -1.442695, %v2412_v42 }
 0x6a9   :  { %v2238_v2 = vpop.f32.mrb[26].mxu0  ;;  %v2440_v12 = vrot.slane %v2415_v50, %v5025_v44  ;;  %v3094_v19 = vmul.f32 -1.442695, %v2413_v8  ;;  %v2955_v50 = vld [vmem:[#allocation12 + $0x70] sm:$0xff] }
 0x6aa   :  { %4443 = vpow2.f32 %v3093_v38  ;;  %v2239_v15 = vpop.f32.mrb[27].mxu0 }
 0x6ab   :  { %v2313_v28 = vpop.f32.mrb[26].mxu1  ;;  %4445 = vtanh.f32 %v2414_v32  ;;  %v2478_v32 = vld [vmem:[#allocation4] sm:$0xff] }
 0x6ac   :  { %v2314_v17 = vpop.f32.mrb[27].mxu1 }
 0x6b4   :  { %v4444_v27 = vpop.eup %4443 }
 0x6b5   :  { %v2419_v30 = vadd.f32 1.0, %v4444_v27  ;;  %v4446_v6 = vpop.eup %4445 }
 0x6b7   :  { %4447 = vrcp.f32 %v2419_v30  ;;  %v4481_v30 = vld [vmem:[#allocation4 + $0x10] sm:$0xff] }
 0x6c1   :  { %v4448_v3 = vpop.eup %4447 }
 0x6c2   :  { %v2449_v59 = vmul.f32 %v4448_v3, %v4446_v6  ;;  %v2951_v3 = vld [vmem:[#allocation12 + $0x50] sm:$0xff] }
 0x6c5   :  { %v3287_v40 = vpop.f32.mrb[28].mxu0 }
 0x6c6   :  { %v3288_v22 = vpop.f32.mrb[29].mxu0  ;;  %v2953_v40 = vld [vmem:[#allocation12 + $0x60] sm:$0xff] }
 0x6c7   :  { %v2954_v22 = vld [vmem:[#allocation12 + $0x68] sm:$0xff] }
 0x6c9   :  { %v3290_v37 = vpop.f32.mrb[30].mxu0 }
 0x6ca   :  { %v3291_v63 = vpop.f32.mrb[31].mxu0 }
 0x6cb   :  { %v3292_v39 = vadd.f32 %v3291_v63, %v3290_v37  ;;  %v4362_v37 = vpack.c.bf16 %v2954_v22, %v2953_v40  ;;  %v2956_v63 = vld [vmem:[#allocation12 + $0x78] sm:$0xff] }
 0x6cd   :  { %v2436_v24 = vadd.f32 %v3292_v39, %v5778_v48  ;;  %v2866_v39 = vld [vmem:[%s5826_s3] sm:$0xf]  ;;  %s3102_s3 = sld [smem:[#allocation6 + $0x5]] }
 0x6cf   :  { %v2441_v58 = vadd.f32 %v2440_v12, %v2436_v24  ;;  %v4365_v12 = vpack.c.bf16 %v2956_v63, %v2955_v50  ;;  %v2871_v24 = vrot.slane %v2866_v39, %v5025_v44 }
 0x6d1   :  { %v3096_v1 = vmul.f32 -1.442695, %v2441_v58 }
 0x6d3   :  { %4449 = vpow2.f32 %v3096_v1  ;;  %s2936_s28 = scalar_lea.vmem [#allocation2], %s3102_s3  ;;  %s2938_s29 = scalar_lea.vmem [#allocation3], %s3102_s3 }
 0x6dd   :  { %v4450_v21 = vpop.eup %4449 }
 0x6de   :  { %v2445_v29 = vadd.f32 1.0, %v4450_v21 }
 0x6e0   :  { %4451 = vrcp.f32 %v2445_v29 }
 0x6e1   :  { %4453 = vpow2.f32 %v3094_v19 }
 0x6ea   :  { %v4452_v36 = vpop.eup %4451 }
 0x6eb   :  { %v2448_v47 = vmul.f32 %v4452_v36, %v1992_v25  ;;  %v4454_v51 = vpop.eup %4453 }
 0x6ec   :  { %v2425_v9 = vadd.f32 1.0, %v4454_v51 }
 0x6ed   :  { %v2450_v34 = vrot.slane %v2448_v47, 4 }
 0x6ee   :  { %4455 = vrcp.f32 %v2425_v9 }
 0x6ef   :  { %v2451_v13 = vadd.f32 %v2450_v34, %v2448_v47  ;;  %v2879_v34 = vrot.slane %v2866_v39, %v5033_v52 }
 0x6f1   :  { %v2452_v26 = vrot.slane %v2451_v13, 2 }
 0x6f3   :  { %v2453_v5 = vadd.f32 %v2452_v26, %v2451_v13 }
 0x6f5   :  { %v2454_v31 = vrot.slane %v2453_v5, 1 }
 0x6f7   :  { %v2455_v0 = vadd.f32 %v2454_v31, %v2453_v5 }
 0x6f8   :  { %v4456_v61 = vpop.eup %4455 }
 0x6f9   :  { %v2456_v14 = vadd.f32 %v2455_v0, %v2449_v59  ;;  %v2952_v59 = vld [vmem:[#allocation12 + $0x58] sm:$0xff]  ;;  %v2883_v0 = vrot.slane %v2866_v39, %v6056_v56 }
 0x6fa   :  { %v4359_v62 = vpack.c.bf16 %v2952_v59, %v2951_v3 }
 0x6fb   :  { %4457 = vtanh.f32 %v2456_v14  ;;  %2461 = vst [vmem:[%s2460_s24] sm:$0x1] %v2456_v14 }
 0x705   :  { %v4458_v42 = vpop.eup %4457 }
 0x706   :  { %v2458_v41 = vmul.f32 %v4458_v42, %v4456_v61 }
 0x708   :  { %2463 = vst [vmem:[%s2462_s25] sm:$0x1] %v2458_v41 }
 0x70f   :  { %v2466_v43 = vld [vmem:[#allocation3 + $0x28] sm:$0xff] }
 0x710   :  { %v2469_v38 = vrot.slane %v2466_v43, 4 }
 0x712   :  { %v2470_v2 = vadd.f32 %v2469_v38, %v2466_v43 }
 0x714   :  { %v2471_v15 = vrot.slane %v2470_v2, 2 }
 0x716   :  { %v2472_v28 = vadd.f32 %v2471_v15, %v2470_v2 }
 0x718   :  { %v2473_v17 = vrot.slane %v2472_v28, 1 }
 0x71a   :  { %v2474_v23 = vadd.f32 %v2473_v17, %v2472_v28 }
 0x71c   :  { %2476 = vst [vmem:[#allocation4 + $0x8] sm:$0x1] %v2474_v23  ;;  %v2875_v23 = vrot.slane %v2866_v39, %v5046_v60 }
 0x723   :  { %v2479_v27 = vld [vmem:[#allocation4 + $0x8] sm:$0xff] }
 0x724   :  { %2706 = vmatprep.mubr.f32.mxu1 %v2479_v27  ;;  %2781 = vmatprep.mubr.f32.mxu0 %v2479_v27 }
 0x725   :  { %2707 = vmatmul.mubr.f32.vlgmr.msra.gmra.mrb[28].mxu1 %v2478_v32  ;;  %2782 = vmatmul.mubr.f32.vlgmr.msra.gmra.mrb[32].mxu0 %v2478_v32 }
 0x726   :  { %4314 = vmatpush3.bf16.msra.mxu1 %v5651_v4  ;;  %2712 = vmatprep.mubr.f32.mxu1 %v2466_v43  ;;  %v2941_v4 = vld [vmem:[#allocation12] sm:$0xff] }
 0x727   :  { %2787 = vmatprep.mubr.f32.mxu0 %v2466_v43  ;;  %4316 = vmatprep.subr.bf16.mxu1 %v5653_v46  ;;  %v2942_v46 = vld [vmem:[#allocation12 + $0x8] sm:$0xff] }
 0x729   :  { %2713 = vmatmul.mubr.f32.gmra.mrb[30].mxu1 %v4481_v30  ;;  %2788 = vmatmul.mubr.f32.gmra.mrb[34].mxu0 %v4481_v30 }
 0x72a   :  { %4318 = vmatpush3.bf16.msra.mxu1 %v5659_v54  ;;  %2856 = vmatprep.mubr.f32.mxu1 %v2479_v27  ;;  %v4344_v54 = vpack.c.bf16 %v2942_v46, %v2941_v4  ;;  %v2468_v4 = vld [vmem:[#allocation2 + $0x28] sm:$0xff] }
 0x72b   :  { %4320 = vmatprep.subr.bf16.mxu1 %v5663_v53  ;;  %v4597_v53 = vmov 0.0|0.0   ;;  %3380 = vmatprep.mubr.msk.f32.mxu0 %vm4598_vm0, %v4481_v30 }
 0x72c   :  { %4343 = vmatprep.subr.bf16.mxu0 %v4597_v53 }
 0x72d   :  { %4345 = vmatpush3.bf16.msra.mxu0 %v4344_v54 }
 0x72e   :  { %4322 = vmatpush3.bf16.msra.mxu1 %v5669_v20  ;;  %4346 = vmatprep.subr.bf16.mxu0 %v4597_v53  ;;  %v2943_v20 = vld [vmem:[#allocation12 + $0x10] sm:$0xff] }
 0x72f   :  { %4324 = vmatprep.subr.bf16.mxu1 %v5672_v16  ;;  %v2944_v16 = vld [vmem:[#allocation12 + $0x18] sm:$0xff] }
 0x732   :  { %4326 = vmatpush3.bf16.msra.mxu1 %v5678_v7  ;;  %v4347_v7 = vpack.c.bf16 %v2944_v16, %v2943_v20 }
 0x733   :  { %4328 = vmatprep.subr.bf16.mxu1 %v5681_v10  ;;  %v2945_v10 = vld [vmem:[#allocation12 + $0x20] sm:$0xff] }
 0x734   :  { %4348 = vmatpush3.bf16.msra.mxu0 %v4347_v7 }
 0x735   :  { %4349 = vmatprep.subr.bf16.mxu0 %v4597_v53 }
 0x736   :  { %4330 = vmatpush3.bf16.msra.mxu1 %v5686_v18  ;;  %v2946_v18 = vld [vmem:[#allocation12 + $0x28] sm:$0xff] }
 0x737   :  { %4332 = vmatprep.subr.bf16.mxu1 %v5689_v55  ;;  %v4350_v55 = vpack.c.bf16 %v2946_v18, %v2945_v10 }
 0x739   :  { %4351 = vmatpush3.bf16.msra.mxu0 %v4350_v55 }
 0x73a   :  { %4334 = vmatpush3.bf16.msra.mxu1 %v5694_v45  ;;  %4352 = vmatprep.subr.bf16.mxu0 %v4597_v53  ;;  %v2947_v45 = vld [vmem:[#allocation12 + $0x30] sm:$0xff] }
 0x73b   :  { %4336 = vmatprep.subr.bf16.mxu1 %v5697_v11  ;;  %v2948_v11 = vld [vmem:[#allocation12 + $0x38] sm:$0xff] }
 0x73e   :  { %4338 = vmatpush3.bf16.msra.mxu1 %v5702_v57  ;;  %v4353_v57 = vpack.c.bf16 %v2948_v11, %v2947_v45 }
 0x73f   :  { %4340 = vmatprep.subr.bf16.mxu1 %v5705_v49  ;;  %v2949_v49 = vld [vmem:[#allocation12 + $0x40] sm:$0xff] }
 0x740   :  { %4354 = vmatpush3.bf16.msra.mxu0 %v4353_v57  ;;  %v6057_v57 = vlaneseq }
 0x741   :  { %4355 = vmatprep.subr.bf16.mxu0 %v4597_v53 }
 0x742   :  { %4342 = vmatpush3.bf16.msra.mxu1 %v5710_v35  ;;  %v2950_v35 = vld [vmem:[#allocation12 + $0x48] sm:$0xff] }
 0x743   :  { %v4356_v6 = vpack.c.bf16 %v2950_v35, %v2949_v49  ;;  %v3029_v49 = vand.u32 127, %v6057_v57  ;;  %v2957_v35 = vld [vmem:[%s5829_s6] sm:$0x1]  ;;  %s3052_s6 = sshll.u32 %s4599_s9, 4  ;;  %s3053_s6 = int_to_ptr.vmem [resolvable:$true] %s3052_s6 }
 0x744   :  { %s4558_s10 = scalar_lea.vmem %s3053_s6, 16  ;;  %s4562_s11 = scalar_lea.vmem %s3053_s6, 32 }
 0x745   :  { %2857 = vmatmul.mubr.f32.vlgmr.msra.gmra.mrb[32].mxu1 %v2478_v32  ;;  %4357 = vmatpush3.bf16.msra.mxu0 %v4356_v6  ;;  %vm3030_vm1 = vcmp.lt.s32.totalorder %v3029_v49, 4  ;;  %p4559_p13 = scmp.ne.s32.totalorder %s3053_s6, %s4558_s10  ;;  %p4563_p0 = scmp.lt.s32.totalorder %s3053_s6, %s3053_s6 }
 0x746   :  { %2860 = vmatprep.mubr.f32.mxu1 %v2466_v43  ;;  %4358 = vmatprep.subr.bf16.mxu0 %v4597_v53  ;;  %p4564_p1 = scmp.lt.s32.totalorder %s4562_s11, %s4558_s10 }
 0x748   :  { %p4565_p2 = por %p4564_p1, %p4563_p0 }
 0x749   :  { %2861 = vmatmul.mubr.f32.gmra.mrb[34].mxu1 %v4481_v30  ;;  %4360 = vmatpush3.bf16.msra.mxu0 %v4359_v62 }
 0x74a   :  { %4361 = vmatprep.subr.bf16.mxu0 %v4597_v53  ;;  %p4566_p3 = pnand %p4565_p2, %p4559_p13 }
 0x74d   :  { %4363 = vmatpush3.bf16.msra.mxu0 %v4362_v37 }
 0x74e   :  { %4364 = vmatprep.subr.bf16.mxu0 %v4597_v53 }
 0x751   :  { %4366 = vmatpush3.bf16.msra.mxu0 %v4365_v12 }
 0x7f8   :  { %v2708_v58 = vpop.f32.mrb[28].mxu1  ;;  %v2783_v1 = vpop.f32.mrb[32].mxu0 }
 0x7f9   :  { %v2888_v21 = vadd.f32 %v2871_v24, %v2708_v58  ;;  %v2710_v33 = vpop.f32.mrb[29].mxu1  ;;  %v2785_v29 = vpop.f32.mrb[33].mxu0  ;;  %v2890_v13 = vadd.f32 %v2879_v34, %v2783_v1 }
 0x7fa   :  { %v2891_v42 = vadd.f32 %v2883_v0, %v2785_v29  ;;  %v2889_v27 = vadd.f32 %v2875_v23, %v2710_v33 }
 0x7fb   :  { %v3098_v8 = vmul.f32 -1.442695, %v2888_v21 }
 0x7fc   :  { %v2714_v19 = vpop.f32.mrb[30].mxu1  ;;  %v2789_v36 = vpop.f32.mrb[34].mxu0  ;;  %v2916_v38 = vrot.slane %v2891_v42, %v5025_v44  ;;  %v3099_v56 = vmul.f32 -1.442695, %v2889_v27 }
 0x7fd   :  { %4459 = vpow2.f32 %v3098_v8  ;;  %v2715_v25 = vpop.f32.mrb[31].mxu1  ;;  %v2790_v47 = vpop.f32.mrb[35].mxu0 }
 0x7fe   :  { %4461 = vtanh.f32 %v2890_v13 }
 0x807   :  { %v4460_v26 = vpop.eup %4459 }
 0x808   :  { %v2895_v51 = vadd.f32 1.0, %v4460_v26  ;;  %v4462_v5 = vpop.eup %4461 }
 0x80a   :  { %4463 = vrcp.f32 %v2895_v51 }
 0x814   :  { %v4464_v31 = vpop.eup %4463 }
 0x815   :  { %v2925_v9 = vmul.f32 %v4464_v31, %v4462_v5 }
 0x818   :  { %v3325_v14 = vpop.f32.mrb[32].mxu1 }
 0x819   :  { %v3326_v61 = vpop.f32.mrb[33].mxu1 }
 0x81c   :  { %v3328_v41 = vpop.f32.mrb[34].mxu1 }
 0x81d   :  { %v3329_v43 = vpop.f32.mrb[35].mxu1 }
 0x81e   :  { %v3330_v2 = vadd.f32 %v3329_v43, %v3328_v41 }
 0x820   :  { %v2912_v52 = vadd.f32 %v3330_v2, %v5778_v48 }
 0x822   :  { %v2917_v15 = vadd.f32 %v2916_v38, %v2912_v52 }
 0x824   :  { %v3101_v28 = vmul.f32 -1.442695, %v2917_v15 }
 0x826   :  { %4465 = vpow2.f32 %v3101_v28 }
 0x830   :  { %v4466_v17 = vpop.eup %4465 }
 0x831   :  { %v2921_v32 = vadd.f32 1.0, %v4466_v17 }
 0x833   :  { %4467 = vrcp.f32 %v2921_v32 }
 0x834   :  { %4469 = vpow2.f32 %v3099_v56 }
 0x83d   :  { %v4468_v30 = vpop.eup %4467 }
 0x83e   :  { %v2924_v46 = vmul.f32 %v4468_v30, %v2468_v4  ;;  %v4470_v20 = vpop.eup %4469 }
 0x83f   :  { %v2901_v7 = vadd.f32 1.0, %v4470_v20 }
 0x840   :  { %v2926_v54 = vrot.slane %v2924_v46, 4 }
 0x841   :  { %4471 = vrcp.f32 %v2901_v7 }
 0x842   :  { %v2927_v53 = vadd.f32 %v2926_v54, %v2924_v46 }
 0x844   :  { %v2928_v44 = vrot.slane %v2927_v53, 2 }
 0x846   :  { %v2929_v48 = vadd.f32 %v2928_v44, %v2927_v53 }
 0x848   :  { %v2930_v16 = vrot.slane %v2929_v48, 1 }
 0x84a   :  { %v2931_v10 = vadd.f32 %v2930_v16, %v2929_v48 }
 0x84b   :  { %v4472_v60 = vpop.eup %4471 }
 0x84c   :  { %v2932_v18 = vadd.f32 %v2931_v10, %v2925_v9 }
 0x84e   :  { %4473 = vtanh.f32 %v2932_v18  ;;  %2937 = vst [vmem:[%s2936_s28] sm:$0x1] %v2932_v18 }
 0x858   :  { %v4474_v55 = vpop.eup %4473 }
 0x859   :  { %v2934_v45 = vmul.f32 %v4474_v55, %v4472_v60 }
 0x85b   :  { %2939 = vst [vmem:[%s2938_s29] sm:$0x1] %v2934_v45 }
 0x862   :  { %v2940_v11 = vld [vmem:[#allocation3 + $0x30] sm:$0x1] }
 0x863   :  { %3381 = vmatmul.mubr.f32.vlgmr.msra.gmra.mrb[36].mxu0 %v2940_v11 }
 0x936   :  { %v3024_v6 = vpop.f32.mrb[36].mxu0 }
 0x937   :  { %v3025_v3 = vadd.f32 %v3024_v6, %v2957_v35  ;;  %v3382_v59 = vpop.f32.mrb[37].mxu0 }
 0x939   :  { %v3031_v62 = vsel %vm3030_vm1, %v3025_v3, -1e+30 }
 0x93a   :  { %v3033_v40 = vsel %vm3032_vm2, %v3031_v62, -inf }
 0x93b   :  { %3034 = vmax.xlane.f32.xlu0 %v3033_v40 }
 0x9c8   :  { %v3035_v22 = vpop.xlane.xlu0 %3034 }
 0x9c9   :  { %v3036_v50 = vsub.f32 %v3031_v62, %v3035_v22 }
 0x9cb   :  { %v3037_v37 = vmul.f32 1.442695, %v3036_v50 }
 0x9cd   :  { %4475 = vpow2.f32 %v3037_v37 }
 0x9d7   :  { %v4476_v63 = vpop.eup %4475 }
 0x9d8   :  { %v3039_v12 = vsel %vm3032_vm2, %v4476_v63, 0.0 }
 0x9d9   :  { %3040 = vadd.xlane.f32.xlu0 %v3039_v12 }
 0xa66   :  { %v3041_v39 = vpop.xlane.xlu0 %3040 }
 0xa67   :  { %4477 = vlog2.f32 %v3041_v39 }
 0xa71   :  { %v4478_v24 = vpop.eup %4477 }
 0xa72   :  { %v3043_v58 = vmul.f32 0.6931472, %v4478_v24 }
 0xa74   :  { %v3044_v1 = vsub.f32 %v3036_v50, %v3043_v58 }
 0xa76   :  { %3045 = vst [vmem:[#allocation13] sm:$0x1] %v3044_v1 }
 0xa77   :  { %4569 = shalt.err (!%p4566_p3)
}
 0xa78   :  { %s4570_s13 = scalar_lea.hbm %s5830_s7, 16 }
 0xa79   :  { %p4571_p4 = scmp.ne.s32.totalorder %s5830_s7, %s4570_s13  ;;  %p4574_p5 = scmp.lt.u32.totalorder %s4570_s13, %s5830_s7 }
 0xa7b   :  { %p4576_p6 = pnand %p4574_p5, %p4571_p4 }
 0xa7d   :  { %4579 = shalt.err (!%p4576_p6)
}
 0xa7e   :  { %3055 = dma.vmem_to_hbm [thread:$0]  %s3053_s6, 16, %s5830_s7, [#allocation9]  }
 0xa7f   :  { %4586 = dma.done.wait [#allocation9], 16  }
 0xa80   :  { %4587 = vsyncadd [#allocation9], 4294967280 }
 0xa81   :  { %3059 = vsyncpa [#allocation8], 1 }
 0xa82   :  { %3060 = vsyncpa [#allocation11], 1 }
 0xa83   :  { %3061 = vsyncpa [#allocation9], 1 }

</bundles_post_ra>
